<compile_context>
chip_gen: v6e
topology: v6e:2x2x1
jax: 0.10.0
libtpu: 0.0.40
codegen_flags: <defaults>
</compile_context>

<pallas_src>
import jax
import jax.numpy as jnp
from jax import lax
from jax.experimental import pallas as pl
from jax.experimental.pallas import tpu as pltpu

# ----------------------------- problem sizes -----------------------------
B = 2                      # batch
BP = 8                     # sublane-padded batch for the language path
IMG_C, IMG_H, IMG_W = 3, 16, 16
RESNET_OUT_LAYER = 2
C = 2 ** (5 + RESNET_OUT_LAYER)   # 128 feature channels
FH, FW = IMG_H // 2, IMG_W // 2   # conv stem stride 2 -> 8x8
HW = FH * FW                      # 64
K_RAW = IMG_C * 9                 # 27 im2col columns
K_PAD = 32                        # padded to a multiple of 8
VOCAB = 16
T = 8                      # mission length
E_WORD = 32                # word embedding dim
EMB_DIM = 128              # GruEncoder.output_size == emb_dim
N_FILM = 2                 # cfg.arch.film_modules

_VMEM = pl.BlockSpec(memory_space=pltpu.MemorySpace.VMEM)


# ------------------------------- fused kernel -----------------------------
def _fused_forward_kernel(
        patches_ref, conv_w_ref, conv_b_ref,
        emb_ref, wih_ref, whh_ref, bih_ref, bhh_ref,
        wc_ref, bc_ref, wgb_ref, bgb_ref,
        proj_w_ref, proj_b_ref,
        out_ref):
    H = EMB_DIM
    pid = pl.program_id(0)

    # ---------------- program 0: anchor image + language + FiLM -----------
    @pl.when(pid == 0)
    def _anchor_language_path():
        # Vision stem on the anchor patches (bf16 x bf16 -> f32 acc).
        feat1 = jnp.maximum(
            jnp.dot(patches_ref[0:B * HW, :], conv_w_ref[...],
                    preferred_element_type=jnp.float32) + conv_b_ref[...],
            0.0)                                                 # (B*HW, C)

        # GRU input projection for all timesteps hoisted out of the loop;
        # kept as a value (no VMEM scratch round trip).
        gi_all = (jnp.dot(emb_ref[...], wih_ref[...],
                          preferred_element_type=jnp.float32) + bih_ref[...])

        bhh = bhh_ref[...]                                       # (1, 3H) f32
        whh = whh_ref[...]                                       # (H, 3H) bf16
        h = jnp.zeros((BP, H), jnp.float32)
        for t in range(T):   # static unroll; h stays in vregs, f32
            gi = gi_all[t * BP:(t + 1) * BP, :]                  # (BP, 3H)
            gh = jnp.dot(h.astype(jnp.bfloat16), whh,
                         preferred_element_type=jnp.float32) + bhh
            r = jax.nn.sigmoid(gi[:, 0:H] + gh[:, 0:H])
            zg = jax.nn.sigmoid(gi[:, H:2 * H] + gh[:, H:2 * H])
            n = jnp.tanh(gi[:, 2 * H:3 * H] + r * gh[:, 2 * H:3 * H])
            h = (1.0 - zg) * n + zg * h

        # gamma/beta for every FiLM controller in a single matmul.
        gb = jnp.dot(h.astype(jnp.bfloat16), wgb_ref[...],
                     preferred_element_type=jnp.float32) + bgb_ref[...]

        # FiLM controllers, statically unrolled.
        z1 = feat1
        for i in range(N_FILM):
            y = jnp.dot(z1.astype(jnp.bfloat16), wc_ref[i],
                        preferred_element_type=jnp.float32) + bc_ref[i]
            gamma = gb[0:B, 2 * i * C:(2 * i + 1) * C]           # (B, C)
            beta = gb[0:B, (2 * i + 1) * C:(2 * i + 2) * C]      # (B, C)
            y3 = y.reshape(B, HW, C)
            res = z1.reshape(B, HW, C)
            z1 = (jnp.maximum(y3 * gamma[:, None, :] + beta[:, None, :], 0.0)
                  + res).reshape(B * HW, C)

        # max-pool 'b c h w -> b c' + projection (anchor only).
        pooled1 = jnp.max(z1.reshape(B, HW, C), axis=1)          # (B, C)
        p1 = (jnp.dot(pooled1.astype(jnp.bfloat16), proj_w_ref[...],
                      preferred_element_type=jnp.float32) + proj_b_ref[...])
        out_ref[0] = jnp.concatenate(
            [p1, jnp.zeros((B, EMB_DIM), jnp.float32)], axis=0)  # pad rows

    # ---------------- program 1: x2 / x3 images (GRU-independent) ---------
    @pl.when(pid == 1)
    def _implication_images_path():
        feat23 = jnp.maximum(
            jnp.dot(patches_ref[B * HW:3 * B * HW, :], conv_w_ref[...],
                    preferred_element_type=jnp.float32) + conv_b_ref[...],
            0.0)                                                 # (2B*HW, C)
        pooled23 = jnp.max(feat23.reshape(2 * B, HW, C), axis=1) # (2B, C)
        out_ref[0] = (jnp.dot(pooled23.astype(jnp.bfloat16), proj_w_ref[...],
                              preferred_element_type=jnp.float32)
                      + proj_b_ref[...])


# ------------------------------ glue / wrapper -----------------------------
def _extract_patches(x_all):
    # x_all: (3B, 3, 16, 16) NCHW, pad=1, kernel 3x3, stride 2
    p = lax.conv_general_dilated_patches(
        x_all, filter_shape=(3, 3), window_strides=(2, 2),
        padding=((1, 1), (1, 1)))                    # (3B, 27, FH, FW)
    p = p.transpose(0, 2, 3, 1).reshape(3 * B * HW, K_RAW)
    return jnp.pad(p, ((0, 0), (0, K_PAD - K_RAW)))  # (3B*HW, 32)


@jax.jit
def _forward_impl(params, x1, x2, x3, mission):
    # Only input-dependent preprocessing lives here (im2col + embedding).
    x_all = jnp.concatenate([x1, x2, x3], axis=0)               # (3B, 3, 16, 16)
    patches = _extract_patches(x_all).astype(jnp.bfloat16)      # (3B*HW, 32)

    emb = jnp.take(params["embed"], mission, axis=0)            # (B, T, E)
    emb = jnp.pad(emb, ((0, BP - B), (0, 0), (0, 0)))           # (BP, T, E)
    emb = (emb.transpose(1, 0, 2)
              .reshape(T * BP, E_WORD)
              .astype(jnp.bfloat16))                            # (T*BP, E)

    out = pl.pallas_call(
        _fused_forward_kernel,
        out_shape=jax.ShapeDtypeStruct((2, 2 * B, EMB_DIM), jnp.float32),
        grid=(2,),
        in_specs=[_VMEM] * 14,
        out_specs=pl.BlockSpec((1, 2 * B, EMB_DIM), lambda i: (i, 0, 0)),
        compiler_params=pltpu.CompilerParams(
            dimension_semantics=("parallel",)),
        cost_estimate=pl.CostEstimate(
            flops=21_000_000, transcendentals=25_000, bytes_accessed=500_000),
    )(patches, params["conv_w"], params["conv_b"],
      emb, params["gru_wih"], params["gru_whh"],
      params["gru_bih"], params["gru_bhh"],
      params["wc"], params["bc"], params["wgb"], params["bgb"],
      params["proj_w"], params["proj_b"])

    p1 = out[0, 0:B]
    z2 = out[1, 0:B]
    z3 = out[1, B:2 * B]
    return p1, z2, z3


def filmed_forward(params, x1, x2, x3, mission, task=None):
    # TODO(synk): task-specific controller routing not modelled (task=None path).
    return _forward_impl(params, x1, x2, x3, mission)


# ------------------------------ parameters --------------------------------
def init_params(key):
    ks = jax.random.split(key, 16)
    s = 0.05
    p = {
        "conv_w": s * jax.random.normal(ks[0], (K_RAW, C), jnp.float32),
        "conv_b": s * jax.random.normal(ks[1], (1, C), jnp.float32),
        "embed": s * jax.random.normal(ks[2], (VOCAB, E_WORD), jnp.float32),
        "gru_wih": s * jax.random.normal(ks[3], (E_WORD, 3 * EMB_DIM), jnp.float32),
        "gru_whh": s * jax.random.normal(ks[4], (EMB_DIM, 3 * EMB_DIM), jnp.float32),
        "gru_bih": jnp.zeros((1, 3 * EMB_DIM), jnp.float32),
        "gru_bhh": jnp.zeros((1, 3 * EMB_DIM), jnp.float32),
        "proj_w": s * jax.random.normal(ks[5], (C, EMB_DIM), jnp.float32),
        "proj_b": s * jax.random.normal(ks[6], (1, EMB_DIM), jnp.float32),
        "film": [],
    }
    for i in range(N_FILM):
        kk = jax.random.split(ks[7 + i], 4)
        p["film"].append(dict(
            wc=s * jax.random.normal(kk[0], (C, C), jnp.float32),
            bc=s * jax.random.normal(kk[1], (1, C), jnp.float32),
            wg=s * jax.random.normal(kk[2], (EMB_DIM, C), jnp.float32),
            bg=jnp.ones((1, C), jnp.float32),       # gamma bias ~ 1 (identity-ish)
            wb=s * jax.random.normal(kk[3], (EMB_DIM, C), jnp.float32),
            bb=jnp.zeros((1, C), jnp.float32),
        ))
    return p


def prepare_params(raw):
    """One-time weight packing: K-pad, FiLM stack/concat, bf16 matmul weights."""
    conv_w = jnp.pad(raw["conv_w"], ((0, K_PAD - K_RAW), (0, 0)))      # (32, C)
    wc = jnp.stack([fp["wc"] for fp in raw["film"]])                   # (NF, C, C)
    bc = jnp.stack([fp["bc"] for fp in raw["film"]])                   # (NF, 1, C)
    wgb = jnp.concatenate(
        [jnp.concatenate([fp["wg"], fp["wb"]], axis=1) for fp in raw["film"]],
        axis=1)                                                        # (EMB, NF*2C)
    bgb = jnp.concatenate(
        [jnp.concatenate([fp["bg"], fp["bb"]], axis=1) for fp in raw["film"]],
        axis=1)                                                        # (1, NF*2C)
    bf = jnp.bfloat16
    return {
        "conv_w": conv_w.astype(bf),
        "conv_b": raw["conv_b"],
        "embed": raw["embed"],
        "gru_wih": raw["gru_wih"].astype(bf),
        "gru_whh": raw["gru_whh"].astype(bf),
        "gru_bih": raw["gru_bih"],
        "gru_bhh": raw["gru_bhh"],
        "wc": wc.astype(bf),
        "bc": bc,
        "wgb": wgb.astype(bf),
        "bgb": bgb,
        "proj_w": raw["proj_w"].astype(bf),
        "proj_b": raw["proj_b"],
    }


# --------------------------------- main ------------------------------------
if __name__ == "__main__":
    key = jax.random.PRNGKey(0)
    kx1, kx2, kx3, km, kp = jax.random.split(key, 5)

    x1 = jax.random.normal(kx1, (B, IMG_C, IMG_H, IMG_W), jnp.float32)  # NCHW
    x2 = jax.random.normal(kx2, (B, IMG_C, IMG_H, IMG_W), jnp.float32)
    x3 = jax.random.normal(kx3, (B, IMG_C, IMG_H, IMG_W), jnp.float32)
    mission = jax.random.randint(km, (B, T), 0, VOCAB, jnp.int32)

    params = prepare_params(init_params(kp))

    p1, z2, z3 = filmed_forward(params, x1, x2, x3, mission, task=None)
    jax.block_until_ready((p1, z2, z3))

    assert p1.shape == (B, EMB_DIM) and z2.shape == (B, EMB_DIM) and z3.shape == (B, EMB_DIM)
    assert p1.dtype == jnp.float32
    assert bool(jnp.all(jnp.isfinite(p1))) and bool(jnp.all(jnp.isfinite(z2)))
    assert bool(jnp.all(jnp.isfinite(z3)))
    print("KERNEL_OK")
</pallas_src>

<mosaic_0001>
module attributes {stable_mosaic.version = 11 : i64} {
  func.func @_fused_forward_kernel(%arg0: i32, %arg1: memref<384x32xbf16, #tpu.memory_space<vmem>>, %arg2: memref<32x128xbf16, #tpu.memory_space<vmem>>, %arg3: memref<1x128xf32, #tpu.memory_space<vmem>>, %arg4: memref<64x32xbf16, #tpu.memory_space<vmem>>, %arg5: memref<32x384xbf16, #tpu.memory_space<vmem>>, %arg6: memref<128x384xbf16, #tpu.memory_space<vmem>>, %arg7: memref<1x384xf32, #tpu.memory_space<vmem>>, %arg8: memref<1x384xf32, #tpu.memory_space<vmem>>, %arg9: memref<2x128x128xbf16, #tpu.memory_space<vmem>>, %arg10: memref<2x1x128xf32, #tpu.memory_space<vmem>>, %arg11: memref<128x512xbf16, #tpu.memory_space<vmem>>, %arg12: memref<1x512xf32, #tpu.memory_space<vmem>>, %arg13: memref<128x128xbf16, #tpu.memory_space<vmem>>, %arg14: memref<1x128xf32, #tpu.memory_space<vmem>>, %arg15: memref<1x4x128xf32, #tpu.memory_space<vmem>>) attributes {dimension_semantics = [#tpu.dimension_semantics<parallel>], iteration_bounds = array<i64: 2>, scalar_prefetch = 0 : i64, scratch_operands = 0 : i64, tpu.core_type = #tpu.core_type<tc>, window_params = [{pipeline_mode = #tpu.pipeline_mode<synchronous>, transform_indices = @transform_0, window_bounds = array<i64: 384, 32>}, {pipeline_mode = #tpu.pipeline_mode<synchronous>, transform_indices = @transform_1, window_bounds = array<i64: 32, 128>}, {pipeline_mode = #tpu.pipeline_mode<synchronous>, transform_indices = @transform_2, window_bounds = array<i64: 1, 128>}, {pipeline_mode = #tpu.pipeline_mode<synchronous>, transform_indices = @transform_3, window_bounds = array<i64: 64, 32>}, {pipeline_mode = #tpu.pipeline_mode<synchronous>, transform_indices = @transform_4, window_bounds = array<i64: 32, 384>}, {pipeline_mode = #tpu.pipeline_mode<synchronous>, transform_indices = @transform_5, window_bounds = array<i64: 128, 384>}, {pipeline_mode = #tpu.pipeline_mode<synchronous>, transform_indices = @transform_6, window_bounds = array<i64: 1, 384>}, {pipeline_mode = #tpu.pipeline_mode<synchronous>, transform_indices = @transform_7, window_bounds = array<i64: 1, 384>}, {pipeline_mode = #tpu.pipeline_mode<synchronous>, transform_indices = @transform_8, window_bounds = array<i64: 2, 128, 128>}, {pipeline_mode = #tpu.pipeline_mode<synchronous>, transform_indices = @transform_9, window_bounds = array<i64: 2, 1, 128>}, {pipeline_mode = #tpu.pipeline_mode<synchronous>, transform_indices = @transform_10, window_bounds = array<i64: 128, 512>}, {pipeline_mode = #tpu.pipeline_mode<synchronous>, transform_indices = @transform_11, window_bounds = array<i64: 1, 512>}, {pipeline_mode = #tpu.pipeline_mode<synchronous>, transform_indices = @transform_12, window_bounds = array<i64: 128, 128>}, {pipeline_mode = #tpu.pipeline_mode<synchronous>, transform_indices = @transform_13, window_bounds = array<i64: 1, 128>}, {transform_indices = @transform_14, window_bounds = array<i64: 1, 4, 128>}]} {
    %c0_i32 = arith.constant 0 : i32
    %0 = arith.cmpi eq, %arg0, %c0_i32 : i32
    %1 = arith.extui %0 : i1 to i32
    %c0_i32_0 = arith.constant 0 : i32
    %2 = arith.cmpi ne, %1, %c0_i32_0 : i32
    scf.if %2 {
      %c0 = arith.constant 0 : index
      %c0_2 = arith.constant 0 : index
      %6 = vector.load %arg1[%c0, %c0_2] : memref<384x32xbf16, #tpu.memory_space<vmem>>, vector<128x32xbf16>
      %c0_3 = arith.constant 0 : index
      %c0_4 = arith.constant 0 : index
      %7 = vector.load %arg2[%c0_3, %c0_4] : memref<32x128xbf16, #tpu.memory_space<vmem>>, vector<32x128xbf16>
      %cst = arith.constant dense<0.000000e+00> : vector<128x128xf32>
      %8 = tpu.matmul %6, %7, %cst {dimension_numbers = #tpu.dot_dimension_numbers<[1], [0], [0], [1], [0, 0, 1, 1], [], []>} : vector<128x32xbf16>, vector<32x128xbf16>, vector<128x128xf32> -> vector<128x128xf32>
      %c0_5 = arith.constant 0 : index
      %c0_6 = arith.constant 0 : index
      %9 = vector.load %arg3[%c0_5, %c0_6] : memref<1x128xf32, #tpu.memory_space<vmem>>, vector<1x128xf32>
      %10 = vector.broadcast %9 : vector<1x128xf32> to vector<128x128xf32>
      %11 = arith.addf %8, %10 : vector<128x128xf32>
      %cst_7 = arith.constant 0.000000e+00 : f32
      %12 = vector.broadcast %cst_7 : f32 to vector<128x128xf32>
      %13 = arith.maximumf %11, %12 : vector<128x128xf32>
      %c0_8 = arith.constant 0 : index
      %c0_9 = arith.constant 0 : index
      %14 = vector.load %arg4[%c0_8, %c0_9] : memref<64x32xbf16, #tpu.memory_space<vmem>>, vector<64x32xbf16>
      %c0_10 = arith.constant 0 : index
      %c0_11 = arith.constant 0 : index
      %15 = vector.load %arg5[%c0_10, %c0_11] : memref<32x384xbf16, #tpu.memory_space<vmem>>, vector<32x384xbf16>
      %cst_12 = arith.constant dense<0.000000e+00> : vector<64x384xf32>
      %16 = tpu.matmul %14, %15, %cst_12 {dimension_numbers = #tpu.dot_dimension_numbers<[1], [0], [0], [1], [0, 0, 1, 1], [], []>} : vector<64x32xbf16>, vector<32x384xbf16>, vector<64x384xf32> -> vector<64x384xf32>
      %c0_13 = arith.constant 0 : index
      %c0_14 = arith.constant 0 : index
      %17 = vector.load %arg7[%c0_13, %c0_14] : memref<1x384xf32, #tpu.memory_space<vmem>>, vector<1x384xf32>
      %18 = vector.broadcast %17 : vector<1x384xf32> to vector<64x384xf32>
      %19 = arith.addf %16, %18 : vector<64x384xf32>
      %c0_15 = arith.constant 0 : index
      %c0_16 = arith.constant 0 : index
      %20 = vector.load %arg8[%c0_15, %c0_16] : memref<1x384xf32, #tpu.memory_space<vmem>>, vector<1x384xf32>
      %c0_17 = arith.constant 0 : index
      %c0_18 = arith.constant 0 : index
      %21 = vector.load %arg6[%c0_17, %c0_18] : memref<128x384xbf16, #tpu.memory_space<vmem>>, vector<128x384xbf16>
      %cst_19 = arith.constant 0.000000e+00 : f32
      %22 = vector.broadcast %cst_19 : f32 to vector<8x128xf32>
      %23 = vector.extract_strided_slice %19 {offsets = [0, 0], sizes = [8, 384], strides = [1, 1]} : vector<64x384xf32> to vector<8x384xf32>
      %24 = arith.truncf %22 : vector<8x128xf32> to vector<8x128xbf16>
      %cst_20 = arith.constant dense<0.000000e+00> : vector<8x384xf32>
      %25 = tpu.matmul %24, %21, %cst_20 {dimension_numbers = #tpu.dot_dimension_numbers<[1], [0], [0], [1], [0, 0, 1, 1], [], []>} : vector<8x128xbf16>, vector<128x384xbf16>, vector<8x384xf32> -> vector<8x384xf32>
      %26 = vector.broadcast %20 : vector<1x384xf32> to vector<8x384xf32>
      %27 = arith.addf %25, %26 : vector<8x384xf32>
      %28 = vector.extract_strided_slice %23 {offsets = [0, 0], sizes = [8, 128], strides = [1, 1]} : vector<8x384xf32> to vector<8x128xf32>
      %29 = vector.extract_strided_slice %27 {offsets = [0, 0], sizes = [8, 128], strides = [1, 1]} : vector<8x384xf32> to vector<8x128xf32>
      %30 = arith.addf %28, %29 : vector<8x128xf32>
      %31 = arith.negf %30 : vector<8x128xf32>
      %32 = math.exp %31 : vector<8x128xf32>
      %cst_21 = arith.constant 1.000000e+00 : f32
      %33 = vector.broadcast %cst_21 : f32 to vector<8x128xf32>
      %34 = arith.addf %33, %32 : vector<8x128xf32>
      %35 = arith.divf %33, %34 : vector<8x128xf32>
      %36 = vector.extract_strided_slice %23 {offsets = [0, 128], sizes = [8, 128], strides = [1, 1]} : vector<8x384xf32> to vector<8x128xf32>
      %37 = vector.extract_strided_slice %27 {offsets = [0, 128], sizes = [8, 128], strides = [1, 1]} : vector<8x384xf32> to vector<8x128xf32>
      %38 = arith.addf %36, %37 : vector<8x128xf32>
      %39 = arith.negf %38 : vector<8x128xf32>
      %40 = math.exp %39 : vector<8x128xf32>
      %cst_22 = arith.constant 1.000000e+00 : f32
      %41 = vector.broadcast %cst_22 : f32 to vector<8x128xf32>
      %42 = arith.addf %41, %40 : vector<8x128xf32>
      %43 = arith.divf %41, %42 : vector<8x128xf32>
      %44 = vector.extract_strided_slice %23 {offsets = [0, 256], sizes = [8, 128], strides = [1, 1]} : vector<8x384xf32> to vector<8x128xf32>
      %45 = vector.extract_strided_slice %27 {offsets = [0, 256], sizes = [8, 128], strides = [1, 1]} : vector<8x384xf32> to vector<8x128xf32>
      %46 = arith.mulf %35, %45 : vector<8x128xf32>
      %47 = arith.addf %44, %46 : vector<8x128xf32>
      %48 = math.tanh %47 : vector<8x128xf32>
      %cst_23 = arith.constant 1.000000e+00 : f32
      %49 = vector.broadcast %cst_23 : f32 to vector<8x128xf32>
      %50 = arith.subf %49, %43 : vector<8x128xf32>
      %51 = arith.mulf %50, %48 : vector<8x128xf32>
      %52 = arith.mulf %43, %22 : vector<8x128xf32>
      %53 = arith.addf %51, %52 : vector<8x128xf32>
      %54 = vector.extract_strided_slice %19 {offsets = [8, 0], sizes = [8, 384], strides = [1, 1]} : vector<64x384xf32> to vector<8x384xf32>
      %55 = arith.truncf %53 : vector<8x128xf32> to vector<8x128xbf16>
      %cst_24 = arith.constant dense<0.000000e+00> : vector<8x384xf32>
      %56 = tpu.matmul %55, %21, %cst_24 {dimension_numbers = #tpu.dot_dimension_numbers<[1], [0], [0], [1], [0, 0, 1, 1], [], []>} : vector<8x128xbf16>, vector<128x384xbf16>, vector<8x384xf32> -> vector<8x384xf32>
      %57 = vector.broadcast %20 : vector<1x384xf32> to vector<8x384xf32>
      %58 = arith.addf %56, %57 : vector<8x384xf32>
      %59 = vector.extract_strided_slice %54 {offsets = [0, 0], sizes = [8, 128], strides = [1, 1]} : vector<8x384xf32> to vector<8x128xf32>
      %60 = vector.extract_strided_slice %58 {offsets = [0, 0], sizes = [8, 128], strides = [1, 1]} : vector<8x384xf32> to vector<8x128xf32>
      %61 = arith.addf %59, %60 : vector<8x128xf32>
      %62 = arith.negf %61 : vector<8x128xf32>
      %63 = math.exp %62 : vector<8x128xf32>
      %cst_25 = arith.constant 1.000000e+00 : f32
      %64 = vector.broadcast %cst_25 : f32 to vector<8x128xf32>
      %65 = arith.addf %64, %63 : vector<8x128xf32>
      %66 = arith.divf %64, %65 : vector<8x128xf32>
      %67 = vector.extract_strided_slice %54 {offsets = [0, 128], sizes = [8, 128], strides = [1, 1]} : vector<8x384xf32> to vector<8x128xf32>
      %68 = vector.extract_strided_slice %58 {offsets = [0, 128], sizes = [8, 128], strides = [1, 1]} : vector<8x384xf32> to vector<8x128xf32>
      %69 = arith.addf %67, %68 : vector<8x128xf32>
      %70 = arith.negf %69 : vector<8x128xf32>
      %71 = math.exp %70 : vector<8x128xf32>
      %cst_26 = arith.constant 1.000000e+00 : f32
      %72 = vector.broadcast %cst_26 : f32 to vector<8x128xf32>
      %73 = arith.addf %72, %71 : vector<8x128xf32>
      %74 = arith.divf %72, %73 : vector<8x128xf32>
      %75 = vector.extract_strided_slice %54 {offsets = [0, 256], sizes = [8, 128], strides = [1, 1]} : vector<8x384xf32> to vector<8x128xf32>
      %76 = vector.extract_strided_slice %58 {offsets = [0, 256], sizes = [8, 128], strides = [1, 1]} : vector<8x384xf32> to vector<8x128xf32>
      %77 = arith.mulf %66, %76 : vector<8x128xf32>
      %78 = arith.addf %75, %77 : vector<8x128xf32>
      %79 = math.tanh %78 : vector<8x128xf32>
      %cst_27 = arith.constant 1.000000e+00 : f32
      %80 = vector.broadcast %cst_27 : f32 to vector<8x128xf32>
      %81 = arith.subf %80, %74 : vector<8x128xf32>
      %82 = arith.mulf %81, %79 : vector<8x128xf32>
      %83 = arith.mulf %74, %53 : vector<8x128xf32>
      %84 = arith.addf %82, %83 : vector<8x128xf32>
      %85 = vector.extract_strided_slice %19 {offsets = [16, 0], sizes = [8, 384], strides = [1, 1]} : vector<64x384xf32> to vector<8x384xf32>
      %86 = arith.truncf %84 : vector<8x128xf32> to vector<8x128xbf16>
      %cst_28 = arith.constant dense<0.000000e+00> : vector<8x384xf32>
      %87 = tpu.matmul %86, %21, %cst_28 {dimension_numbers = #tpu.dot_dimension_numbers<[1], [0], [0], [1], [0, 0, 1, 1], [], []>} : vector<8x128xbf16>, vector<128x384xbf16>, vector<8x384xf32> -> vector<8x384xf32>
      %88 = vector.broadcast %20 : vector<1x384xf32> to vector<8x384xf32>
      %89 = arith.addf %87, %88 : vector<8x384xf32>
      %90 = vector.extract_strided_slice %85 {offsets = [0, 0], sizes = [8, 128], strides = [1, 1]} : vector<8x384xf32> to vector<8x128xf32>
      %91 = vector.extract_strided_slice %89 {offsets = [0, 0], sizes = [8, 128], strides = [1, 1]} : vector<8x384xf32> to vector<8x128xf32>
      %92 = arith.addf %90, %91 : vector<8x128xf32>
      %93 = arith.negf %92 : vector<8x128xf32>
      %94 = math.exp %93 : vector<8x128xf32>
      %cst_29 = arith.constant 1.000000e+00 : f32
      %95 = vector.broadcast %cst_29 : f32 to vector<8x128xf32>
      %96 = arith.addf %95, %94 : vector<8x128xf32>
      %97 = arith.divf %95, %96 : vector<8x128xf32>
      %98 = vector.extract_strided_slice %85 {offsets = [0, 128], sizes = [8, 128], strides = [1, 1]} : vector<8x384xf32> to vector<8x128xf32>
      %99 = vector.extract_strided_slice %89 {offsets = [0, 128], sizes = [8, 128], strides = [1, 1]} : vector<8x384xf32> to vector<8x128xf32>
      %100 = arith.addf %98, %99 : vector<8x128xf32>
      %101 = arith.negf %100 : vector<8x128xf32>
      %102 = math.exp %101 : vector<8x128xf32>
      %cst_30 = arith.constant 1.000000e+00 : f32
      %103 = vector.broadcast %cst_30 : f32 to vector<8x128xf32>
      %104 = arith.addf %103, %102 : vector<8x128xf32>
      %105 = arith.divf %103, %104 : vector<8x128xf32>
      %106 = vector.extract_strided_slice %85 {offsets = [0, 256], sizes = [8, 128], strides = [1, 1]} : vector<8x384xf32> to vector<8x128xf32>
      %107 = vector.extract_strided_slice %89 {offsets = [0, 256], sizes = [8, 128], strides = [1, 1]} : vector<8x384xf32> to vector<8x128xf32>
      %108 = arith.mulf %97, %107 : vector<8x128xf32>
      %109 = arith.addf %106, %108 : vector<8x128xf32>
      %110 = math.tanh %109 : vector<8x128xf32>
      %cst_31 = arith.constant 1.000000e+00 : f32
      %111 = vector.broadcast %cst_31 : f32 to vector<8x128xf32>
      %112 = arith.subf %111, %105 : vector<8x128xf32>
      %113 = arith.mulf %112, %110 : vector<8x128xf32>
      %114 = arith.mulf %105, %84 : vector<8x128xf32>
      %115 = arith.addf %113, %114 : vector<8x128xf32>
      %116 = vector.extract_strided_slice %19 {offsets = [24, 0], sizes = [8, 384], strides = [1, 1]} : vector<64x384xf32> to vector<8x384xf32>
      %117 = arith.truncf %115 : vector<8x128xf32> to vector<8x128xbf16>
      %cst_32 = arith.constant dense<0.000000e+00> : vector<8x384xf32>
      %118 = tpu.matmul %117, %21, %cst_32 {dimension_numbers = #tpu.dot_dimension_numbers<[1], [0], [0], [1], [0, 0, 1, 1], [], []>} : vector<8x128xbf16>, vector<128x384xbf16>, vector<8x384xf32> -> vector<8x384xf32>
      %119 = vector.broadcast %20 : vector<1x384xf32> to vector<8x384xf32>
      %120 = arith.addf %118, %119 : vector<8x384xf32>
      %121 = vector.extract_strided_slice %116 {offsets = [0, 0], sizes = [8, 128], strides = [1, 1]} : vector<8x384xf32> to vector<8x128xf32>
      %122 = vector.extract_strided_slice %120 {offsets = [0, 0], sizes = [8, 128], strides = [1, 1]} : vector<8x384xf32> to vector<8x128xf32>
      %123 = arith.addf %121, %122 : vector<8x128xf32>
      %124 = arith.negf %123 : vector<8x128xf32>
      %125 = math.exp %124 : vector<8x128xf32>
      %cst_33 = arith.constant 1.000000e+00 : f32
      %126 = vector.broadcast %cst_33 : f32 to vector<8x128xf32>
      %127 = arith.addf %126, %125 : vector<8x128xf32>
      %128 = arith.divf %126, %127 : vector<8x128xf32>
      %129 = vector.extract_strided_slice %116 {offsets = [0, 128], sizes = [8, 128], strides = [1, 1]} : vector<8x384xf32> to vector<8x128xf32>
      %130 = vector.extract_strided_slice %120 {offsets = [0, 128], sizes = [8, 128], strides = [1, 1]} : vector<8x384xf32> to vector<8x128xf32>
      %131 = arith.addf %129, %130 : vector<8x128xf32>
      %132 = arith.negf %131 : vector<8x128xf32>
      %133 = math.exp %132 : vector<8x128xf32>
      %cst_34 = arith.constant 1.000000e+00 : f32
      %134 = vector.broadcast %cst_34 : f32 to vector<8x128xf32>
      %135 = arith.addf %134, %133 : vector<8x128xf32>
      %136 = arith.divf %134, %135 : vector<8x128xf32>
      %137 = vector.extract_strided_slice %116 {offsets = [0, 256], sizes = [8, 128], strides = [1, 1]} : vector<8x384xf32> to vector<8x128xf32>
      %138 = vector.extract_strided_slice %120 {offsets = [0, 256], sizes = [8, 128], strides = [1, 1]} : vector<8x384xf32> to vector<8x128xf32>
      %139 = arith.mulf %128, %138 : vector<8x128xf32>
      %140 = arith.addf %137, %139 : vector<8x128xf32>
      %141 = math.tanh %140 : vector<8x128xf32>
      %cst_35 = arith.constant 1.000000e+00 : f32
      %142 = vector.broadcast %cst_35 : f32 to vector<8x128xf32>
      %143 = arith.subf %142, %136 : vector<8x128xf32>
      %144 = arith.mulf %143, %141 : vector<8x128xf32>
      %145 = arith.mulf %136, %115 : vector<8x128xf32>
      %146 = arith.addf %144, %145 : vector<8x128xf32>
      %147 = vector.extract_strided_slice %19 {offsets = [32, 0], sizes = [8, 384], strides = [1, 1]} : vector<64x384xf32> to vector<8x384xf32>
      %148 = arith.truncf %146 : vector<8x128xf32> to vector<8x128xbf16>
      %cst_36 = arith.constant dense<0.000000e+00> : vector<8x384xf32>
      %149 = tpu.matmul %148, %21, %cst_36 {dimension_numbers = #tpu.dot_dimension_numbers<[1], [0], [0], [1], [0, 0, 1, 1], [], []>} : vector<8x128xbf16>, vector<128x384xbf16>, vector<8x384xf32> -> vector<8x384xf32>
      %150 = vector.broadcast %20 : vector<1x384xf32> to vector<8x384xf32>
      %151 = arith.addf %149, %150 : vector<8x384xf32>
      %152 = vector.extract_strided_slice %147 {offsets = [0, 0], sizes = [8, 128], strides = [1, 1]} : vector<8x384xf32> to vector<8x128xf32>
      %153 = vector.extract_strided_slice %151 {offsets = [0, 0], sizes = [8, 128], strides = [1, 1]} : vector<8x384xf32> to vector<8x128xf32>
      %154 = arith.addf %152, %153 : vector<8x128xf32>
      %155 = arith.negf %154 : vector<8x128xf32>
      %156 = math.exp %155 : vector<8x128xf32>
      %cst_37 = arith.constant 1.000000e+00 : f32
      %157 = vector.broadcast %cst_37 : f32 to vector<8x128xf32>
      %158 = arith.addf %157, %156 : vector<8x128xf32>
      %159 = arith.divf %157, %158 : vector<8x128xf32>
      %160 = vector.extract_strided_slice %147 {offsets = [0, 128], sizes = [8, 128], strides = [1, 1]} : vector<8x384xf32> to vector<8x128xf32>
      %161 = vector.extract_strided_slice %151 {offsets = [0, 128], sizes = [8, 128], strides = [1, 1]} : vector<8x384xf32> to vector<8x128xf32>
      %162 = arith.addf %160, %161 : vector<8x128xf32>
      %163 = arith.negf %162 : vector<8x128xf32>
      %164 = math.exp %163 : vector<8x128xf32>
      %cst_38 = arith.constant 1.000000e+00 : f32
      %165 = vector.broadcast %cst_38 : f32 to vector<8x128xf32>
      %166 = arith.addf %165, %164 : vector<8x128xf32>
      %167 = arith.divf %165, %166 : vector<8x128xf32>
      %168 = vector.extract_strided_slice %147 {offsets = [0, 256], sizes = [8, 128], strides = [1, 1]} : vector<8x384xf32> to vector<8x128xf32>
      %169 = vector.extract_strided_slice %151 {offsets = [0, 256], sizes = [8, 128], strides = [1, 1]} : vector<8x384xf32> to vector<8x128xf32>
      %170 = arith.mulf %159, %169 : vector<8x128xf32>
      %171 = arith.addf %168, %170 : vector<8x128xf32>
      %172 = math.tanh %171 : vector<8x128xf32>
      %cst_39 = arith.constant 1.000000e+00 : f32
      %173 = vector.broadcast %cst_39 : f32 to vector<8x128xf32>
      %174 = arith.subf %173, %167 : vector<8x128xf32>
      %175 = arith.mulf %174, %172 : vector<8x128xf32>
      %176 = arith.mulf %167, %146 : vector<8x128xf32>
      %177 = arith.addf %175, %176 : vector<8x128xf32>
      %178 = vector.extract_strided_slice %19 {offsets = [40, 0], sizes = [8, 384], strides = [1, 1]} : vector<64x384xf32> to vector<8x384xf32>
      %179 = arith.truncf %177 : vector<8x128xf32> to vector<8x128xbf16>
      %cst_40 = arith.constant dense<0.000000e+00> : vector<8x384xf32>
      %180 = tpu.matmul %179, %21, %cst_40 {dimension_numbers = #tpu.dot_dimension_numbers<[1], [0], [0], [1], [0, 0, 1, 1], [], []>} : vector<8x128xbf16>, vector<128x384xbf16>, vector<8x384xf32> -> vector<8x384xf32>
      %181 = vector.broadcast %20 : vector<1x384xf32> to vector<8x384xf32>
      %182 = arith.addf %180, %181 : vector<8x384xf32>
      %183 = vector.extract_strided_slice %178 {offsets = [0, 0], sizes = [8, 128], strides = [1, 1]} : vector<8x384xf32> to vector<8x128xf32>
      %184 = vector.extract_strided_slice %182 {offsets = [0, 0], sizes = [8, 128], strides = [1, 1]} : vector<8x384xf32> to vector<8x128xf32>
      %185 = arith.addf %183, %184 : vector<8x128xf32>
      %186 = arith.negf %185 : vector<8x128xf32>
      %187 = math.exp %186 : vector<8x128xf32>
      %cst_41 = arith.constant 1.000000e+00 : f32
      %188 = vector.broadcast %cst_41 : f32 to vector<8x128xf32>
      %189 = arith.addf %188, %187 : vector<8x128xf32>
      %190 = arith.divf %188, %189 : vector<8x128xf32>
      %191 = vector.extract_strided_slice %178 {offsets = [0, 128], sizes = [8, 128], strides = [1, 1]} : vector<8x384xf32> to vector<8x128xf32>
      %192 = vector.extract_strided_slice %182 {offsets = [0, 128], sizes = [8, 128], strides = [1, 1]} : vector<8x384xf32> to vector<8x128xf32>
      %193 = arith.addf %191, %192 : vector<8x128xf32>
      %194 = arith.negf %193 : vector<8x128xf32>
      %195 = math.exp %194 : vector<8x128xf32>
      %cst_42 = arith.constant 1.000000e+00 : f32
      %196 = vector.broadcast %cst_42 : f32 to vector<8x128xf32>
      %197 = arith.addf %196, %195 : vector<8x128xf32>
      %198 = arith.divf %196, %197 : vector<8x128xf32>
      %199 = vector.extract_strided_slice %178 {offsets = [0, 256], sizes = [8, 128], strides = [1, 1]} : vector<8x384xf32> to vector<8x128xf32>
      %200 = vector.extract_strided_slice %182 {offsets = [0, 256], sizes = [8, 128], strides = [1, 1]} : vector<8x384xf32> to vector<8x128xf32>
      %201 = arith.mulf %190, %200 : vector<8x128xf32>
      %202 = arith.addf %199, %201 : vector<8x128xf32>
      %203 = math.tanh %202 : vector<8x128xf32>
      %cst_43 = arith.constant 1.000000e+00 : f32
      %204 = vector.broadcast %cst_43 : f32 to vector<8x128xf32>
      %205 = arith.subf %204, %198 : vector<8x128xf32>
      %206 = arith.mulf %205, %203 : vector<8x128xf32>
      %207 = arith.mulf %198, %177 : vector<8x128xf32>
      %208 = arith.addf %206, %207 : vector<8x128xf32>
      %209 = vector.extract_strided_slice %19 {offsets = [48, 0], sizes = [8, 384], strides = [1, 1]} : vector<64x384xf32> to vector<8x384xf32>
      %210 = arith.truncf %208 : vector<8x128xf32> to vector<8x128xbf16>
      %cst_44 = arith.constant dense<0.000000e+00> : vector<8x384xf32>
      %211 = tpu.matmul %210, %21, %cst_44 {dimension_numbers = #tpu.dot_dimension_numbers<[1], [0], [0], [1], [0, 0, 1, 1], [], []>} : vector<8x128xbf16>, vector<128x384xbf16>, vector<8x384xf32> -> vector<8x384xf32>
      %212 = vector.broadcast %20 : vector<1x384xf32> to vector<8x384xf32>
      %213 = arith.addf %211, %212 : vector<8x384xf32>
      %214 = vector.extract_strided_slice %209 {offsets = [0, 0], sizes = [8, 128], strides = [1, 1]} : vector<8x384xf32> to vector<8x128xf32>
      %215 = vector.extract_strided_slice %213 {offsets = [0, 0], sizes = [8, 128], strides = [1, 1]} : vector<8x384xf32> to vector<8x128xf32>
      %216 = arith.addf %214, %215 : vector<8x128xf32>
      %217 = arith.negf %216 : vector<8x128xf32>
      %218 = math.exp %217 : vector<8x128xf32>
      %cst_45 = arith.constant 1.000000e+00 : f32
      %219 = vector.broadcast %cst_45 : f32 to vector<8x128xf32>
      %220 = arith.addf %219, %218 : vector<8x128xf32>
      %221 = arith.divf %219, %220 : vector<8x128xf32>
      %222 = vector.extract_strided_slice %209 {offsets = [0, 128], sizes = [8, 128], strides = [1, 1]} : vector<8x384xf32> to vector<8x128xf32>
      %223 = vector.extract_strided_slice %213 {offsets = [0, 128], sizes = [8, 128], strides = [1, 1]} : vector<8x384xf32> to vector<8x128xf32>
      %224 = arith.addf %222, %223 : vector<8x128xf32>
      %225 = arith.negf %224 : vector<8x128xf32>
      %226 = math.exp %225 : vector<8x128xf32>
      %cst_46 = arith.constant 1.000000e+00 : f32
      %227 = vector.broadcast %cst_46 : f32 to vector<8x128xf32>
      %228 = arith.addf %227, %226 : vector<8x128xf32>
      %229 = arith.divf %227, %228 : vector<8x128xf32>
      %230 = vector.extract_strided_slice %209 {offsets = [0, 256], sizes = [8, 128], strides = [1, 1]} : vector<8x384xf32> to vector<8x128xf32>
      %231 = vector.extract_strided_slice %213 {offsets = [0, 256], sizes = [8, 128], strides = [1, 1]} : vector<8x384xf32> to vector<8x128xf32>
      %232 = arith.mulf %221, %231 : vector<8x128xf32>
      %233 = arith.addf %230, %232 : vector<8x128xf32>
      %234 = math.tanh %233 : vector<8x128xf32>
      %cst_47 = arith.constant 1.000000e+00 : f32
      %235 = vector.broadcast %cst_47 : f32 to vector<8x128xf32>
      %236 = arith.subf %235, %229 : vector<8x128xf32>
      %237 = arith.mulf %236, %234 : vector<8x128xf32>
      %238 = arith.mulf %229, %208 : vector<8x128xf32>
      %239 = arith.addf %237, %238 : vector<8x128xf32>
      %240 = vector.extract_strided_slice %19 {offsets = [56, 0], sizes = [8, 384], strides = [1, 1]} : vector<64x384xf32> to vector<8x384xf32>
      %241 = arith.truncf %239 : vector<8x128xf32> to vector<8x128xbf16>
      %cst_48 = arith.constant dense<0.000000e+00> : vector<8x384xf32>
      %242 = tpu.matmul %241, %21, %cst_48 {dimension_numbers = #tpu.dot_dimension_numbers<[1], [0], [0], [1], [0, 0, 1, 1], [], []>} : vector<8x128xbf16>, vector<128x384xbf16>, vector<8x384xf32> -> vector<8x384xf32>
      %243 = vector.broadcast %20 : vector<1x384xf32> to vector<8x384xf32>
      %244 = arith.addf %242, %243 : vector<8x384xf32>
      %245 = vector.extract_strided_slice %240 {offsets = [0, 0], sizes = [8, 128], strides = [1, 1]} : vector<8x384xf32> to vector<8x128xf32>
      %246 = vector.extract_strided_slice %244 {offsets = [0, 0], sizes = [8, 128], strides = [1, 1]} : vector<8x384xf32> to vector<8x128xf32>
      %247 = arith.addf %245, %246 : vector<8x128xf32>
      %248 = arith.negf %247 : vector<8x128xf32>
      %249 = math.exp %248 : vector<8x128xf32>
      %cst_49 = arith.constant 1.000000e+00 : f32
      %250 = vector.broadcast %cst_49 : f32 to vector<8x128xf32>
      %251 = arith.addf %250, %249 : vector<8x128xf32>
      %252 = arith.divf %250, %251 : vector<8x128xf32>
      %253 = vector.extract_strided_slice %240 {offsets = [0, 128], sizes = [8, 128], strides = [1, 1]} : vector<8x384xf32> to vector<8x128xf32>
      %254 = vector.extract_strided_slice %244 {offsets = [0, 128], sizes = [8, 128], strides = [1, 1]} : vector<8x384xf32> to vector<8x128xf32>
      %255 = arith.addf %253, %254 : vector<8x128xf32>
      %256 = arith.negf %255 : vector<8x128xf32>
      %257 = math.exp %256 : vector<8x128xf32>
      %cst_50 = arith.constant 1.000000e+00 : f32
      %258 = vector.broadcast %cst_50 : f32 to vector<8x128xf32>
      %259 = arith.addf %258, %257 : vector<8x128xf32>
      %260 = arith.divf %258, %259 : vector<8x128xf32>
      %261 = vector.extract_strided_slice %240 {offsets = [0, 256], sizes = [8, 128], strides = [1, 1]} : vector<8x384xf32> to vector<8x128xf32>
      %262 = vector.extract_strided_slice %244 {offsets = [0, 256], sizes = [8, 128], strides = [1, 1]} : vector<8x384xf32> to vector<8x128xf32>
      %263 = arith.mulf %252, %262 : vector<8x128xf32>
      %264 = arith.addf %261, %263 : vector<8x128xf32>
      %265 = math.tanh %264 : vector<8x128xf32>
      %cst_51 = arith.constant 1.000000e+00 : f32
      %266 = vector.broadcast %cst_51 : f32 to vector<8x128xf32>
      %267 = arith.subf %266, %260 : vector<8x128xf32>
      %268 = arith.mulf %267, %265 : vector<8x128xf32>
      %269 = arith.mulf %260, %239 : vector<8x128xf32>
      %270 = arith.addf %268, %269 : vector<8x128xf32>
      %271 = arith.truncf %270 : vector<8x128xf32> to vector<8x128xbf16>
      %c0_52 = arith.constant 0 : index
      %c0_53 = arith.constant 0 : index
      %272 = vector.load %arg11[%c0_52, %c0_53] : memref<128x512xbf16, #tpu.memory_space<vmem>>, vector<128x512xbf16>
      %cst_54 = arith.constant dense<0.000000e+00> : vector<8x512xf32>
      %273 = tpu.matmul %271, %272, %cst_54 {dimension_numbers = #tpu.dot_dimension_numbers<[1], [0], [0], [1], [0, 0, 1, 1], [], []>} : vector<8x128xbf16>, vector<128x512xbf16>, vector<8x512xf32> -> vector<8x512xf32>
      %c0_55 = arith.constant 0 : index
      %c0_56 = arith.constant 0 : index
      %274 = vector.load %arg12[%c0_55, %c0_56] : memref<1x512xf32, #tpu.memory_space<vmem>>, vector<1x512xf32>
      %275 = vector.broadcast %274 : vector<1x512xf32> to vector<8x512xf32>
      %276 = arith.addf %273, %275 : vector<8x512xf32>
      %277 = arith.truncf %13 : vector<128x128xf32> to vector<128x128xbf16>
      %c0_57 = arith.constant 0 : index
      %c0_58 = arith.constant 0 : index
      %c0_59 = arith.constant 0 : index
      %278 = vector.load %arg9[%c0_57, %c0_58, %c0_59] : memref<2x128x128xbf16, #tpu.memory_space<vmem>>, vector<1x128x128xbf16>
      %279 = vector.shape_cast %278 : vector<1x128x128xbf16> to vector<128x128xbf16>
      %cst_60 = arith.constant dense<0.000000e+00> : vector<128x128xf32>
      %280 = tpu.matmul %277, %279, %cst_60 {dimension_numbers = #tpu.dot_dimension_numbers<[1], [0], [0], [1], [0, 0, 1, 1], [], []>} : vector<128x128xbf16>, vector<128x128xbf16>, vector<128x128xf32> -> vector<128x128xf32>
      %c0_61 = arith.constant 0 : index
      %c0_62 = arith.constant 0 : index
      %c0_63 = arith.constant 0 : index
      %281 = vector.load %arg10[%c0_61, %c0_62, %c0_63] : memref<2x1x128xf32, #tpu.memory_space<vmem>>, vector<1x1x128xf32>
      %282 = vector.shape_cast %281 : vector<1x1x128xf32> to vector<1x128xf32>
      %283 = vector.broadcast %282 : vector<1x128xf32> to vector<128x128xf32>
      %284 = arith.addf %280, %283 : vector<128x128xf32>
      %285 = vector.extract_strided_slice %276 {offsets = [0, 0], sizes = [2, 128], strides = [1, 1]} : vector<8x512xf32> to vector<2x128xf32>
      %286 = vector.extract_strided_slice %276 {offsets = [0, 128], sizes = [2, 128], strides = [1, 1]} : vector<8x512xf32> to vector<2x128xf32>
      %287 = vector.shape_cast %284 : vector<128x128xf32> to vector<2x64x128xf32>
      %288 = vector.shape_cast %13 : vector<128x128xf32> to vector<2x64x128xf32>
      %289 = vector.shape_cast %285 : vector<2x128xf32> to vector<2x1x128xf32>
      %290 = vector.broadcast %289 : vector<2x1x128xf32> to vector<2x64x128xf32>
      %291 = arith.mulf %287, %290 : vector<2x64x128xf32>
      %292 = vector.shape_cast %286 : vector<2x128xf32> to vector<2x1x128xf32>
      %293 = vector.broadcast %292 : vector<2x1x128xf32> to vector<2x64x128xf32>
      %294 = arith.addf %291, %293 : vector<2x64x128xf32>
      %cst_64 = arith.constant 0.000000e+00 : f32
      %295 = vector.broadcast %cst_64 : f32 to vector<2x64x128xf32>
      %296 = arith.maximumf %294, %295 : vector<2x64x128xf32>
      %297 = arith.addf %296, %288 : vector<2x64x128xf32>
      %298 = vector.shape_cast %297 : vector<2x64x128xf32> to vector<128x128xf32>
      %299 = arith.truncf %298 : vector<128x128xf32> to vector<128x128xbf16>
      %c1 = arith.constant 1 : index
      %c0_65 = arith.constant 0 : index
      %c0_66 = arith.constant 0 : index
      %300 = vector.load %arg9[%c1, %c0_65, %c0_66] : memref<2x128x128xbf16, #tpu.memory_space<vmem>>, vector<1x128x128xbf16>
      %301 = vector.shape_cast %300 : vector<1x128x128xbf16> to vector<128x128xbf16>
      %cst_67 = arith.constant dense<0.000000e+00> : vector<128x128xf32>
      %302 = tpu.matmul %299, %301, %cst_67 {dimension_numbers = #tpu.dot_dimension_numbers<[1], [0], [0], [1], [0, 0, 1, 1], [], []>} : vector<128x128xbf16>, vector<128x128xbf16>, vector<128x128xf32> -> vector<128x128xf32>
      %c1_68 = arith.constant 1 : index
      %c0_69 = arith.constant 0 : index
      %c0_70 = arith.constant 0 : index
      %303 = vector.load %arg10[%c1_68, %c0_69, %c0_70] : memref<2x1x128xf32, #tpu.memory_space<vmem>>, vector<1x1x128xf32>
      %304 = vector.shape_cast %303 : vector<1x1x128xf32> to vector<1x128xf32>
      %305 = vector.broadcast %304 : vector<1x128xf32> to vector<128x128xf32>
      %306 = arith.addf %302, %305 : vector<128x128xf32>
      %307 = vector.extract_strided_slice %276 {offsets = [0, 256], sizes = [2, 128], strides = [1, 1]} : vector<8x512xf32> to vector<2x128xf32>
      %308 = vector.extract_strided_slice %276 {offsets = [0, 384], sizes = [2, 128], strides = [1, 1]} : vector<8x512xf32> to vector<2x128xf32>
      %309 = vector.shape_cast %306 : vector<128x128xf32> to vector<2x64x128xf32>
      %310 = vector.shape_cast %298 : vector<128x128xf32> to vector<2x64x128xf32>
      %311 = vector.shape_cast %307 : vector<2x128xf32> to vector<2x1x128xf32>
      %312 = vector.broadcast %311 : vector<2x1x128xf32> to vector<2x64x128xf32>
      %313 = arith.mulf %309, %312 : vector<2x64x128xf32>
      %314 = vector.shape_cast %308 : vector<2x128xf32> to vector<2x1x128xf32>
      %315 = vector.broadcast %314 : vector<2x1x128xf32> to vector<2x64x128xf32>
      %316 = arith.addf %313, %315 : vector<2x64x128xf32>
      %cst_71 = arith.constant 0.000000e+00 : f32
      %317 = vector.broadcast %cst_71 : f32 to vector<2x64x128xf32>
      %318 = arith.maximumf %316, %317 : vector<2x64x128xf32>
      %319 = arith.addf %318, %310 : vector<2x64x128xf32>
      %320 = vector.shape_cast %319 : vector<2x64x128xf32> to vector<128x128xf32>
      %321 = vector.shape_cast %320 : vector<128x128xf32> to vector<2x64x128xf32>
      %cst_72 = arith.constant dense<0xFF800000> : vector<2x128xf32>
      %322 = vector.multi_reduction <maximumf>, %321, %cst_72 [1] : vector<2x64x128xf32> to vector<2x128xf32>
      %323 = arith.truncf %322 : vector<2x128xf32> to vector<2x128xbf16>
      %c0_73 = arith.constant 0 : index
      %c0_74 = arith.constant 0 : index
      %324 = vector.load %arg13[%c0_73, %c0_74] : memref<128x128xbf16, #tpu.memory_space<vmem>>, vector<128x128xbf16>
      %cst_75 = arith.constant dense<0.000000e+00> : vector<2x128xf32>
      %325 = tpu.matmul %323, %324, %cst_75 {dimension_numbers = #tpu.dot_dimension_numbers<[1], [0], [0], [1], [0, 0, 1, 1], [], []>} : vector<2x128xbf16>, vector<128x128xbf16>, vector<2x128xf32> -> vector<2x128xf32>
      %c0_76 = arith.constant 0 : index
      %c0_77 = arith.constant 0 : index
      %326 = vector.load %arg14[%c0_76, %c0_77] : memref<1x128xf32, #tpu.memory_space<vmem>>, vector<1x128xf32>
      %327 = vector.broadcast %326 : vector<1x128xf32> to vector<2x128xf32>
      %328 = arith.addf %325, %327 : vector<2x128xf32>
      %cst_78 = arith.constant 0.000000e+00 : f32
      %329 = vector.broadcast %cst_78 : f32 to vector<2x128xf32>
      %330 = tpu.concatenate %328, %329 in 0 : vector<2x128xf32>, vector<2x128xf32> -> vector<4x128xf32>
      %c0_79 = arith.constant 0 : index
      %c0_80 = arith.constant 0 : index
      %c0_81 = arith.constant 0 : index
      %331 = vector.load %arg15[%c0_79, %c0_80, %c0_81] : memref<1x4x128xf32, #tpu.memory_space<vmem>>, vector<1x4x128xf32>
      %332 = vector.shape_cast %331 : vector<1x4x128xf32> to vector<4x128xf32>
      %333 = vector.shape_cast %330 : vector<4x128xf32> to vector<1x4x128xf32>
      tpu.vector_store %arg15[%c0_79, %c0_80, %c0_81], %333 {strides = array<i32>} : memref<1x4x128xf32, #tpu.memory_space<vmem>>, vector<1x4x128xf32>,
    } else {
    }
    %c1_i32 = arith.constant 1 : i32
    %3 = arith.cmpi eq, %arg0, %c1_i32 : i32
    %4 = arith.extui %3 : i1 to i32
    %c0_i32_1 = arith.constant 0 : i32
    %5 = arith.cmpi ne, %4, %c0_i32_1 : i32
    scf.if %5 {
      %c128 = arith.constant 128 : index
      %c0 = arith.constant 0 : index
      %6 = vector.load %arg1[%c128, %c0] : memref<384x32xbf16, #tpu.memory_space<vmem>>, vector<256x32xbf16>
      %c0_2 = arith.constant 0 : index
      %c0_3 = arith.constant 0 : index
      %7 = vector.load %arg2[%c0_2, %c0_3] : memref<32x128xbf16, #tpu.memory_space<vmem>>, vector<32x128xbf16>
      %cst = arith.constant dense<0.000000e+00> : vector<256x128xf32>
      %8 = tpu.matmul %6, %7, %cst {dimension_numbers = #tpu.dot_dimension_numbers<[1], [0], [0], [1], [0, 0, 1, 1], [], []>} : vector<256x32xbf16>, vector<32x128xbf16>, vector<256x128xf32> -> vector<256x128xf32>
      %c0_4 = arith.constant 0 : index
      %c0_5 = arith.constant 0 : index
      %9 = vector.load %arg3[%c0_4, %c0_5] : memref<1x128xf32, #tpu.memory_space<vmem>>, vector<1x128xf32>
      %10 = vector.broadcast %9 : vector<1x128xf32> to vector<256x128xf32>
      %11 = arith.addf %8, %10 : vector<256x128xf32>
      %cst_6 = arith.constant 0.000000e+00 : f32
      %12 = vector.broadcast %cst_6 : f32 to vector<256x128xf32>
      %13 = arith.maximumf %11, %12 : vector<256x128xf32>
      %14 = vector.shape_cast %13 : vector<256x128xf32> to vector<4x64x128xf32>
      %cst_7 = arith.constant dense<0xFF800000> : vector<4x128xf32>
      %15 = vector.multi_reduction <maximumf>, %14, %cst_7 [1] : vector<4x64x128xf32> to vector<4x128xf32>
      %16 = arith.truncf %15 : vector<4x128xf32> to vector<4x128xbf16>
      %c0_8 = arith.constant 0 : index
      %c0_9 = arith.constant 0 : index
      %17 = vector.load %arg13[%c0_8, %c0_9] : memref<128x128xbf16, #tpu.memory_space<vmem>>, vector<128x128xbf16>
      %cst_10 = arith.constant dense<0.000000e+00> : vector<4x128xf32>
      %18 = tpu.matmul %16, %17, %cst_10 {dimension_numbers = #tpu.dot_dimension_numbers<[1], [0], [0], [1], [0, 0, 1, 1], [], []>} : vector<4x128xbf16>, vector<128x128xbf16>, vector<4x128xf32> -> vector<4x128xf32>
      %c0_11 = arith.constant 0 : index
      %c0_12 = arith.constant 0 : index
      %19 = vector.load %arg14[%c0_11, %c0_12] : memref<1x128xf32, #tpu.memory_space<vmem>>, vector<1x128xf32>
      %20 = vector.broadcast %19 : vector<1x128xf32> to vector<4x128xf32>
      %21 = arith.addf %18, %20 : vector<4x128xf32>
      %c0_13 = arith.constant 0 : index
      %c0_14 = arith.constant 0 : index
      %c0_15 = arith.constant 0 : index
      %22 = vector.load %arg15[%c0_13, %c0_14, %c0_15] : memref<1x4x128xf32, #tpu.memory_space<vmem>>, vector<1x4x128xf32>
      %23 = vector.shape_cast %22 : vector<1x4x128xf32> to vector<4x128xf32>
      %24 = vector.shape_cast %21 : vector<4x128xf32> to vector<1x4x128xf32>
      tpu.vector_store %arg15[%c0_13, %c0_14, %c0_15], %24 {strides = array<i32>} : memref<1x4x128xf32, #tpu.memory_space<vmem>>, vector<1x4x128xf32>,
    } else {
    }
    return
  }
  func.func @transform_0(%arg0: i32) -> (i32, i32) {
    %c0_i32 = arith.constant 0 : i32
    %c0_i32_0 = arith.constant 0 : i32
    %c0_i32_1 = arith.constant 0 : i32
    return %c0_i32, %c0_i32_0 : i32, i32
  }
  func.func @transform_1(%arg0: i32) -> (i32, i32) {
    %c0_i32 = arith.constant 0 : i32
    %c0_i32_0 = arith.constant 0 : i32
    %c0_i32_1 = arith.constant 0 : i32
    return %c0_i32, %c0_i32_0 : i32, i32
  }
  func.func @transform_2(%arg0: i32) -> (i32, i32) {
    %c0_i32 = arith.constant 0 : i32
    %c0_i32_0 = arith.constant 0 : i32
    %c0_i32_1 = arith.constant 0 : i32
    return %c0_i32, %c0_i32_0 : i32, i32
  }
  func.func @transform_3(%arg0: i32) -> (i32, i32) {
    %c0_i32 = arith.constant 0 : i32
    %c0_i32_0 = arith.constant 0 : i32
    %c0_i32_1 = arith.constant 0 : i32
    return %c0_i32, %c0_i32_0 : i32, i32
  }
  func.func @transform_4(%arg0: i32) -> (i32, i32) {
    %c0_i32 = arith.constant 0 : i32
    %c0_i32_0 = arith.constant 0 : i32
    %c0_i32_1 = arith.constant 0 : i32
    return %c0_i32, %c0_i32_0 : i32, i32
  }
  func.func @transform_5(%arg0: i32) -> (i32, i32) {
    %c0_i32 = arith.constant 0 : i32
    %c0_i32_0 = arith.constant 0 : i32
    %c0_i32_1 = arith.constant 0 : i32
    return %c0_i32, %c0_i32_0 : i32, i32
  }
  func.func @transform_6(%arg0: i32) -> (i32, i32) {
    %c0_i32 = arith.constant 0 : i32
    %c0_i32_0 = arith.constant 0 : i32
    %c0_i32_1 = arith.constant 0 : i32
    return %c0_i32, %c0_i32_0 : i32, i32
  }
  func.func @transform_7(%arg0: i32) -> (i32, i32) {
    %c0_i32 = arith.constant 0 : i32
    %c0_i32_0 = arith.constant 0 : i32
    %c0_i32_1 = arith.constant 0 : i32
    return %c0_i32, %c0_i32_0 : i32, i32
  }
  func.func @transform_8(%arg0: i32) -> (i32, i32, i32) {
    %c0_i32 = arith.constant 0 : i32
    %c0_i32_0 = arith.constant 0 : i32
    %c0_i32_1 = arith.constant 0 : i32
    %c0_i32_2 = arith.constant 0 : i32
    return %c0_i32, %c0_i32_0, %c0_i32_1 : i32, i32, i32
  }
  func.func @transform_9(%arg0: i32) -> (i32, i32, i32) {
    %c0_i32 = arith.constant 0 : i32
    %c0_i32_0 = arith.constant 0 : i32
    %c0_i32_1 = arith.constant 0 : i32
    %c0_i32_2 = arith.constant 0 : i32
    return %c0_i32, %c0_i32_0, %c0_i32_1 : i32, i32, i32
  }
  func.func @transform_10(%arg0: i32) -> (i32, i32) {
    %c0_i32 = arith.constant 0 : i32
    %c0_i32_0 = arith.constant 0 : i32
    %c0_i32_1 = arith.constant 0 : i32
    return %c0_i32, %c0_i32_0 : i32, i32
  }
  func.func @transform_11(%arg0: i32) -> (i32, i32) {
    %c0_i32 = arith.constant 0 : i32
    %c0_i32_0 = arith.constant 0 : i32
    %c0_i32_1 = arith.constant 0 : i32
    return %c0_i32, %c0_i32_0 : i32, i32
  }
  func.func @transform_12(%arg0: i32) -> (i32, i32) {
    %c0_i32 = arith.constant 0 : i32
    %c0_i32_0 = arith.constant 0 : i32
    %c0_i32_1 = arith.constant 0 : i32
    return %c0_i32, %c0_i32_0 : i32, i32
  }
  func.func @transform_13(%arg0: i32) -> (i32, i32) {
    %c0_i32 = arith.constant 0 : i32
    %c0_i32_0 = arith.constant 0 : i32
    %c0_i32_1 = arith.constant 0 : i32
    return %c0_i32, %c0_i32_0 : i32, i32
  }
  func.func @transform_14(%arg0: i32) -> (i32, i32, i32) {
    %c0_i32 = arith.constant 0 : i32
    %c0_i32_0 = arith.constant 0 : i32
    %c0_i32_1 = arith.constant 0 : i32
    return %arg0, %c0_i32, %c0_i32_0 : i32, i32, i32
  }
}

</mosaic_0001>

<bundles_post_ra>
// kernel: _forward_impl.1
= control target key start
LH: loop header
LB: loop body
LE: loop exit
PB: predicated region body
PF: predicated region fallthrough
CT: control target
= control target key end

     0   :  { %s4627_s29 = smov 0   ;;  %s6064_s0 = inlined_call_operand.vmem [shape: bf16[384,32], index: 0, kind: input, shape index: {}]   ;;  %s6065_s1 = inlined_call_operand.vmem [shape: bf16[32,128], index: 1, kind: input, shape index: {}]   ;;  %s6066_s2 = inlined_call_operand.vmem [shape: f32[1,128], index: 2, kind: input, shape index: {}]   ;;  %s6067_s3 = inlined_call_operand.vmem [shape: bf16[64,32], index: 3, kind: input, shape index: {}]   ;;  %s6068_s4 = inlined_call_operand.vmem [shape: bf16[32,384], index: 4, kind: input, shape index: {}]   ;;  %s6069_s5 = inlined_call_operand.vmem [shape: bf16[128,384], index: 5, kind: input, shape index: {}]   ;;  %s6070_s6 = inlined_call_operand.vmem [shape: f32[1,384], index: 6, kind: input, shape index: {}]   ;;  %s6071_s7 = inlined_call_operand.vmem [shape: f32[1,384], index: 7, kind: input, shape index: {}]   ;;  %s6072_s8 = inlined_call_operand.vmem [shape: bf16[2,128,128], index: 8, kind: input, shape index: {}]   ;;  %s6073_s9 = inlined_call_operand.vmem [shape: f32[2,1,128], index: 9, kind: input, shape index: {}]   ;;  %s6074_s10 = inlined_call_operand.vmem [shape: bf16[128,512], index: 10, kind: input, shape index: {}]   ;;  %s6075_s11 = inlined_call_operand.vmem [shape: f32[1,512], index: 11, kind: input, shape index: {}]   ;;  %s6076_s12 = inlined_call_operand.vmem [shape: bf16[128,128], index: 12, kind: input, shape index: {}]   ;;  %s6077_s13 = inlined_call_operand.vmem [shape: f32[1,128], index: 13, kind: input, shape index: {}]   ;;  %s6078_s14 = inlined_call_operand.vmem [shape: f32[2,4,128], index: 14, kind: output, shape index: {}]  }
   0x1 LB: > { %s4633_s30 = sadd.s32 4294967295, %s4544_s29   ;;  %p3573_p0 = scmp.ge.s32.totalorder %s4544_s29, 1  ;;  %s4544_s29 = sphi %s4627_s29, %s24_s29  }
   0x2   : > { %p402_p1 = scmp.lt.s32.totalorder %s4544_s29, 3 }
   0x4   : > { %p403_p2 = pnand %p3573_p0, %p402_p1 }
   0x5   : > { %p442_p3 = scmp.lt.s32.totalorder (!%p403_p2), %s4633_s30, 1  ;;  %p3575_p4 = scmp.ne.s32.totalorder (!%p403_p2), %s4633_s30, 0 }
   0x6   : > { %406 = sbr.rel (%p403_p2) target bundleno = 3290 (0xcda), region = 76 }
   0xb   : > { %s443_s15 = scalar_select %p442_p3, %s4633_s30, 1 }
   0xc   : > { %450 = sbr.rel (%p3575_p4) target bundleno = 2791 (0xae7), region = 80 }
   0xd   : > { %s3574_s16 = sshll.u32 %s443_s15, 2 }
   0xe   : > { %s4642_s19 = scalar_lea.vmem %s6078_s14, %s3574_s16 }
  0x11   : > { %v4282_v0 = vld [vmem:[%s6065_s1 + $0x8] sm:$0xff]   ;;  %v4283_v1 = vld [vmem:[%s6065_s1] sm:$0xff]   ;;  %vm530_vm0 = vcmask 261120   ;;  %v4284_v2 = vld [vmem:[%s6064_s0 + $0x30] sm:$0xff]   ;;  %v6079_v9 = vmov 0   ;;  %v6081_v29 = vmov 0.0   ;;  %v686_v46 = vlaneseq }
  0x12   : > { %4264 = vmatprep.subr.bf16.mxu1 %v4282_v0  ;;  %3932 = vmatprep.subr.bf16.mxu0 %v4282_v0  ;;  %v4288_v3 = vld [vmem:[%s6068_s4 + $0x1c] ss:$12 sps:$4 sm:$0xff]   ;;  %v4286_v5 = vld [vmem:[%s6068_s4 + $0x18] ss:$12 sps:$4 sm:$0xff]   ;;  %v4289_v7 = vld [vmem:[%s6068_s4] ss:$12 sps:$4 sm:$0xff]  }
  0x13   : > { %4266 = vmatpush3.bf16.msra.mxu1 %v4282_v0  ;;  %3933 = vmatpush3.bf16.msra.mxu0 %v4282_v0  ;;  %v4285_v4 = vld [vmem:[%s6064_s0 + $0x38] sm:$0xff]   ;;  %v4291_v6 = vld [vmem:[%s6068_s4 + $0x4] ss:$12 sps:$4 sm:$0xff]   ;;  %v4300_v11 = vld [vmem:[%s6064_s0 + $0x8] sm:$0xff]   ;;  %vm4548_vm1 = vmmov 0   ;;  %v4923_v49 = vshrl.u32 %v686_v46, 7 }
  0x14   : > { %4265 = vmatprep.subr.bf16.mxu1 %v4283_v1  ;;  %3948 = vmatprep.mubr.msk.bf16.mxu1 %vm530_vm0, %v4284_v2  ;;  %v4298_v8 = vld [vmem:[%s6064_s0] sm:$0xff]   ;;  %v4678_v10 = vld [vmem:[%s6069_s5 + $0xac] ss:$12 sps:$4 sm:$0xff]   ;;  %v4690_v13 = vld [vmem:[%s6069_s5 + $0xa8] ss:$12 sps:$4 sm:$0xff]   ;;  %vm2869_vm2 = vcmask 1041409  }
  0x15   : > { %3934 = vmatprep.subr.bf16.mxu0 %v4283_v1  ;;  %3936 = vmatprep.mubr.msk.bf16.mxu0 %vm530_vm0, %v4298_v8  ;;  %v4292_v12 = vld [vmem:[%s6067_s3] sm:$0xff]   ;;  %v4308_v16 = vld [vmem:[%s6064_s0 + $0x10] sm:$0xff]   ;;  %v4310_v17 = vld [vmem:[%s6064_s0 + $0x18] sm:$0xff]   ;;  %6092 = vst [vmem:[#allocation4_spill] sm:$0xff] %v4923_v49  ;;  %v4934_v54 = vsub.s32 0, %v4923_v49  ;;  %v4942_v58 = vsub.s32 1, %v4923_v49 }
  0x16   : > { %v4305_v14 = vld [vmem:[%s6068_s4 + $0x20] ss:$12 sps:$4 sm:$0xff]   ;;  %v4713_v18 = vld [vmem:[%s6069_s5 + $0x90] ss:$12 sps:$4 sm:$0xff]   ;;  %v4731_v21 = vld [vmem:[%s6069_s5 + $0x78] ss:$12 sps:$4 sm:$0xff]  }
  0x17   : > { %4267 = vmatpush3.bf16.msra.mxu1 %v4283_v1  ;;  %3935 = vmatpush3.bf16.msra.mxu0 %v4283_v1  ;;  %v4700_v15 = vld [vmem:[%s6069_s5 + $0x94] ss:$12 sps:$4 sm:$0xff]   ;;  %v4720_v19 = vld [vmem:[%s6069_s5 + $0x7c] ss:$12 sps:$4 sm:$0xff]   ;;  %v4740_v23 = vld [vmem:[%s6069_s5 + $0x64] ss:$12 sps:$4 sm:$0xff]  }
  0x18   : > { %777 = vmatprep.subr.bf16.mxu1 %v4288_v3  ;;  %3952 = vmatprep.subr.bf16.mxu0 %v4305_v14  ;;  %v4301_v20 = vld [vmem:[%s6067_s3 + $0x8] sm:$0xff]   ;;  %v4317_v22 = vld [vmem:[%s6064_s0 + $0x20] sm:$0xff]   ;;  %v4311_v28 = vld [vmem:[%s6067_s3 + $0x10] sm:$0xff]   ;;  %6097 = vst [vmem:[#allocation9_spill] sm:$0xff] %v4934_v54  ;;  %vm2961_vm3 = vcmask 1041408  }
  0x19   : > { %v4320_v24 = vld [vmem:[%s6068_s4 + $0x8] ss:$12 sps:$4 sm:$0xff]   ;;  %v4754_v26 = vld [vmem:[%s6069_s5 + $0x60] ss:$12 sps:$4 sm:$0xff]   ;;  %v4785_v32 = vld [vmem:[%s6069_s5 + $0x30] ss:$12 sps:$4 sm:$0xff]  }
  0x1a   : > { %3949 = vmatmul.mubr.msk.bf16.vlgmr.msra.gmra.mxu1 %vm530_vm0, %v4285_v4  ;;  %3937 = vmatmul.mubr.msk.bf16.vlgmr.msra.gmra.mxu0 %vm530_vm0, %v4300_v11  ;;  %v4319_v25 = vld [vmem:[%s6064_s0 + $0x28] sm:$0xff]   ;;  %v4779_v31 = vld [vmem:[%s6069_s5 + $0x34] ss:$12 sps:$4 sm:$0xff]   ;;  %v4792_v33 = vld [vmem:[%s6069_s5 + $0xb0] ss:$12 sps:$4 sm:$0xff]   ;;  %6099 = vst [vmem:[#allocation11_spill] sm:$0xff] %v4942_v58 }
  0x1b   : > { %778 = vmatpush1.bf16.msra.mxu1 %v4286_v5  ;;  %797 = vmatprep.mubr.bf16.mxu1 %v6079_v9  ;;  %v4761_v27 = vld [vmem:[%s6069_s5 + $0x4c] ss:$12 sps:$4 sm:$0xff]   ;;  %v4772_v30 = vld [vmem:[%s6069_s5 + $0x48] ss:$12 sps:$4 sm:$0xff]   ;;  %v4811_v37 = vld [vmem:[%s6069_s5 + $0x4] ss:$12 sps:$4 sm:$0xff]  }
  0x1c   : > { %779 = vmatprep.subr.bf16.mxu1 %v4291_v6  ;;  %3953 = vmatpush3.bf16.msra.mxu0 %v4305_v14  ;;  %v4798_v34 = vld [vmem:[%s6069_s5 + $0x1c] ss:$12 sps:$4 sm:$0xff]   ;;  %v4806_v36 = vld [vmem:[%s6069_s5 + $0x18] ss:$12 sps:$4 sm:$0xff]   ;;  %v4826_v39 = vld [vmem:[%s6069_s5] ss:$12 sps:$4 sm:$0xff]  }
  0x1d   : > { %3940 = vmatprep.mubr.msk.bf16.mxu0 %vm530_vm0, %v4308_v16  ;;  %3954 = vmatprep.subr.bf16.mxu0 %v4320_v24  ;;  %v4321_v35 = vld [vmem:[%s6067_s3 + $0x18] sm:$0xff]   ;;  %v4833_v40 = vld [vmem:[%s6069_s5 + $0x80] ss:$12 sps:$4 sm:$0xff]   ;;  %v4843_v41 = vld [vmem:[%s6069_s5 + $0x68] ss:$12 sps:$4 sm:$0xff]  }
  0x1e   : > { %v4817_v38 = vld [vmem:[%s6069_s5 + $0x98] ss:$12 sps:$4 sm:$0xff]   ;;  %v4856_v42 = vld [vmem:[%s6069_s5 + $0x50] ss:$12 sps:$4 sm:$0xff]   ;;  %v4875_v44 = vld [vmem:[%s6069_s5 + $0x20] ss:$12 sps:$4 sm:$0xff]  }
  0x1f   : > { %780 = vmatpush1.bf16.msra.mxu1 %v4289_v7  ;;  %v4866_v43 = vld [vmem:[%s6069_s5 + $0x38] ss:$12 sps:$4 sm:$0xff]   ;;  %v4886_v45 = vld [vmem:[%s6069_s5 + $0x8] ss:$12 sps:$4 sm:$0xff]   ;;  %v684_v55 = vld [vmem:[%s6070_s6] sm:$0x7] }
  0x20   : > { %1080 = vmatprep.subr.bf16.mxu1 %v4678_v10  ;;  %3955 = vmatpush3.bf16.msra.mxu0 %v4320_v24  ;;  %v689_v61 = vrot.slane %v684_v55, %v4934_v54  ;;  %v4952_v0 = vrot.slane %v684_v55, %v4942_v58 }
  0x21   : > { %3964 = vmatprep.subr.bf16.mxu0 %v6081_v29 }
  0x22   : > { %3605 = vmatmul.mubr.msk.bf16.vlgmr.msra.gmra.mxu1 %vm530_vm0, %v4292_v12  ;;  %3941 = vmatmul.mubr.msk.bf16.gmra.mxu0 %vm530_vm0, %v4310_v17 }
  0x23   : > { %1081 = vmatpush1.bf16.msra.mxu1 %v4690_v13  ;;  %807 = vmatprep.mubr.bf16.mxu1 %v6079_v9 }
  0x24   : > { %1082 = vmatprep.subr.bf16.mxu1 %v4700_v15  ;;  %3944 = vmatprep.mubr.msk.bf16.mxu0 %vm530_vm0, %v4317_v22 }
  0x27   : > { %1083 = vmatpush1.bf16.msra.mxu1 %v4713_v18 }
  0x28   : > { %1084 = vmatprep.subr.bf16.mxu1 %v4720_v19 }
  0x2a   : > { %3606 = vmatmul.mubr.msk.bf16.gmra.mxu1 %vm530_vm0, %v4301_v20  ;;  %3945 = vmatmul.mubr.msk.bf16.gmra.mxu0 %vm530_vm0, %v4319_v25 }
  0x2b   : > { %1085 = vmatpush1.bf16.msra.mxu1 %v4731_v21  ;;  %817 = vmatprep.mubr.bf16.mxu1 %v6079_v9 }
  0x2c   : > { %1086 = vmatprep.subr.bf16.mxu1 %v4740_v23  ;;  %3956 = vmatprep.mubr.msk.bf16.mxu0 %vm530_vm0, %v4292_v12 }
  0x2f   : > { %1087 = vmatpush1.bf16.msra.mxu1 %v4754_v26 }
  0x30   : > { %1088 = vmatprep.subr.bf16.mxu1 %v4761_v27 }
  0x32   : > { %3607 = vmatmul.mubr.msk.bf16.gmra.mxu1 %vm530_vm0, %v4311_v28  ;;  %3957 = vmatmul.mubr.msk.bf16.vlgmr.msra.gmra.mxu0 %vm530_vm0, %v4301_v20  ;;  %v4975_v20 = vsub.s32 2, %v4923_v49 }
  0x33   : > { %1089 = vmatpush1.bf16.msra.mxu1 %v4772_v30  ;;  %827 = vmatprep.mubr.bf16.mxu1 %v6079_v9 }
  0x34   : > { %1090 = vmatprep.subr.bf16.mxu1 %v4779_v31  ;;  %3965 = vmatpush3.bf16.msra.mxu0 %v4792_v33 }
  0x35   : > { %3966 = vmatprep.subr.bf16.mxu0 %v6081_v29  ;;  %3960 = vmatprep.mubr.msk.bf16.mxu0 %vm530_vm0, %v4311_v28 }
  0x37   : > { %1091 = vmatpush1.bf16.msra.mxu1 %v4785_v32 }
  0x38   : > { %1092 = vmatprep.subr.bf16.mxu1 %v4798_v34  ;;  %3967 = vmatpush3.bf16.msra.mxu0 %v4817_v38 }
  0x39   : > { %3968 = vmatprep.subr.bf16.mxu0 %v6081_v29 }
  0x3a   : > { %3608 = vmatmul.mubr.msk.bf16.gmra.mxu1 %vm530_vm0, %v4321_v35  ;;  %3961 = vmatmul.mubr.msk.bf16.gmra.mxu0 %vm530_vm0, %v4321_v35 }
  0x3b   : > { %1093 = vmatpush1.bf16.msra.mxu1 %v4806_v36  ;;  %1112 = vmatprep.mubr.bf16.mxu1 %v6079_v9 }
  0x3c   : > { %1094 = vmatprep.subr.bf16.mxu1 %v4811_v37  ;;  %3980 = vmatprep.mubr.msk.bf16.mxu0 %vm4548_vm1, %v6081_v29 }
  0x3d   : > { %3969 = vmatpush3.bf16.msra.mxu0 %v4833_v40 }
  0x3e   : > { %3970 = vmatprep.subr.bf16.mxu0 %v6081_v29 }
  0x3f   : > { %1095 = vmatpush1.bf16.msra.mxu1 %v4826_v39 }
  0x40   : > { %1183 = vmatprep.subr.bf16.mxu1 %v4678_v10 }
  0x41   : > { %3971 = vmatpush3.bf16.msra.mxu0 %v4843_v41 }
  0x42   : > { %1113 = vmatmul.mubr.bf16.vlgmr.msra.gmra.mxu1 %v6079_v9  ;;  %3972 = vmatprep.subr.bf16.mxu0 %v6081_v29 }
  0x43   : > { %1184 = vmatpush1.bf16.msra.mxu1 %v4690_v13  ;;  %1215 = vmatprep.mubr.bf16.mxu1 %v6079_v9 }
  0x44   : > { %1185 = vmatprep.subr.bf16.mxu1 %v4700_v15 }
  0x45   : > { %3973 = vmatpush3.bf16.msra.mxu0 %v4856_v42 }
  0x46   : > { %3974 = vmatprep.subr.bf16.mxu0 %v6081_v29 }
  0x47   : > { %1186 = vmatpush1.bf16.msra.mxu1 %v4713_v18 }
  0x48   : > { %1187 = vmatprep.subr.bf16.mxu1 %v4720_v19 }
  0x49   : > { %3975 = vmatpush3.bf16.msra.mxu0 %v4866_v43 }
  0x4a   : > { %3976 = vmatprep.subr.bf16.mxu0 %v6081_v29 }
  0x4b   : > { %1188 = vmatpush1.bf16.msra.mxu1 %v4731_v21 }
  0x4c   : > { %1189 = vmatprep.subr.bf16.mxu1 %v4740_v23 }
  0x4d   : > { %3977 = vmatpush3.bf16.msra.mxu0 %v4875_v44 }
  0x4e   : > { %3978 = vmatprep.subr.bf16.mxu0 %v6081_v29 }
  0x4f   : > { %1190 = vmatpush1.bf16.msra.mxu1 %v4754_v26 }
  0x50   : > { %1191 = vmatprep.subr.bf16.mxu1 %v4761_v27 }
  0x51   : > { %3979 = vmatpush3.bf16.msra.mxu0 %v4886_v45 }
  0x52   : > { %3984 = vmatprep.subr.bf16.mxu0 %v6081_v29 }
  0x53   : > { %1192 = vmatpush1.bf16.msra.mxu1 %v4772_v30 }
  0x54   : > { %1193 = vmatprep.subr.bf16.mxu1 %v4779_v31  ;;  %3981 = vmatmul.mubr.bf16.vlgmr.msra.gmra.mxu0 %v6079_v9 }
  0x55   : > { %3985 = vmatpush3.bf16.msra.mxu0 %v4792_v33  ;;  %4000 = vmatprep.mubr.msk.bf16.mxu0 %vm4548_vm1, %v6081_v29 }
  0x56   : > { %3986 = vmatprep.subr.bf16.mxu0 %v6081_v29 }
  0x57   : > { %1194 = vmatpush1.bf16.msra.mxu1 %v4785_v32 }
  0x58   : > { %1195 = vmatprep.subr.bf16.mxu1 %v4798_v34 }
  0x59   : > { %3987 = vmatpush3.bf16.msra.mxu0 %v4817_v38 }
  0x5a   : > { %3988 = vmatprep.subr.bf16.mxu0 %v6081_v29 }
  0x5b   : > { %1196 = vmatpush1.bf16.msra.mxu1 %v4806_v36 }
  0x5c   : > { %1197 = vmatprep.subr.bf16.mxu1 %v4811_v37 }
  0x5d   : > { %3989 = vmatpush3.bf16.msra.mxu0 %v4833_v40 }
  0x5e   : > { %3990 = vmatprep.subr.bf16.mxu0 %v6081_v29 }
  0x5f   : > { %1198 = vmatpush1.bf16.msra.mxu1 %v4826_v39 }
  0x60   : > { %1286 = vmatprep.subr.bf16.mxu1 %v4678_v10 }
  0x61   : > { %3991 = vmatpush3.bf16.msra.mxu0 %v4843_v41 }
  0x62   : > { %3992 = vmatprep.subr.bf16.mxu0 %v6081_v29 }
  0x65   : > { %3993 = vmatpush3.bf16.msra.mxu0 %v4856_v42 }
  0x66   : > { %3994 = vmatprep.subr.bf16.mxu0 %v6081_v29 }
  0x69   : > { %3995 = vmatpush3.bf16.msra.mxu0 %v4866_v43 }
  0x6a   : > { %3996 = vmatprep.subr.bf16.mxu0 %v6081_v29 }
  0x6d   : > { %3997 = vmatpush3.bf16.msra.mxu0 %v4875_v44 }
  0x6e   : > { %3998 = vmatprep.subr.bf16.mxu0 %v6081_v29 }
  0x71   : > { %3999 = vmatpush3.bf16.msra.mxu0 %v4886_v45 }
  0x72   : > { %4004 = vmatprep.subr.bf16.mxu0 %v6081_v29 }
  0xda   : > { %v4919_v47 = vpop.f32.mrf.mxu1  ;;  %v4927_v51 = vpop.f32.mrf.mxu0 }
  0xdb   : > { %6090 = vst [vmem:[#allocation2_spill] sm:$0xff] %v4919_v47  ;;  %6094 = vst [vmem:[#allocation6_spill] sm:$0xff] %v4927_v51 }
  0xdc   : > { %v4921_v48 = vpop.f32.mrf.mxu1  ;;  %v4931_v53 = vpop.f32.mrf.mxu0 }
  0xdd   : > { %6091 = vst [vmem:[#allocation3_spill] sm:$0xff] %v4921_v48  ;;  %6096 = vst [vmem:[#allocation8_spill] sm:$0xff] %v4931_v53 }
  0xde   : > { %v4925_v50 = vpop.f32.mrf.mxu1  ;;  %v4939_v57 = vpop.f32.mrf.mxu0 }
  0xdf   : > { %6093 = vst [vmem:[#allocation5_spill] sm:$0xff] %v4925_v50  ;;  %6098 = vst [vmem:[#allocation10_spill] sm:$0xff] %v4939_v57 }
  0xe0   : > { %v4929_v52 = vpop.f32.mrf.mxu1  ;;  %v4946_v60 = vpop.f32.mrf.mxu0 }
  0xe1   : > { %6095 = vst [vmem:[#allocation7_spill] sm:$0xff] %v4929_v52  ;;  %6100 = vst [vmem:[#allocation12_spill] sm:$0xff] %v4946_v60 }
  0xe2   : > { %v799_v56 = vpop.f32.mrf.mxu1  ;;  %v4949_v63 = vpop.f32.mrf.mxu0 }
  0xe3   : > { %6101 = vst [vmem:[#allocation13_spill] sm:$0xff] %v4949_v63 }
  0xe4   : > { %v4944_v59 = vpop.f32.mrf.mxu1  ;;  %v4956_v3 = vpop.f32.mrf.mxu0 }
  0xe5   : > { %6102 = vst [vmem:[#allocation14_spill] sm:$0xff] %v4956_v3 }
  0xe6   : > { %v803_v62 = vpop.f32.mrf.mxu1  ;;  %v4961_v6 = vpop.f32.mrf.mxu0 }
  0xe7   : > { %v4954_v1 = vadd.f32 %v803_v62, %v689_v61  ;;  %6103 = vst [vmem:[#allocation15_spill] sm:$0xff] %v4961_v6  ;;  %v697_v62 = vrot.slane %v684_v55, %v4975_v20 }
  0xe8   : > { %v805_v2 = vpop.f32.mrf.mxu1  ;;  %v4965_v11 = vpop.f32.mrf.mxu0 }
  0xe9   : > { %v4959_v4 = vadd.f32 %v805_v2, %v4952_v0  ;;  %6104 = vst [vmem:[#allocation16_spill] sm:$0xff] %v4965_v11 }
  0xea   : > { %v809_v5 = vpop.f32.mrf.mxu1  ;;  %v4970_v16 = vpop.f32.mrf.mxu0 }
  0xeb   : > { %v4963_v7 = vadd.f32 %v809_v5, %v689_v61  ;;  %6105 = vst [vmem:[#allocation17_spill] sm:$0xff] %v4970_v16 }
  0xec   : > { %v811_v8 = vpop.f32.mrf.mxu1  ;;  %v4977_v24 = vpop.f32.mrf.mxu0 }
  0xed   : > { %v4968_v12 = vadd.f32 %v811_v8, %v4952_v0  ;;  %6106 = vst [vmem:[#allocation18_spill] sm:$0xff] %v4977_v24 }
  0xee   : > { %v813_v14 = vpop.f32.mrf.mxu1  ;;  %v4982_v35 = vpop.f32.mrf.mxu0 }
  0xef   : > { %v4972_v17 = vadd.f32 %v813_v14, %v689_v61  ;;  %6107 = vst [vmem:[#allocation19_spill] sm:$0xff] %v4982_v35 }
  0xf0   : > { %v815_v22 = vpop.f32.mrf.mxu1  ;;  %v4987_v5 = vpop.f32.mrf.mxu0 }
  0xf1   : > { %v4980_v25 = vadd.f32 %v815_v22, %v4952_v0  ;;  %6108 = vst [vmem:[#allocation20_spill] sm:$0xff] %v4987_v5 }
  0xf2   : > { %v819_v28 = vpop.f32.mrf.mxu1  ;;  %v3958_v9 = vpop.f32.mrf.mxu0 }
  0xf3   : > { %v4984_v46 = vadd.f32 %v819_v28, %v689_v61  ;;  %v4994_v49 = vadd.f32 %v3958_v9, %v697_v62 }
  0xf4   : > { %v821_v2 = vpop.f32.mrf.mxu1  ;;  %v872_v47 = vpop.f32.mrf.mxu0 }
  0xf5   : > { %v4990_v8 = vadd.f32 %v821_v2, %v4952_v0  ;;  %v903_v2 = vld [vmem:[%s6071_s7] sm:$0x7] }
  0xf6   : > { %v823_v14 = vpop.f32.mrf.mxu1  ;;  %v3959_v48 = vpop.f32.mrf.mxu0 }
  0xf7   : > { %v4992_v29 = vadd.f32 %v823_v14, %v689_v61  ;;  %v5001_v52 = vadd.f32 %v3959_v48, %v697_v62 }
  0xf8   : > { %v825_v22 = vpop.f32.mrf.mxu1  ;;  %v875_v14 = vpop.f32.mrf.mxu0 }
  0xf9   : > { %v4997_v50 = vadd.f32 %v825_v22, %v4952_v0  ;;  %v5009_v16 = vadd.f32 %v875_v14, %v697_v62  ;;  %v800_v14 = vadd.f32 %v799_v56, %v689_v61  ;;  %v802_v56 = vadd.f32 %v4944_v59, %v4952_v0 }
  0xfa   : > { %v829_v28 = vpop.f32.mrf.mxu1  ;;  %v3962_v22 = vpop.f32.mrf.mxu0  ;;  %v873_v59 = vadd.f32 %v872_v47, %v697_v62  ;;  %v6114_v47 = vmov 0.0  }
  0xfb   : > { %v4999_v55 = vadd.f32 %v829_v28, %v689_v61  ;;  %v5014_v28 = vrot.slane %v903_v2, %v4934_v54  ;;  %v5016_v48 = vadd.f32 %v3962_v22, %v697_v62 }
  0xfc   : > { %v831_v35 = vpop.f32.mrf.mxu1  ;;  %v888_v63 = vpop.f32.mrf.mxu0 }
  0xfd   : > { %v5007_v9 = vadd.f32 %v831_v35, %v4952_v0  ;;  %6111 = vst [vmem:[#allocation23_spill] sm:$0xff] %v5016_v48  ;;  %v5021_v3 = vadd.f32 %v888_v63, %v697_v62 }
  0xfe   : > { %v833_v5 = vpop.f32.mrf.mxu1  ;;  %v3963_v57 = vpop.f32.mrf.mxu0 }
  0xff   : > { %6109 = vst [vmem:[#allocation21_spill] sm:$0xff] %v5007_v9  ;;  %v5011_v24 = vadd.f32 %v833_v5, %v689_v61  ;;  %v5025_v5 = vrot.slane %v903_v2, %v4942_v58  ;;  %v5027_v60 = vadd.f32 %v3963_v57, %v697_v62 }
 0x100   : > { %v835_v6 = vpop.f32.mrf.mxu1  ;;  %v891_v22 = vpop.f32.mrf.mxu0 }
 0x101   : > { %6110 = vst [vmem:[#allocation22_spill] sm:$0xff] %v5011_v24  ;;  %v5019_v11 = vadd.f32 %v835_v6, %v4952_v0  ;;  %6113 = vst [vmem:[#allocation25_spill] sm:$0xff] %v5027_v60  ;;  %v5029_v24 = vadd.f32 %v891_v22, %v697_v62 }
 0x102   : > { %v1114_v35 = vpop.f32.mrf.mxu1 }
 0x103   : > { %6112 = vst [vmem:[#allocation24_spill] sm:$0xff] %v5019_v11  ;;  %v1115_v51 = vadd.f32 %v1114_v35, %v5014_v28 }
 0x104   : > { %v1116_v54 = vpop.f32.mrf.mxu1 }
 0x105   : > { %v1161_v53 = vadd.f32 %v1115_v51, %v800_v14  ;;  %v1117_v63 = vadd.f32 %v1116_v54, %v5025_v5 }
 0x106   : > { %v1118_v48 = vpop.f32.mrf.mxu1 }
 0x107   : > { %v3637_v6 = vmul.f32 -1.442695, %v1161_v53  ;;  %v1168_v61 = vadd.f32 %v1117_v63, %v802_v56  ;;  %v5035_v48 = vrot.slane %v903_v2, %v4975_v20 }
 0x108   : > { %v1119_v11 = vpop.f32.mrf.mxu1 }
 0x109   : > { %4408 = vpow2.f32 %v3637_v6  ;;  %v3638_v35 = vmul.f32 -1.442695, %v1168_v61 }
 0x10b   : > { %4410 = vpow2.f32 %v3638_v35 }
 0x114   : > { %v1155_v60 = vpop.f32.mrf.mxu0 }
 0x115   : > { %v1156_v11 = vadd.f32 %v1155_v60, %v5035_v48  ;;  %v6115_v60 = vmov 0  }
 0x116   : > { %v4409_v58 = vpop.eup %4408  ;;  %v3982_v9 = vpop.f32.mrf.mxu0 }
 0x117   : > { %v1165_v57 = vadd.f32 1.0, %v4409_v58 }
 0x118   : > { %v1158_v51 = vpop.f32.mrf.mxu0  ;;  %v4411_v53 = vpop.eup %4410 }
 0x119   : > { %4412 = vrcp.f32 %v1165_v57  ;;  %v1172_v54 = vadd.f32 1.0, %v4411_v53 }
 0x11a   : > { %v3983_v14 = vpop.f32.mrf.mxu0 }
 0x11b   : > { %4414 = vrcp.f32 %v1172_v54 }
 0x126   : > { %v4413_v22 = vpop.eup %4412 }
 0x127   : > { %v1175_v0 = vmul.f32 %v4413_v22, %v1156_v11 }
 0x128   : > { %v4415_v63 = vpop.eup %4414 }
 0x129   : > { %v1176_v6 = vadd.f32 %v1175_v0, %v873_v59  ;;  %v1178_v58 = vsub.f32 1.0, %v4415_v63  ;;  %v1180_v9 = vmul.f32 0.0, %v4415_v63 }
 0x12b   : > { %4416 = vtanh.f32 %v1176_v6 }
 0x138   : > { %v4417_v56 = vpop.eup %4416 }
 0x139   : > { %v1179_v61 = vmul.f32 %v4417_v56, %v1178_v58 }
 0x13b   : > { %v5038_v35 = vadd.f32 %v1180_v9, %v1179_v61 }
 0x13d   : > { %v1182_v2 = vpack.c.bf16 %v5038_v35, %v5038_v35 }
 0x13f   : > { %1216 = vmatmul.mubr.bf16.vlgmr.msra.gmra.mxu1 %v1182_v2  ;;  %4001 = vmatmul.mubr.bf16.vlgmr.msra.gmra.mxu0 %v1182_v2 }
 0x140   : > { %1287 = vmatpush1.bf16.msra.mxu1 %v4690_v13  ;;  %4005 = vmatpush3.bf16.msra.mxu0 %v4792_v33 }
 0x141   : > { %1288 = vmatprep.subr.bf16.mxu1 %v4700_v15  ;;  %4006 = vmatprep.subr.bf16.mxu0 %v6114_v47 }
 0x142   : > { %1318 = vmatprep.mubr.bf16.mxu1 %v6115_v60  ;;  %4020 = vmatprep.mubr.msk.bf16.mxu0 %vm4548_vm1, %v6114_v47 }
 0x144   : > { %1289 = vmatpush1.bf16.msra.mxu1 %v4713_v18  ;;  %4007 = vmatpush3.bf16.msra.mxu0 %v4817_v38 }
 0x145   : > { %1290 = vmatprep.subr.bf16.mxu1 %v4720_v19  ;;  %4008 = vmatprep.subr.bf16.mxu0 %v6114_v47 }
 0x148   : > { %1291 = vmatpush1.bf16.msra.mxu1 %v4731_v21  ;;  %4009 = vmatpush3.bf16.msra.mxu0 %v4833_v40 }
 0x149   : > { %1292 = vmatprep.subr.bf16.mxu1 %v4740_v23  ;;  %4010 = vmatprep.subr.bf16.mxu0 %v6114_v47 }
 0x14c   : > { %1293 = vmatpush1.bf16.msra.mxu1 %v4754_v26  ;;  %4011 = vmatpush3.bf16.msra.mxu0 %v4843_v41 }
 0x14d   : > { %1294 = vmatprep.subr.bf16.mxu1 %v4761_v27  ;;  %4012 = vmatprep.subr.bf16.mxu0 %v6114_v47 }
 0x150   : > { %1295 = vmatpush1.bf16.msra.mxu1 %v4772_v30  ;;  %4013 = vmatpush3.bf16.msra.mxu0 %v4856_v42 }
 0x151   : > { %1296 = vmatprep.subr.bf16.mxu1 %v4779_v31  ;;  %4014 = vmatprep.subr.bf16.mxu0 %v6114_v47 }
 0x154   : > { %1297 = vmatpush1.bf16.msra.mxu1 %v4785_v32  ;;  %4015 = vmatpush3.bf16.msra.mxu0 %v4866_v43 }
 0x155   : > { %1298 = vmatprep.subr.bf16.mxu1 %v4798_v34  ;;  %4016 = vmatprep.subr.bf16.mxu0 %v6114_v47 }
 0x158   : > { %1299 = vmatpush1.bf16.msra.mxu1 %v4806_v36  ;;  %4017 = vmatpush3.bf16.msra.mxu0 %v4875_v44 }
 0x159   : > { %1300 = vmatprep.subr.bf16.mxu1 %v4811_v37  ;;  %4018 = vmatprep.subr.bf16.mxu0 %v6114_v47 }
 0x15c   : > { %1301 = vmatpush1.bf16.msra.mxu1 %v4826_v39  ;;  %4019 = vmatpush3.bf16.msra.mxu0 %v4886_v45 }
 0x15d   : > { %1389 = vmatprep.subr.bf16.mxu1 %v4678_v10  ;;  %4024 = vmatprep.subr.bf16.mxu0 %v6114_v47 }
 0x1ff   : > { %v1217_v62 = vpop.f32.mrf.mxu1  ;;  %v1258_v57 = vpop.f32.mrf.mxu0 }
 0x200   : > { %v1218_v51 = vadd.f32 %v1217_v62, %v5014_v28 }
 0x201   : > { %v1219_v14 = vpop.f32.mrf.mxu1  ;;  %v4002_v53 = vpop.f32.mrf.mxu0 }
 0x202   : > { %v1264_v54 = vadd.f32 %v1218_v51, %v4954_v1  ;;  %v1220_v0 = vadd.f32 %v1219_v14, %v5025_v5  ;;  %v1259_v53 = vadd.f32 %v1258_v57, %v5035_v48 }
 0x203   : > { %v1221_v11 = vpop.f32.mrf.mxu1  ;;  %v1261_v22 = vpop.f32.mrf.mxu0 }
 0x204   : > { %v3639_v59 = vmul.f32 -1.442695, %v1264_v54  ;;  %v1271_v58 = vadd.f32 %v1220_v0, %v4959_v4 }
 0x205   : > { %v1222_v6 = vpop.f32.mrf.mxu1  ;;  %v4003_v63 = vpop.f32.mrf.mxu0 }
 0x206   : > { %4418 = vpow2.f32 %v3639_v59  ;;  %v3640_v56 = vmul.f32 -1.442695, %v1271_v58 }
 0x208   : > { %4420 = vpow2.f32 %v3640_v56 }
 0x213   : > { %v4419_v61 = vpop.eup %4418 }
 0x214   : > { %v1268_v9 = vadd.f32 1.0, %v4419_v61 }
 0x215   : > { %v4421_v2 = vpop.eup %4420 }
 0x216   : > { %4422 = vrcp.f32 %v1268_v9  ;;  %v1275_v62 = vadd.f32 1.0, %v4421_v2 }
 0x218   : > { %4424 = vrcp.f32 %v1275_v62 }
 0x223   : > { %v4423_v1 = vpop.eup %4422 }
 0x224   : > { %v1278_v51 = vmul.f32 %v4423_v1, %v1259_v53 }
 0x225   : > { %v4425_v14 = vpop.eup %4424 }
 0x226   : > { %v1279_v54 = vadd.f32 %v1278_v51, %v5009_v16  ;;  %v1281_v11 = vsub.f32 1.0, %v4425_v14  ;;  %v1283_v4 = vmul.f32 %v4425_v14, %v5038_v35 }
 0x228   : > { %4426 = vtanh.f32 %v1279_v54 }
 0x235   : > { %v4427_v22 = vpop.eup %4426 }
 0x236   : > { %v1282_v59 = vmul.f32 %v4427_v22, %v1281_v11 }
 0x238   : > { %v5084_v0 = vadd.f32 %v1283_v4, %v1282_v59 }
 0x23a   : > { %v1285_v6 = vpack.c.bf16 %v5084_v0, %v5084_v0 }
 0x23c   : > { %1319 = vmatmul.mubr.bf16.vlgmr.msra.gmra.mxu1 %v1285_v6  ;;  %4021 = vmatmul.mubr.bf16.vlgmr.msra.gmra.mxu0 %v1285_v6 }
 0x23d   : > { %1390 = vmatpush1.bf16.msra.mxu1 %v4690_v13  ;;  %4025 = vmatpush3.bf16.msra.mxu0 %v4792_v33 }
 0x23e   : > { %1391 = vmatprep.subr.bf16.mxu1 %v4700_v15  ;;  %4026 = vmatprep.subr.bf16.mxu0 %v6114_v47 }
 0x23f   : > { %1421 = vmatprep.mubr.bf16.mxu1 %v6115_v60  ;;  %4040 = vmatprep.mubr.msk.bf16.mxu0 %vm4548_vm1, %v6114_v47 }
 0x241   : > { %1392 = vmatpush1.bf16.msra.mxu1 %v4713_v18  ;;  %4027 = vmatpush3.bf16.msra.mxu0 %v4817_v38 }
 0x242   : > { %1393 = vmatprep.subr.bf16.mxu1 %v4720_v19  ;;  %4028 = vmatprep.subr.bf16.mxu0 %v6114_v47 }
 0x245   : > { %1394 = vmatpush1.bf16.msra.mxu1 %v4731_v21  ;;  %4029 = vmatpush3.bf16.msra.mxu0 %v4833_v40 }
 0x246   : > { %1395 = vmatprep.subr.bf16.mxu1 %v4740_v23  ;;  %4030 = vmatprep.subr.bf16.mxu0 %v6114_v47 }
 0x249   : > { %1396 = vmatpush1.bf16.msra.mxu1 %v4754_v26  ;;  %4031 = vmatpush3.bf16.msra.mxu0 %v4843_v41 }
 0x24a   : > { %1397 = vmatprep.subr.bf16.mxu1 %v4761_v27  ;;  %4032 = vmatprep.subr.bf16.mxu0 %v6114_v47 }
 0x24d   : > { %1398 = vmatpush1.bf16.msra.mxu1 %v4772_v30  ;;  %4033 = vmatpush3.bf16.msra.mxu0 %v4856_v42 }
 0x24e   : > { %1399 = vmatprep.subr.bf16.mxu1 %v4779_v31  ;;  %4034 = vmatprep.subr.bf16.mxu0 %v6114_v47 }
 0x251   : > { %1400 = vmatpush1.bf16.msra.mxu1 %v4785_v32  ;;  %4035 = vmatpush3.bf16.msra.mxu0 %v4866_v43 }
 0x252   : > { %1401 = vmatprep.subr.bf16.mxu1 %v4798_v34  ;;  %4036 = vmatprep.subr.bf16.mxu0 %v6114_v47 }
 0x255   : > { %1402 = vmatpush1.bf16.msra.mxu1 %v4806_v36  ;;  %4037 = vmatpush3.bf16.msra.mxu0 %v4875_v44 }
 0x256   : > { %1403 = vmatprep.subr.bf16.mxu1 %v4811_v37  ;;  %4038 = vmatprep.subr.bf16.mxu0 %v6114_v47 }
 0x259   : > { %1404 = vmatpush1.bf16.msra.mxu1 %v4826_v39  ;;  %4039 = vmatpush3.bf16.msra.mxu0 %v4886_v45 }
 0x25a   : > { %1492 = vmatprep.subr.bf16.mxu1 %v4678_v10  ;;  %4044 = vmatprep.subr.bf16.mxu0 %v6114_v47 }
 0x2fc   : > { %v1320_v16 = vpop.f32.mrf.mxu1  ;;  %v1361_v35 = vpop.f32.mrf.mxu0 }
 0x2fd   : > { %v1321_v57 = vadd.f32 %v1320_v16, %v5014_v28  ;;  %v1362_v59 = vadd.f32 %v1361_v35, %v5035_v48 }
 0x2fe   : > { %v1322_v63 = vpop.f32.mrf.mxu1  ;;  %v4022_v58 = vpop.f32.mrf.mxu0 }
 0x2ff   : > { %v1367_v56 = vadd.f32 %v1321_v57, %v4963_v7  ;;  %v1323_v62 = vadd.f32 %v1322_v63, %v5025_v5 }
 0x300   : > { %v1324_v61 = vpop.f32.mrf.mxu1  ;;  %v1364_v9 = vpop.f32.mrf.mxu0 }
 0x301   : > { %v3641_v2 = vmul.f32 -1.442695, %v1367_v56  ;;  %v1374_v10 = vadd.f32 %v1323_v62, %v4968_v12 }
 0x302   : > { %v1325_v53 = vpop.f32.mrf.mxu1  ;;  %v4023_v1 = vpop.f32.mrf.mxu0 }
 0x303   : > { %4428 = vpow2.f32 %v3641_v2  ;;  %v3642_v51 = vmul.f32 -1.442695, %v1374_v10 }
 0x305   : > { %4430 = vpow2.f32 %v3642_v51 }
 0x310   : > { %v4429_v54 = vpop.eup %4428 }
 0x311   : > { %v1371_v14 = vadd.f32 1.0, %v4429_v54 }
 0x312   : > { %v4431_v11 = vpop.eup %4430 }
 0x313   : > { %4432 = vrcp.f32 %v1371_v14  ;;  %v1378_v22 = vadd.f32 1.0, %v4431_v11 }
 0x315   : > { %4434 = vrcp.f32 %v1378_v22 }
 0x320   : > { %v4433_v7 = vpop.eup %4432 }
 0x321   : > { %v1381_v4 = vmul.f32 %v4433_v7, %v1362_v59 }
 0x322   : > { %v4435_v16 = vpop.eup %4434 }
 0x323   : > { %v1382_v6 = vadd.f32 %v1381_v4, %v4994_v49  ;;  %v1384_v57 = vsub.f32 1.0, %v4435_v16  ;;  %v1386_v12 = vmul.f32 %v4435_v16, %v5084_v0  ;;  %v5205_v16 = vld [vmem:[%s6069_s5 + $0x90] ss:$12 sps:$4 sm:$0xff]  }
 0x325   : > { %4436 = vtanh.f32 %v1382_v6  ;;  %v5188_v6 = vld [vmem:[%s6069_s5 + $0xa8] ss:$12 sps:$4 sm:$0xff]  }
 0x332   : > { %v4437_v63 = vpop.eup %4436 }
 0x333   : > { %v1385_v58 = vmul.f32 %v4437_v63, %v1384_v57  ;;  %v5219_v57 = vld [vmem:[%s6069_s5 + $0x78] ss:$12 sps:$4 sm:$0xff]   ;;  %v5233_v63 = vld [vmem:[%s6069_s5 + $0x60] ss:$12 sps:$4 sm:$0xff]  }
 0x335   : > { %v5130_v56 = vadd.f32 %v1386_v12, %v1385_v58  ;;  %v5247_v58 = vld [vmem:[%s6069_s5 + $0x48] ss:$12 sps:$4 sm:$0xff]   ;;  %v5261_v12 = vld [vmem:[%s6069_s5 + $0x30] ss:$12 sps:$4 sm:$0xff]  }
 0x337   : > { %v1388_v61 = vpack.c.bf16 %v5130_v56, %v5130_v56 }
 0x339   : > { %1422 = vmatmul.mubr.bf16.vlgmr.msra.gmra.mxu1 %v1388_v61  ;;  %4041 = vmatmul.mubr.bf16.vlgmr.msra.gmra.mxu0 %v1388_v61 }
 0x33a   : > { %1493 = vmatpush1.bf16.msra.mxu1 %v4690_v13  ;;  %4045 = vmatpush3.bf16.msra.mxu0 %v4792_v33  ;;  %v5170_v13 = vld [vmem:[%s6069_s5 + $0xac] ss:$12 sps:$4 sm:$0xff]  }
 0x33b   : > { %1494 = vmatprep.subr.bf16.mxu1 %v4700_v15  ;;  %4046 = vmatprep.subr.bf16.mxu0 %v6114_v47 }
 0x33c   : > { %1524 = vmatprep.mubr.bf16.mxu1 %v6115_v60  ;;  %4060 = vmatprep.mubr.msk.bf16.mxu0 %vm4548_vm1, %v6114_v47 }
 0x33e   : > { %1495 = vmatpush1.bf16.msra.mxu1 %v4713_v18  ;;  %4047 = vmatpush3.bf16.msra.mxu0 %v4817_v38 }
 0x33f   : > { %1496 = vmatprep.subr.bf16.mxu1 %v4720_v19  ;;  %4048 = vmatprep.subr.bf16.mxu0 %v6114_v47 }
 0x342   : > { %1497 = vmatpush1.bf16.msra.mxu1 %v4731_v21  ;;  %4049 = vmatpush3.bf16.msra.mxu0 %v4833_v40 }
 0x343   : > { %1498 = vmatprep.subr.bf16.mxu1 %v4740_v23  ;;  %4050 = vmatprep.subr.bf16.mxu0 %v6114_v47 }
 0x346   : > { %1499 = vmatpush1.bf16.msra.mxu1 %v4754_v26  ;;  %4051 = vmatpush3.bf16.msra.mxu0 %v4843_v41 }
 0x347   : > { %1500 = vmatprep.subr.bf16.mxu1 %v4761_v27  ;;  %4052 = vmatprep.subr.bf16.mxu0 %v6114_v47 }
 0x34a   : > { %1501 = vmatpush1.bf16.msra.mxu1 %v4772_v30  ;;  %4053 = vmatpush3.bf16.msra.mxu0 %v4856_v42 }
 0x34b   : > { %1502 = vmatprep.subr.bf16.mxu1 %v4779_v31  ;;  %4054 = vmatprep.subr.bf16.mxu0 %v6114_v47 }
 0x34e   : > { %1503 = vmatpush1.bf16.msra.mxu1 %v4785_v32  ;;  %4055 = vmatpush3.bf16.msra.mxu0 %v4866_v43 }
 0x34f   : > { %1504 = vmatprep.subr.bf16.mxu1 %v4798_v34  ;;  %4056 = vmatprep.subr.bf16.mxu0 %v6114_v47 }
 0x352   : > { %1505 = vmatpush1.bf16.msra.mxu1 %v4806_v36  ;;  %4057 = vmatpush3.bf16.msra.mxu0 %v4875_v44 }
 0x353   : > { %1506 = vmatprep.subr.bf16.mxu1 %v4811_v37  ;;  %4058 = vmatprep.subr.bf16.mxu0 %v6114_v47 }
 0x356   : > { %1507 = vmatpush1.bf16.msra.mxu1 %v4826_v39  ;;  %4059 = vmatpush3.bf16.msra.mxu0 %v4886_v45 }
 0x357   : > { %1595 = vmatprep.subr.bf16.mxu1 %v5170_v13  ;;  %4064 = vmatprep.subr.bf16.mxu0 %v6114_v47 }
 0x3f9   : > { %v1423_v15 = vpop.f32.mrf.mxu1  ;;  %v1464_v18 = vpop.f32.mrf.mxu0 }
 0x3fa   : > { %v1424_v19 = vadd.f32 %v1423_v15, %v5014_v28  ;;  %v1465_v10 = vadd.f32 %v1464_v18, %v5035_v48 }
 0x3fb   : > { %v1425_v21 = vpop.f32.mrf.mxu1  ;;  %v4042_v23 = vpop.f32.mrf.mxu0 }
 0x3fc   : > { %v1470_v26 = vadd.f32 %v1424_v19, %v4972_v17  ;;  %v1426_v32 = vadd.f32 %v1425_v21, %v5025_v5 }
 0x3fd   : > { %v1427_v27 = vpop.f32.mrf.mxu1  ;;  %v1467_v30 = vpop.f32.mrf.mxu0 }
 0x3fe   : > { %v3643_v31 = vmul.f32 -1.442695, %v1470_v26  ;;  %v1477_v35 = vadd.f32 %v1426_v32, %v4980_v25 }
 0x3ff   : > { %v1428_v49 = vpop.f32.mrf.mxu1  ;;  %v4043_v0 = vpop.f32.mrf.mxu0 }
 0x400   : > { %4438 = vpow2.f32 %v3643_v31  ;;  %v3644_v9 = vmul.f32 -1.442695, %v1477_v35 }
 0x402   : > { %4440 = vpow2.f32 %v3644_v9 }
 0x40d   : > { %v4439_v2 = vpop.eup %4438 }
 0x40e   : > { %v1474_v62 = vadd.f32 1.0, %v4439_v2 }
 0x40f   : > { %v4441_v53 = vpop.eup %4440 }
 0x410   : > { %4442 = vrcp.f32 %v1474_v62  ;;  %v1481_v1 = vadd.f32 1.0, %v4441_v53 }
 0x412   : > { %4444 = vrcp.f32 %v1481_v1 }
 0x41d   : > { %v4443_v17 = vpop.eup %4442 }
 0x41e   : > { %v1484_v51 = vmul.f32 %v4443_v17, %v1465_v10 }
 0x41f   : > { %v4445_v14 = vpop.eup %4444 }
 0x420   : > { %v1485_v54 = vadd.f32 %v1484_v51, %v5001_v52  ;;  %v1487_v11 = vsub.f32 1.0, %v4445_v14  ;;  %v1489_v25 = vmul.f32 %v4445_v14, %v5130_v56  ;;  %v5195_v52 = vld [vmem:[%s6069_s5 + $0x94] ss:$12 sps:$4 sm:$0xff]  }
 0x421   : > { %v5311_v14 = vld [vmem:[%s6069_s5 + $0x80] ss:$12 sps:$4 sm:$0xff]  }
 0x422   : > { %4446 = vtanh.f32 %v1485_v54  ;;  %v5302_v54 = vld [vmem:[%s6069_s5 + $0x98] ss:$12 sps:$4 sm:$0xff]  }
 0x42f   : > { %v4447_v22 = vpop.eup %4446 }
 0x430   : > { %v1488_v59 = vmul.f32 %v4447_v22, %v1487_v11  ;;  %v5320_v11 = vld [vmem:[%s6069_s5 + $0x68] ss:$12 sps:$4 sm:$0xff]  }
 0x431   : > { %v5334_v22 = vld [vmem:[%s6069_s5 + $0x1c] ss:$12 sps:$4 sm:$0xff]  }
 0x432   : > { %v5181_v7 = vadd.f32 %v1489_v25, %v1488_v59  ;;  %v5355_v59 = vld [vmem:[%s6069_s5] ss:$12 sps:$4 sm:$0xff]  }
 0x434   : > { %v1491_v4 = vpack.c.bf16 %v5181_v7, %v5181_v7 }
 0x436   : > { %1525 = vmatmul.mubr.bf16.vlgmr.msra.gmra.mxu1 %v1491_v4  ;;  %4061 = vmatmul.mubr.bf16.vlgmr.msra.gmra.mxu0 %v1491_v4 }
 0x437   : > { %1596 = vmatpush1.bf16.msra.mxu1 %v5188_v6  ;;  %4065 = vmatpush3.bf16.msra.mxu0 %v4792_v33  ;;  %v5212_v33 = vld [vmem:[%s6069_s5 + $0x7c] ss:$12 sps:$4 sm:$0xff]  }
 0x438   : > { %1597 = vmatprep.subr.bf16.mxu1 %v5195_v52  ;;  %4066 = vmatprep.subr.bf16.mxu0 %v6114_v47 }
 0x439   : > { %1627 = vmatprep.mubr.bf16.mxu1 %v6115_v60  ;;  %4080 = vmatprep.mubr.msk.bf16.mxu0 %vm4548_vm1, %v6114_v47 }
 0x43b   : > { %1598 = vmatpush1.bf16.msra.mxu1 %v5205_v16  ;;  %4067 = vmatpush3.bf16.msra.mxu0 %v4817_v38  ;;  %v5226_v38 = vld [vmem:[%s6069_s5 + $0x64] ss:$12 sps:$4 sm:$0xff]  }
 0x43c   : > { %1599 = vmatprep.subr.bf16.mxu1 %v5212_v33  ;;  %4068 = vmatprep.subr.bf16.mxu0 %v6114_v47 }
 0x43f   : > { %1600 = vmatpush1.bf16.msra.mxu1 %v5219_v57  ;;  %4069 = vmatpush3.bf16.msra.mxu0 %v4833_v40  ;;  %v5240_v40 = vld [vmem:[%s6069_s5 + $0x4c] ss:$12 sps:$4 sm:$0xff]  }
 0x440   : > { %1601 = vmatprep.subr.bf16.mxu1 %v5226_v38  ;;  %4070 = vmatprep.subr.bf16.mxu0 %v6114_v47 }
 0x443   : > { %1602 = vmatpush1.bf16.msra.mxu1 %v5233_v63  ;;  %4071 = vmatpush3.bf16.msra.mxu0 %v4843_v41  ;;  %v5254_v41 = vld [vmem:[%s6069_s5 + $0x34] ss:$12 sps:$4 sm:$0xff]  }
 0x444   : > { %1603 = vmatprep.subr.bf16.mxu1 %v5240_v40  ;;  %4072 = vmatprep.subr.bf16.mxu0 %v6114_v47 }
 0x447   : > { %1604 = vmatpush1.bf16.msra.mxu1 %v5247_v58  ;;  %4073 = vmatpush3.bf16.msra.mxu0 %v4856_v42 }
 0x448   : > { %1605 = vmatprep.subr.bf16.mxu1 %v5254_v41  ;;  %4074 = vmatprep.subr.bf16.mxu0 %v6114_v47 }
 0x44b   : > { %1606 = vmatpush1.bf16.msra.mxu1 %v5261_v12  ;;  %4075 = vmatpush3.bf16.msra.mxu0 %v4866_v43 }
 0x44c   : > { %1607 = vmatprep.subr.bf16.mxu1 %v4798_v34  ;;  %4076 = vmatprep.subr.bf16.mxu0 %v6114_v47 }
 0x44f   : > { %1608 = vmatpush1.bf16.msra.mxu1 %v4806_v36  ;;  %4077 = vmatpush3.bf16.msra.mxu0 %v4875_v44 }
 0x450   : > { %1609 = vmatprep.subr.bf16.mxu1 %v4811_v37  ;;  %4078 = vmatprep.subr.bf16.mxu0 %v6114_v47 }
 0x453   : > { %1610 = vmatpush1.bf16.msra.mxu1 %v4826_v39  ;;  %4079 = vmatpush3.bf16.msra.mxu0 %v4886_v45 }
 0x454   : > { %1698 = vmatprep.subr.bf16.mxu1 %v5170_v13  ;;  %4084 = vmatprep.subr.bf16.mxu0 %v6114_v47 }
 0x4f6   : > { %v1526_v56 = vpop.f32.mrf.mxu1  ;;  %v1567_v34 = vpop.f32.mrf.mxu0 }
 0x4f7   : > { %v1527_v61 = vadd.f32 %v1526_v56, %v5014_v28  ;;  %v1568_v35 = vadd.f32 %v1567_v34, %v5035_v48 }
 0x4f8   : > { %v1528_v15 = vpop.f32.mrf.mxu1  ;;  %v4062_v36 = vpop.f32.mrf.mxu0 }
 0x4f9   : > { %v1573_v18 = vadd.f32 %v1527_v61, %v4984_v46  ;;  %v1529_v23 = vadd.f32 %v1528_v15, %v5025_v5 }
 0x4fa   : > { %v1530_v19 = vpop.f32.mrf.mxu1  ;;  %v1570_v37 = vpop.f32.mrf.mxu0 }
 0x4fb   : > { %v3645_v21 = vmul.f32 -1.442695, %v1573_v18  ;;  %v1580_v27 = vadd.f32 %v1529_v23, %v4990_v8 }
 0x4fc   : > { %v1531_v39 = vpop.f32.mrf.mxu1  ;;  %v4063_v26 = vpop.f32.mrf.mxu0 }
 0x4fd   : > { %4448 = vpow2.f32 %v3645_v21  ;;  %v3646_v30 = vmul.f32 -1.442695, %v1580_v27 }
 0x4ff   : > { %4450 = vpow2.f32 %v3646_v30 }
 0x50a   : > { %v4449_v31 = vpop.eup %4448 }
 0x50b   : > { %v1577_v32 = vadd.f32 1.0, %v4449_v31 }
 0x50c   : > { %v4451_v49 = vpop.eup %4450 }
 0x50d   : > { %4452 = vrcp.f32 %v1577_v32  ;;  %v1584_v0 = vadd.f32 1.0, %v4451_v49 }
 0x50f   : > { %4454 = vrcp.f32 %v1584_v0 }
 0x51a   : > { %v4453_v46 = vpop.eup %4452 }
 0x51b   : > { %v1587_v9 = vmul.f32 %v4453_v46, %v1568_v35 }
 0x51c   : > { %v4455_v62 = vpop.eup %4454 }
 0x51d   : > { %v1588_v2 = vadd.f32 %v1587_v9, %v5021_v3  ;;  %v1590_v53 = vsub.f32 1.0, %v4455_v62  ;;  %v1592_v8 = vmul.f32 %v4455_v62, %v5181_v7  ;;  %v5290_v3 = vld [vmem:[%s6069_s5 + $0xb0] ss:$12 sps:$4 sm:$0xff]  }
 0x51f   : > { %4456 = vtanh.f32 %v1588_v2 }
 0x52c   : > { %v4457_v1 = vpop.eup %4456 }
 0x52d   : > { %v1591_v10 = vmul.f32 %v4457_v1, %v1590_v53 }
 0x52f   : > { %v5282_v17 = vadd.f32 %v1592_v8, %v1591_v10  ;;  %v6116_v10 = vld [vmem:[#allocation21_spill] sm:$0xff] }
 0x531   : > { %v1594_v51 = vpack.c.bf16 %v5282_v17, %v5282_v17 }
 0x533   : > { %1628 = vmatmul.mubr.bf16.vlgmr.msra.gmra.mxu1 %v1594_v51  ;;  %4081 = vmatmul.mubr.bf16.vlgmr.msra.gmra.mxu0 %v1594_v51 }
 0x534   : > { %1699 = vmatpush1.bf16.msra.mxu1 %v5188_v6  ;;  %4085 = vmatpush3.bf16.msra.mxu0 %v5290_v3 }
 0x535   : > { %1700 = vmatprep.subr.bf16.mxu1 %v5195_v52  ;;  %4086 = vmatprep.subr.bf16.mxu0 %v6114_v47 }
 0x536   : > { %1730 = vmatprep.mubr.bf16.mxu1 %v6115_v60  ;;  %4100 = vmatprep.mubr.msk.bf16.mxu0 %vm4548_vm1, %v6114_v47 }
 0x538   : > { %1701 = vmatpush1.bf16.msra.mxu1 %v5205_v16  ;;  %4087 = vmatpush3.bf16.msra.mxu0 %v5302_v54 }
 0x539   : > { %1702 = vmatprep.subr.bf16.mxu1 %v5212_v33  ;;  %4088 = vmatprep.subr.bf16.mxu0 %v6114_v47 }
 0x53c   : > { %1703 = vmatpush1.bf16.msra.mxu1 %v5219_v57  ;;  %4089 = vmatpush3.bf16.msra.mxu0 %v5311_v14 }
 0x53d   : > { %1704 = vmatprep.subr.bf16.mxu1 %v5226_v38  ;;  %4090 = vmatprep.subr.bf16.mxu0 %v6114_v47 }
 0x540   : > { %1705 = vmatpush1.bf16.msra.mxu1 %v5233_v63  ;;  %4091 = vmatpush3.bf16.msra.mxu0 %v5320_v11 }
 0x541   : > { %1706 = vmatprep.subr.bf16.mxu1 %v5240_v40  ;;  %4092 = vmatprep.subr.bf16.mxu0 %v6114_v47 }
 0x544   : > { %1707 = vmatpush1.bf16.msra.mxu1 %v5247_v58  ;;  %4093 = vmatpush3.bf16.msra.mxu0 %v4856_v42  ;;  %v5341_v42 = vld [vmem:[%s6069_s5 + $0x18] ss:$12 sps:$4 sm:$0xff]  }
 0x545   : > { %1708 = vmatprep.subr.bf16.mxu1 %v5254_v41  ;;  %4094 = vmatprep.subr.bf16.mxu0 %v6114_v47 }
 0x548   : > { %1709 = vmatpush1.bf16.msra.mxu1 %v5261_v12  ;;  %4095 = vmatpush3.bf16.msra.mxu0 %v4866_v43  ;;  %v5348_v43 = vld [vmem:[%s6069_s5 + $0x4] ss:$12 sps:$4 sm:$0xff]  }
 0x549   : > { %1710 = vmatprep.subr.bf16.mxu1 %v5334_v22  ;;  %4096 = vmatprep.subr.bf16.mxu0 %v6114_v47 }
 0x54c   : > { %1711 = vmatpush1.bf16.msra.mxu1 %v5341_v42  ;;  %4097 = vmatpush3.bf16.msra.mxu0 %v4875_v44 }
 0x54d   : > { %1712 = vmatprep.subr.bf16.mxu1 %v5348_v43  ;;  %4098 = vmatprep.subr.bf16.mxu0 %v6114_v47 }
 0x550   : > { %1713 = vmatpush1.bf16.msra.mxu1 %v5355_v59  ;;  %4099 = vmatpush3.bf16.msra.mxu0 %v4886_v45 }
 0x551   : > { %1801 = vmatprep.subr.bf16.mxu1 %v5170_v13  ;;  %4104 = vmatprep.subr.bf16.mxu0 %v6114_v47 }
 0x5f3   : > { %v1629_v44 = vpop.f32.mrf.mxu1  ;;  %v1670_v25 = vpop.f32.mrf.mxu0 }
 0x5f4   : > { %v1630_v7 = vadd.f32 %v1629_v44, %v5014_v28  ;;  %v1671_v27 = vadd.f32 %v1670_v25, %v5035_v48 }
 0x5f5   : > { %v1631_v4 = vpop.f32.mrf.mxu1  ;;  %v4082_v56 = vpop.f32.mrf.mxu0 }
 0x5f6   : > { %v1676_v34 = vadd.f32 %v1630_v7, %v4992_v29  ;;  %v1632_v18 = vadd.f32 %v1631_v4, %v5025_v5 }
 0x5f7   : > { %v1633_v61 = vpop.f32.mrf.mxu1  ;;  %v1673_v15 = vpop.f32.mrf.mxu0 }
 0x5f8   : > { %v3647_v36 = vmul.f32 -1.442695, %v1676_v34  ;;  %v1683_v45 = vadd.f32 %v1632_v18, %v4997_v50  ;;  %v4338_v61 = vld [vmem:[%s6074_s10 + $0xe4] ss:$16 sps:$4 sm:$0xff]   ;;  %v4336_v15 = vld [vmem:[%s6074_s10 + $0xe0] ss:$16 sps:$4 sm:$0xff]  }
 0x5f9   : > { %v1634_v19 = vpop.f32.mrf.mxu1  ;;  %v4083_v37 = vpop.f32.mrf.mxu0  ;;  %v4339_v18 = vld [vmem:[%s6074_s10 + $0xe8] ss:$16 sps:$4 sm:$0xff]  }
 0x5fa   : > { %4458 = vpow2.f32 %v3647_v36  ;;  %v3648_v13 = vmul.f32 -1.442695, %v1683_v45  ;;  %v4341_v36 = vld [vmem:[%s6074_s10 + $0xec] ss:$16 sps:$4 sm:$0xff]   ;;  %v4342_v19 = vld [vmem:[%s6074_s10 + $0xc0] ss:$16 sps:$4 sm:$0xff]  }
 0x5fb   : > { %v4347_v37 = vld [vmem:[%s6074_s10 + $0xcc] ss:$16 sps:$4 sm:$0xff]   ;;  %v4345_v45 = vld [vmem:[%s6074_s10 + $0xc8] ss:$16 sps:$4 sm:$0xff]  }
 0x5fc   : > { %4460 = vpow2.f32 %v3648_v13  ;;  %v4350_v13 = vld [vmem:[%s6074_s10 + $0xa4] ss:$16 sps:$4 sm:$0xff]  }
 0x607   : > { %v4459_v21 = vpop.eup %4458 }
 0x608   : > { %v1680_v23 = vadd.f32 1.0, %v4459_v21  ;;  %v4348_v21 = vld [vmem:[%s6074_s10 + $0xa0] ss:$16 sps:$4 sm:$0xff]  }
 0x609   : > { %v4461_v39 = vpop.eup %4460 }
 0x60a   : > { %4462 = vrcp.f32 %v1680_v23  ;;  %v1687_v26 = vadd.f32 1.0, %v4461_v39  ;;  %v4353_v23 = vld [vmem:[%s6074_s10 + $0xac] ss:$16 sps:$4 sm:$0xff]   ;;  %v4351_v39 = vld [vmem:[%s6074_s10 + $0xa8] ss:$16 sps:$4 sm:$0xff]  }
 0x60c   : > { %4464 = vrcp.f32 %v1687_v26  ;;  %v4356_v26 = vld [vmem:[%s6074_s10 + $0x84] ss:$16 sps:$4 sm:$0xff]  }
 0x617   : > { %v4463_v29 = vpop.eup %4462 }
 0x618   : > { %v1690_v30 = vmul.f32 %v4463_v29, %v1671_v27  ;;  %v4354_v27 = vld [vmem:[%s6074_s10 + $0x80] ss:$16 sps:$4 sm:$0xff]   ;;  %v4359_v29 = vld [vmem:[%s6074_s10 + $0x8c] ss:$16 sps:$4 sm:$0xff]  }
 0x619   : > { %v4465_v32 = vpop.eup %4464 }
 0x61a   : > { %v1691_v31 = vadd.f32 %v1690_v30, %v5029_v24  ;;  %v1693_v49 = vsub.f32 1.0, %v4465_v32  ;;  %v1695_v50 = vmul.f32 %v4465_v32, %v5282_v17  ;;  %v4508_v24 = vld [vmem:[%s6069_s5 + $0x50] ss:$12 sps:$4 sm:$0xff]   ;;  %v4357_v30 = vld [vmem:[%s6074_s10 + $0x88] ss:$16 sps:$4 sm:$0xff]  }
 0x61b   : > { %v4362_v32 = vld [vmem:[%s6074_s10 + $0x64] ss:$16 sps:$4 sm:$0xff]  }
 0x61c   : > { %4466 = vtanh.f32 %v1691_v31  ;;  %v4360_v31 = vld [vmem:[%s6074_s10 + $0x60] ss:$16 sps:$4 sm:$0xff]  }
 0x629   : > { %v4467_v0 = vpop.eup %4466 }
 0x62a   : > { %v1694_v35 = vmul.f32 %v4467_v0, %v1693_v49  ;;  %v4363_v49 = vld [vmem:[%s6074_s10 + $0x68] ss:$16 sps:$4 sm:$0xff]   ;;  %v4365_v0 = vld [vmem:[%s6074_s10 + $0x6c] ss:$16 sps:$4 sm:$0xff]  }
 0x62c   : > { %v5368_v46 = vadd.f32 %v1695_v50, %v1694_v35  ;;  %v4368_v35 = vld [vmem:[%s6074_s10 + $0x44] ss:$16 sps:$4 sm:$0xff]   ;;  %v4371_v50 = vld [vmem:[%s6074_s10 + $0x4c] ss:$16 sps:$4 sm:$0xff]  }
 0x62e   : > { %v1697_v9 = vpack.c.bf16 %v5368_v46, %v5368_v46 }
 0x630   : > { %1731 = vmatmul.mubr.bf16.vlgmr.msra.gmra.mxu1 %v1697_v9  ;;  %4101 = vmatmul.mubr.bf16.vlgmr.msra.gmra.mxu0 %v1697_v9  ;;  %v4369_v9 = vld [vmem:[%s6074_s10 + $0x48] ss:$16 sps:$4 sm:$0xff]  }
 0x631   : > { %1802 = vmatpush1.bf16.msra.mxu1 %v5188_v6  ;;  %4105 = vmatpush3.bf16.msra.mxu0 %v5290_v3  ;;  %v4509_v6 = vld [vmem:[%s6069_s5 + $0x38] ss:$12 sps:$4 sm:$0xff]  }
 0x632   : > { %1803 = vmatprep.subr.bf16.mxu1 %v5195_v52  ;;  %4106 = vmatprep.subr.bf16.mxu0 %v6114_v47  ;;  %v4510_v52 = vld [vmem:[%s6069_s5 + $0x20] ss:$12 sps:$4 sm:$0xff]  }
 0x633   : > { %1833 = vmatprep.mubr.bf16.mxu1 %v6115_v60  ;;  %4120 = vmatprep.mubr.msk.bf16.mxu0 %vm4548_vm1, %v6114_v47 }
 0x635   : > { %1804 = vmatpush1.bf16.msra.mxu1 %v5205_v16  ;;  %4107 = vmatpush3.bf16.msra.mxu0 %v5302_v54  ;;  %v4511_v16 = vld [vmem:[%s6069_s5 + $0x8] ss:$12 sps:$4 sm:$0xff]  }
 0x636   : > { %1805 = vmatprep.subr.bf16.mxu1 %v5212_v33  ;;  %4108 = vmatprep.subr.bf16.mxu0 %v6114_v47 }
 0x639   : > { %1806 = vmatpush1.bf16.msra.mxu1 %v5219_v57  ;;  %4109 = vmatpush3.bf16.msra.mxu0 %v5311_v14 }
 0x63a   : > { %1807 = vmatprep.subr.bf16.mxu1 %v5226_v38  ;;  %4110 = vmatprep.subr.bf16.mxu0 %v6114_v47 }
 0x63d   : > { %1808 = vmatpush1.bf16.msra.mxu1 %v5233_v63  ;;  %4111 = vmatpush3.bf16.msra.mxu0 %v5320_v11 }
 0x63e   : > { %1809 = vmatprep.subr.bf16.mxu1 %v5240_v40  ;;  %4112 = vmatprep.subr.bf16.mxu0 %v6114_v47 }
 0x641   : > { %1810 = vmatpush1.bf16.msra.mxu1 %v5247_v58  ;;  %4113 = vmatpush3.bf16.msra.mxu0 %v4508_v24  ;;  %v4374_v24 = vld [vmem:[%s6074_s10 + $0x24] ss:$16 sps:$4 sm:$0xff]  }
 0x642   : > { %1811 = vmatprep.subr.bf16.mxu1 %v5254_v41  ;;  %4114 = vmatprep.subr.bf16.mxu0 %v6114_v47 }
 0x645   : > { %1812 = vmatpush1.bf16.msra.mxu1 %v5261_v12  ;;  %4115 = vmatpush3.bf16.msra.mxu0 %v4509_v6  ;;  %v4377_v6 = vld [vmem:[%s6074_s10 + $0x2c] ss:$16 sps:$4 sm:$0xff]  }
 0x646   : > { %1813 = vmatprep.subr.bf16.mxu1 %v5334_v22  ;;  %4116 = vmatprep.subr.bf16.mxu0 %v6114_v47 }
 0x649   : > { %1814 = vmatpush1.bf16.msra.mxu1 %v5341_v42  ;;  %4117 = vmatpush3.bf16.msra.mxu0 %v4510_v52  ;;  %v6117_v42 = vld [vmem:[#allocation23_spill] sm:$0xff]  ;;  %v4372_v52 = vld [vmem:[%s6074_s10 + $0x20] ss:$16 sps:$4 sm:$0xff]  }
 0x64a   : > { %1815 = vmatprep.subr.bf16.mxu1 %v5348_v43  ;;  %4118 = vmatprep.subr.bf16.mxu0 %v6114_v47 }
 0x64d   : > { %1816 = vmatpush1.bf16.msra.mxu1 %v5355_v59  ;;  %4119 = vmatpush3.bf16.msra.mxu0 %v4511_v16  ;;  %v4375_v16 = vld [vmem:[%s6074_s10 + $0x28] ss:$16 sps:$4 sm:$0xff]  }
 0x64e   : > { %2118 = vmatprep.subr.bf16.mxu1 %v4338_v61  ;;  %2159 = vmatprep.subr.bf16.mxu0 %v4341_v36  ;;  %v6121_v61 = vld [vmem:[#allocation8_spill] sm:$0xff] }
 0x64f   : > { %v6122_v36 = vld [vmem:[#allocation12_spill] sm:$0xff] }
 0x6f0   : > { %v1732_v33 = vpop.f32.mrf.mxu1  ;;  %v1773_v57 = vpop.f32.mrf.mxu0 }
 0x6f1   : > { %v1733_v38 = vadd.f32 %v1732_v33, %v5014_v28  ;;  %v1774_v11 = vadd.f32 %v1773_v57, %v5035_v48  ;;  %v4380_v33 = vld [vmem:[%s6074_s10 + $0x4] ss:$16 sps:$4 sm:$0xff]   ;;  %v4383_v57 = vld [vmem:[%s6074_s10 + $0xc] ss:$16 sps:$4 sm:$0xff]  }
 0x6f2   : > { %v1734_v63 = vpop.f32.mrf.mxu1  ;;  %v4102_v40 = vpop.f32.mrf.mxu0 }
 0x6f3   : > { %v1779_v58 = vadd.f32 %v1733_v38, %v4999_v55  ;;  %v1735_v62 = vadd.f32 %v1734_v63, %v5025_v5  ;;  %v4378_v38 = vld [vmem:[%s6074_s10] ss:$16 sps:$4 sm:$0xff]   ;;  %v4381_v63 = vld [vmem:[%s6074_s10 + $0x8] ss:$16 sps:$4 sm:$0xff]  }
 0x6f4   : > { %v1736_v41 = vpop.f32.mrf.mxu1  ;;  %v1776_v12 = vpop.f32.mrf.mxu0  ;;  %v4384_v40 = vld [vmem:[%s6072_s8 + $0x38] sm:$0xff]  }
 0x6f5   : > { %v3649_v2 = vmul.f32 -1.442695, %v1779_v58  ;;  %v1786_v8 = vadd.f32 %v1735_v62, %v6116_v10 }
 0x6f6   : > { %v1737_v53 = vpop.f32.mrf.mxu1  ;;  %v4103_v1 = vpop.f32.mrf.mxu0 }
 0x6f7   : > { %4468 = vpow2.f32 %v3649_v2  ;;  %v3650_v17 = vmul.f32 -1.442695, %v1786_v8  ;;  %v6118_v53 = vld [vmem:[#allocation22_spill] sm:$0xff] }
 0x6f9   : > { %4470 = vpow2.f32 %v3650_v17 }
 0x704   : > { %v4469_v51 = vpop.eup %4468 }
 0x705   : > { %v1783_v3 = vadd.f32 1.0, %v4469_v51 }
 0x706   : > { %v4471_v54 = vpop.eup %4470 }
 0x707   : > { %4472 = vrcp.f32 %v1783_v3  ;;  %v1790_v14 = vadd.f32 1.0, %v4471_v54 }
 0x709   : > { %4474 = vrcp.f32 %v1790_v14  ;;  %v6119_v14 = vld [vmem:[#allocation24_spill] sm:$0xff] }
 0x714   : > { %v4473_v55 = vpop.eup %4472 }
 0x715   : > { %v1793_v22 = vmul.f32 %v4473_v55, %v1774_v11 }
 0x716   : > { %v4475_v59 = vpop.eup %4474 }
 0x717   : > { %v1794_v43 = vadd.f32 %v1793_v22, %v6117_v42  ;;  %v1796_v44 = vsub.f32 1.0, %v4475_v59  ;;  %v1798_v4 = vmul.f32 %v4475_v59, %v5368_v46  ;;  %v4366_v46 = vld [vmem:[%s6074_s10 + $0x40] ss:$16 sps:$4 sm:$0xff]  }
 0x719   : > { %4476 = vtanh.f32 %v1794_v43 }
 0x726   : > { %v4477_v25 = vpop.eup %4476 }
 0x727   : > { %v1797_v7 = vmul.f32 %v4477_v25, %v1796_v44 }
 0x729   : > { %v5420_v56 = vadd.f32 %v1798_v4, %v1797_v7  ;;  %v6120_v7 = vld [vmem:[#allocation25_spill] sm:$0xff] }
 0x72b   : > { %v1800_v34 = vpack.c.bf16 %v5420_v56, %v5420_v56 }
 0x72d   : > { %1834 = vmatmul.mubr.bf16.vlgmr.msra.gmra.mxu1 %v1800_v34  ;;  %4121 = vmatmul.mubr.bf16.vlgmr.msra.gmra.mxu0 %v1800_v34  ;;  %v5534_v34 = vld [vmem:[%s6066_s2] ss:$0 sm:$0xff] }
 0x72e   : > { %2150 = vmatprep.mubr.bf16.mxu1 %v6115_v60  ;;  %2191 = vmatprep.mubr.bf16.mxu0 %v6115_v60  ;;  %v4344_v60 = vld [vmem:[%s6074_s10 + $0xc4] ss:$16 sps:$4 sm:$0xff]  }
 0x72f   : > { %2119 = vmatpush1.bf16.msra.mxu1 %v4336_v15  ;;  %2160 = vmatpush1.bf16.msra.mxu0 %v4339_v18  ;;  %v5538_v15 = vadd.f32 %v5534_v34, %v6121_v61  ;;  %v5542_v18 = vadd.f32 %v5534_v34, %v6122_v36 }
 0x730   : > { %2120 = vmatprep.subr.bf16.mxu1 %v4344_v60  ;;  %2161 = vmatprep.subr.bf16.mxu0 %v4347_v37 }
 0x733   : > { %2121 = vmatpush1.bf16.msra.mxu1 %v4342_v19  ;;  %2162 = vmatpush1.bf16.msra.mxu0 %v4345_v45  ;;  %v652_v45 = vmax.f32 %v5538_v15, 0.0 }
 0x734   : > { %2122 = vmatprep.subr.bf16.mxu1 %v4350_v13  ;;  %2163 = vmatprep.subr.bf16.mxu0 %v4353_v23  ;;  %v653_v13 = vmax.f32 %v5542_v18, 0.0 }
 0x737   : > { %2123 = vmatpush1.bf16.msra.mxu1 %v4348_v21  ;;  %2164 = vmatpush1.bf16.msra.mxu0 %v4351_v39  ;;  %v4385_v39 = vld [vmem:[%s6072_s8 + $0x30] sm:$0xff]  }
 0x738   : > { %2124 = vmatprep.subr.bf16.mxu1 %v4356_v26  ;;  %2165 = vmatprep.subr.bf16.mxu0 %v4359_v29  ;;  %v2200_v26 = vpack.c.bf16 %v653_v13, %v652_v45  ;;  %v4388_v29 = vld [vmem:[%s6072_s8 + $0x18] sm:$0xff]  }
 0x73b   : > { %2125 = vmatpush1.bf16.msra.mxu1 %v4354_v27  ;;  %2166 = vmatpush1.bf16.msra.mxu0 %v4357_v30  ;;  %v4387_v27 = vld [vmem:[%s6072_s8 + $0x20] sm:$0xff]   ;;  %v4389_v30 = vld [vmem:[%s6072_s8 + $0x10] sm:$0xff]  }
 0x73c   : > { %2126 = vmatprep.subr.bf16.mxu1 %v4362_v32  ;;  %2167 = vmatprep.subr.bf16.mxu0 %v4365_v0  ;;  %v6123_v32 = vld [vmem:[#allocation6_spill] sm:$0xff] }
 0x73d   : > { %v6124_v0 = vld [vmem:[#allocation10_spill] sm:$0xff] }
 0x73f   : > { %2127 = vmatpush1.bf16.msra.mxu1 %v4360_v31  ;;  %2168 = vmatpush1.bf16.msra.mxu0 %v4363_v49  ;;  %v4390_v31 = vld [vmem:[%s6072_s8 + $0x8] sm:$0xff]   ;;  %v5571_v49 = vadd.f32 %v6123_v32, %v5534_v34  ;;  %v4549_v32 = vmov 1966171168  }
 0x740   : > { %2128 = vmatprep.subr.bf16.mxu1 %v4368_v35  ;;  %2169 = vmatprep.subr.bf16.mxu0 %v4371_v50  ;;  %v5575_v35 = vadd.f32 %v6124_v0, %v5534_v34  ;;  %v4391_v50 = vld [vmem:[%s6072_s8] sm:$0xff]   ;;  %v2378_v0 = vunpack.c.l.s4 %v4549_v32 }
 0x743   : > { %2129 = vmatpush1.bf16.msra.mxu1 %v4366_v46  ;;  %2170 = vmatpush1.bf16.msra.mxu0 %v4369_v9  ;;  %v6125_v46 = vld [vmem:[#allocation14_spill] sm:$0xff] }
 0x744   : > { %2130 = vmatprep.subr.bf16.mxu1 %v4374_v24  ;;  %2171 = vmatprep.subr.bf16.mxu0 %v4377_v6  ;;  %v5582_v9 = vadd.f32 %v5534_v34, %v6125_v46  ;;  %v6126_v24 = vld [vmem:[#allocation16_spill] sm:$0xff]  ;;  %v2379_v46 = vunpack.c.0.s8 %v2378_v0 }
 0x745   : > { %v5586_v6 = vadd.f32 %v5534_v34, %v6126_v24  ;;  %v6137_v24 = vld [vmem:[#allocation4_spill] sm:$0xff] }
 0x747   : > { %2131 = vmatpush1.bf16.msra.mxu1 %v4372_v52  ;;  %2172 = vmatpush1.bf16.msra.mxu0 %v4375_v16  ;;  %v654_v52 = vmax.f32 %v5571_v49, 0.0  ;;  %v655_v16 = vmax.f32 %v5575_v35, 0.0 }
 0x748   : > { %2132 = vmatprep.subr.bf16.mxu1 %v4380_v33  ;;  %2173 = vmatprep.subr.bf16.mxu0 %v4383_v57  ;;  %v656_v33 = vmax.f32 %v5582_v9, 0.0  ;;  %v657_v57 = vmax.f32 %v5586_v6, 0.0 }
 0x74b   : > { %2133 = vmatpush1.bf16.msra.mxu1 %v4378_v38  ;;  %2174 = vmatpush1.bf16.msra.mxu0 %v4381_v63  ;;  %v2201_v38 = vpack.c.bf16 %v655_v16, %v654_v52  ;;  %v6127_v63 = vld [vmem:[#allocation13_spill] sm:$0xff] }
 0x74c   : > { %4124 = vmatprep.subr.bf16.mxu1 %v4384_v40 }
 0x7ed   : > { %v1835_v58 = vpop.f32.mrf.mxu1  ;;  %v1876_v41 = vpop.f32.mrf.mxu0 }
 0x7ee   : > { %v1836_v12 = vadd.f32 %v1835_v58, %v5014_v28  ;;  %v1877_v59 = vadd.f32 %v1876_v41, %v5035_v48  ;;  %v6128_v58 = vld [vmem:[#allocation15_spill] sm:$0xff] }
 0x7ef   : > { %v1837_v2 = vpop.f32.mrf.mxu1  ;;  %v4122_v62 = vpop.f32.mrf.mxu0  ;;  %v5602_v41 = vadd.f32 %v6128_v58, %v5534_v34  ;;  %v5703_v58 = vsub.s32 %v2379_v46, %v6137_v24 }
 0x7f0   : > { %v1882_v1 = vadd.f32 %v1836_v12, %v6118_v53  ;;  %v1838_v51 = vadd.f32 %v1837_v2, %v5025_v5  ;;  %v2202_v12 = vpack.c.bf16 %v657_v57, %v656_v33  ;;  %v6129_v2 = vld [vmem:[#allocation18_spill] sm:$0xff]  ;;  %v6130_v53 = vld [vmem:[#allocation20_spill] sm:$0xff] }
 0x7f1   : > { %v1839_v10 = vpop.f32.mrf.mxu1  ;;  %v1879_v8 = vpop.f32.mrf.mxu0  ;;  %v5611_v62 = vadd.f32 %v5534_v34, %v6129_v2 }
 0x7f2   : > { %v3651_v17 = vmul.f32 -1.442695, %v1882_v1  ;;  %v1889_v11 = vadd.f32 %v1838_v51, %v6119_v14  ;;  %v5615_v1 = vadd.f32 %v5534_v34, %v6130_v53  ;;  %v659_v8 = vmax.f32 %v5602_v41, 0.0 }
 0x7f3   : > { %v1840_v3 = vpop.f32.mrf.mxu1  ;;  %v4123_v54 = vpop.f32.mrf.mxu0 }
 0x7f4   : > { %4478 = vpow2.f32 %v3651_v17  ;;  %v3652_v55 = vmul.f32 -1.442695, %v1889_v11  ;;  %v660_v17 = vmax.f32 %v5611_v62, 0.0  ;;  %v661_v51 = vmax.f32 %v5615_v1, 0.0  ;;  %v6131_v54 = vld [vmem:[#allocation17_spill] sm:$0xff]  ;;  %v6132_v11 = vld [vmem:[#allocation19_spill] sm:$0xff] }
 0x7f5   : > { %v5627_v14 = vadd.f32 %v6131_v54, %v5534_v34 }
 0x7f6   : > { %4480 = vpow2.f32 %v3652_v55  ;;  %v5631_v55 = vadd.f32 %v6132_v11, %v5534_v34 }
 0x801   : > { %v4479_v22 = vpop.eup %4478 }
 0x802   : > { %v1886_v42 = vadd.f32 1.0, %v4479_v22  ;;  %v6133_v22 = vld [vmem:[#allocation7_spill] sm:$0xff] }
 0x803   : > { %v4481_v28 = vpop.eup %4480 }
 0x804   : > { %4482 = vrcp.f32 %v1886_v42  ;;  %v1893_v43 = vadd.f32 1.0, %v4481_v28  ;;  %v5635_v42 = vadd.f32 %v5534_v34, %v6133_v22  ;;  %v2204_v28 = vpack.c.bf16 %v661_v51, %v660_v17 }
 0x806   : > { %4484 = vrcp.f32 %v1893_v43  ;;  %v6134_v43 = vld [vmem:[#allocation3_spill] sm:$0xff] }
 0x811   : > { %v4483_v44 = vpop.eup %4482 }
 0x812   : > { %v1896_v25 = vmul.f32 %v4483_v44, %v1877_v59  ;;  %v5643_v59 = vadd.f32 %v5534_v34, %v6134_v43  ;;  %v662_v44 = vmax.f32 %v5627_v14, 0.0 }
 0x813   : > { %v4485_v5 = vpop.eup %4484 }
 0x814   : > { %v1897_v4 = vadd.f32 %v1896_v25, %v6120_v7  ;;  %v1899_v48 = vsub.f32 1.0, %v4485_v5  ;;  %v1901_v37 = vmul.f32 %v4485_v5, %v5420_v56  ;;  %v4386_v56 = vld [vmem:[%s6072_s8 + $0x28] sm:$0xff]   ;;  %v663_v25 = vmax.f32 %v5631_v55, 0.0  ;;  %v6135_v5 = vld [vmem:[#allocation5_spill] sm:$0xff] }
 0x815   : > { %v665_v7 = vmax.f32 %v5635_v42, 0.0  ;;  %v5651_v61 = vadd.f32 %v6135_v5, %v5534_v34  ;;  %v4400_v42 = vld [vmem:[%s6076_s12 + $0x38] sm:$0xff]  }
 0x816   : > { %4486 = vtanh.f32 %v1897_v4  ;;  %v664_v4 = vmax.f32 %v5643_v59, 0.0  ;;  %v2205_v36 = vpack.c.bf16 %v663_v25, %v662_v44 }
 0x823   : > { %v4487_v60 = vpop.eup %4486 }
 0x824   : > { %v1900_v19 = vmul.f32 %v4487_v60, %v1899_v48  ;;  %v2206_v48 = vpack.c.bf16 %v665_v7, %v664_v4  ;;  %v6136_v60 = vld [vmem:[#allocation2_spill] sm:$0xff] }
 0x826   : > { %v1902_v21 = vadd.f32 %v1901_v37, %v1900_v19  ;;  %v5663_v19 = vadd.f32 %v6136_v60, %v5534_v34  ;;  %v6089_v37 = vmax.f32 %v5651_v61, 0.0 }
 0x828   : > { %v1903_v23 = vpack.c.bf16 %v1902_v21, %v1902_v21  ;;  %v6088_v21 = vmax.f32 %v5663_v19, 0.0 }
 0x82a   : > { %2151 = vmatmul.mubr.bf16.vlgmr.msra.gmra.mxu1 %v1903_v23  ;;  %2192 = vmatmul.mubr.bf16.vlgmr.msra.gmra.mxu0 %v1903_v23  ;;  %v2207_v23 = vpack.c.bf16 %v6089_v37, %v6088_v21 }
 0x82b   : > { %4125 = vmatpush3.bf16.msra.mxu1 %v4384_v40  ;;  %4140 = vmatprep.mubr.bf16.mxu1 %v2200_v26  ;;  %v5598_v40 = vadd.f32 %v6127_v63, %v5534_v34  ;;  %v4392_v34 = vld [vmem:[%s6072_s8 + $0x78] sm:$0xff]   ;;  %v4394_v26 = vld [vmem:[%s6072_s8 + $0x68] sm:$0xff]  }
 0x82c   : > { %4126 = vmatprep.subr.bf16.mxu1 %v4385_v39  ;;  %4156 = vmatprep.subr.bf16.mxu0 %v4392_v34 }
 0x82d   : > { %v658_v10 = vmax.f32 %v5598_v40, 0.0  ;;  %4157 = vmatpush3.bf16.msra.mxu0 %v4392_v34 }
 0x82f   : > { %4127 = vmatpush3.bf16.msra.mxu1 %v4385_v39  ;;  %v2203_v3 = vpack.c.bf16 %v659_v8, %v658_v10  ;;  %v4393_v39 = vld [vmem:[%s6072_s8 + $0x70] sm:$0xff]  }
 0x830   : > { %4128 = vmatprep.subr.bf16.mxu1 %v4386_v56  ;;  %4158 = vmatprep.subr.bf16.mxu0 %v4393_v39 }
 0x831   : > { %4159 = vmatpush3.bf16.msra.mxu0 %v4393_v39 }
 0x832   : > { %4160 = vmatprep.subr.bf16.mxu0 %v4394_v26 }
 0x833   : > { %4129 = vmatpush3.bf16.msra.mxu1 %v4386_v56  ;;  %v4395_v56 = vld [vmem:[%s6072_s8 + $0x60] sm:$0xff]  }
 0x834   : > { %4130 = vmatprep.subr.bf16.mxu1 %v4387_v27 }
 0x835   : > { %4161 = vmatpush3.bf16.msra.mxu0 %v4394_v26 }
 0x836   : > { %4162 = vmatprep.subr.bf16.mxu0 %v4395_v56 }
 0x837   : > { %4131 = vmatpush3.bf16.msra.mxu1 %v4387_v27  ;;  %v4396_v27 = vld [vmem:[%s6072_s8 + $0x58] sm:$0xff]  }
 0x838   : > { %4132 = vmatprep.subr.bf16.mxu1 %v4388_v29 }
 0x839   : > { %4163 = vmatpush3.bf16.msra.mxu0 %v4395_v56 }
 0x83a   : > { %4164 = vmatprep.subr.bf16.mxu0 %v4396_v27 }
 0x83b   : > { %4133 = vmatpush3.bf16.msra.mxu1 %v4388_v29  ;;  %v4397_v29 = vld [vmem:[%s6072_s8 + $0x50] sm:$0xff]  }
 0x83c   : > { %4134 = vmatprep.subr.bf16.mxu1 %v4389_v30 }
 0x83d   : > { %4165 = vmatpush3.bf16.msra.mxu0 %v4396_v27  ;;  %v6138_v27 = vld [vmem:[#allocation9_spill] sm:$0xff] }
 0x83e   : > { %4166 = vmatprep.subr.bf16.mxu0 %v4397_v29 }
 0x83f   : > { %4135 = vmatpush3.bf16.msra.mxu1 %v4389_v30  ;;  %v4398_v30 = vld [vmem:[%s6072_s8 + $0x48] sm:$0xff]  }
 0x840   : > { %4136 = vmatprep.subr.bf16.mxu1 %v4390_v31 }
 0x841   : > { %4167 = vmatpush3.bf16.msra.mxu0 %v4397_v29 }
 0x842   : > { %4168 = vmatprep.subr.bf16.mxu0 %v4398_v30 }
 0x843   : > { %4137 = vmatpush3.bf16.msra.mxu1 %v4390_v31  ;;  %v4399_v31 = vld [vmem:[%s6072_s8 + $0x40] sm:$0xff]  }
 0x844   : > { %4138 = vmatprep.subr.bf16.mxu1 %v4391_v50 }
 0x845   : > { %4169 = vmatpush3.bf16.msra.mxu0 %v4398_v30 }
 0x846   : > { %4170 = vmatprep.subr.bf16.mxu0 %v4399_v31 }
 0x847   : > { %4139 = vmatpush3.bf16.msra.mxu1 %v4391_v50  ;;  %v1936_v50 = vld [vmem:[%s6075_s11] sm:$0xf] }
 0x848   : > { %4188 = vmatprep.subr.bf16.mxu1 %v6114_v47  ;;  %v1949_v63 = vrot.slane %v1936_v50, %v4975_v20  ;;  %v1941_v29 = vrot.slane %v1936_v50, %v6138_v27 }
 0x849   : > { %4171 = vmatpush3.bf16.msra.mxu0 %v4399_v31  ;;  %v6139_v31 = vld [vmem:[#allocation11_spill] sm:$0xff] }
 0x84a   : > { %4141 = vmatmul.mubr.bf16.vlgmr.msra.gmra.mxu1 %v2201_v38  ;;  %v1952_v38 = vsub.s32 3, %v6137_v24  ;;  %v1945_v32 = vrot.slane %v1936_v50, %v6139_v31 }
 0x84b   : > { %4144 = vmatprep.mubr.bf16.mxu1 %v2202_v12  ;;  %4189 = vmatpush3.bf16.msra.mxu1 %v4400_v42 }
 0x84c   : > { %v1953_v12 = vrot.slane %v1936_v50, %v1952_v38  ;;  %4190 = vmatprep.subr.bf16.mxu1 %v6114_v47 }
 0x852   : > { %4145 = vmatmul.mubr.bf16.gmra.mxu1 %v2203_v3 }
 0x853   : > { %4148 = vmatprep.mubr.bf16.mxu1 %v2204_v28 }
 0x85a   : > { %4149 = vmatmul.mubr.bf16.gmra.mxu1 %v2205_v36 }
 0x85b   : > { %4152 = vmatprep.mubr.bf16.mxu1 %v2206_v48 }
 0x862   : > { %4153 = vmatmul.mubr.bf16.gmra.mxu1 %v2207_v23 }
 0x863   : > { %4204 = vmatprep.mubr.msk.bf16.mxu1 %vm4548_vm1, %v6114_v47 }
 0x8ea   : > { %v2152_v2 = vpop.f32.mrf.mxu1  ;;  %v2193_v53 = vpop.f32.mrf.mxu0 }
 0x8eb   : > { %v2194_v3 = vadd.f32 %v2193_v53, %v1949_v63  ;;  %v2153_v30 = vadd.f32 %v2152_v2, %v1941_v29  ;;  %v5733_v63 = vld [vmem:[%s6073_s9] ss:$0 sm:$0xff] }
 0x8ec   : > { %v2154_v54 = vpop.f32.mrf.mxu1  ;;  %v2195_v11 = vpop.f32.mrf.mxu0 }
 0x8ed   : > { %v5706_v22 = vrot.slane %v2194_v3, %v5703_v58  ;;  %v2196_v28 = vadd.f32 %v2195_v11, %v1953_v12  ;;  %v2383_v0 = vrot.slane %v2153_v30, %v5703_v58  ;;  %v2155_v46 = vadd.f32 %v2154_v54, %v1945_v32 }
 0x8ee   : > { %v2156_v43 = vpop.f32.mrf.mxu1  ;;  %v2197_v5 = vpop.f32.mrf.mxu0 }
 0x8ef   : > { %v2692_v36 = vcombine.high %v5706_v22, %v5706_v22  ;;  %v5713_v48 = vrot.slane %v2196_v28, %v5703_v58  ;;  %v2391_v24 = vrot.slane %v2383_v0, %v5703_v58  ;;  %v2432_v38 = vrot.slane %v2155_v46, %v5703_v58 }
 0x8f0   : > { %v2157_v60 = vpop.f32.mrf.mxu1  ;;  %v2198_v23 = vpop.f32.mrf.mxu0 }
 0x8f1   : > { %v5716_v34 = vrot.slane %v2692_v36, %v5703_v58  ;;  %v2741_v39 = vcombine.high %v5713_v48, %v5713_v48  ;;  %v2402_v3 = vrot.slane %v2391_v24, %v6138_v27  ;;  %v2440_v2 = vrot.slane %v2432_v38, %v5703_v58 }
 0x8f2   : > { %v2384_v24 = vcombine.high %v2383_v0, %v2383_v0 }
 0x8f3   : > { %v5723_v56 = vrot.slane %v2741_v39, %v5703_v58  ;;  %v2451_v36 = vrot.slane %v2440_v2, %v6138_v27 }
 0x90a   : > { %v4142_v12 = vpop.f32.mrf.mxu1 }
 0x90b   : > { %v2322_v53 = vadd.f32 %v4142_v12, %v5733_v63 }
 0x90c   : > { %v2313_v50 = vpop.f32.mrf.mxu1 }
 0x90d   : > { %v2314_v11 = vadd.f32 %v5733_v63, %v2313_v50  ;;  %v2411_v54 = vmul.f32 %v2402_v3, %v2322_v53 }
 0x90e   : > { %v4143_v28 = vpop.f32.mrf.mxu1 }
 0x90f   : > { %v2409_v43 = vmul.f32 %v2402_v3, %v2314_v11  ;;  %v2325_v5 = vadd.f32 %v4143_v28, %v5733_v63  ;;  %v2460_v29 = vadd.f32 %v2451_v36, %v2411_v54 }
 0x910   : > { %v2316_v60 = vpop.f32.mrf.mxu1 }
 0x911   : > { %v2412_v23 = vmul.f32 %v2402_v3, %v2325_v5  ;;  %v2317_v39 = vadd.f32 %v5733_v63, %v2316_v60  ;;  %v2458_v30 = vadd.f32 %v2451_v36, %v2409_v43  ;;  %v2476_v28 = vmax.f32 %v2460_v29, 0.0 }
 0x912   : > { %v4146_v31 = vpop.f32.mrf.mxu1  ;;  %v2398_v43 = vrot.slane %v2384_v24, %v5703_v58  ;;  %v2433_v60 = vcombine.high %v2432_v38, %v2432_v38 }
 0x913   : > { %v2461_v32 = vadd.f32 %v2451_v36, %v2412_v23  ;;  %v2410_v46 = vmul.f32 %v2402_v3, %v2317_v39  ;;  %v2338_v12 = vadd.f32 %v4146_v31, %v5733_v63  ;;  %v2474_v20 = vmax.f32 %v2458_v30, 0.0 }
 0x914   : > { %v2329_v50 = vpop.f32.mrf.mxu1  ;;  %v2447_v18 = vrot.slane %v2433_v60, %v5703_v58 }
 0x915   : > { %v2477_v53 = vmax.f32 %v2461_v32, 0.0  ;;  %v2459_v26 = vadd.f32 %v2451_v36, %v2410_v46  ;;  %v2330_v11 = vadd.f32 %v5733_v63, %v2329_v50  ;;  %v2415_v5 = vmul.f32 %v2402_v3, %v2338_v12 }
 0x916   : > { %v4147_v2 = vpop.f32.mrf.mxu1  ;;  %v5761_v38 = vadd.f32 %v2474_v20, %v652_v45  ;;  %v2406_v12 = vrot.slane %v2398_v43, %v6138_v27 }
 0x917   : > { %v2475_v21 = vmax.f32 %v2459_v26, 0.0  ;;  %v2413_v37 = vmul.f32 %v2402_v3, %v2330_v11  ;;  %v2341_v54 = vadd.f32 %v4147_v2, %v5733_v63  ;;  %v5748_v0 = vadd.f32 %v2477_v53, %v655_v16 }
 0x918   : > { %v2332_v23 = vpop.f32.mrf.mxu1  ;;  %v5757_v26 = vadd.f32 %v2476_v28, %v654_v52  ;;  %v2464_v35 = vadd.f32 %v2451_v36, %v2415_v5  ;;  %v2455_v2 = vrot.slane %v2447_v18, %v6138_v27 }
 0x919   : > { %v2416_v39 = vmul.f32 %v2402_v3, %v2341_v54  ;;  %v2333_v31 = vadd.f32 %v5733_v63, %v2332_v23  ;;  %v5753_v29 = vadd.f32 %v2475_v21, %v653_v13  ;;  %v2462_v30 = vadd.f32 %v2451_v36, %v2413_v37 }
 0x91a   : > { %v4150_v32 = vpop.f32.mrf.mxu1  ;;  %v2507_v15 = vpack.c.bf16 %v5748_v0, %v5757_v26  ;;  %v2480_v50 = vmax.f32 %v2464_v35, 0.0 }
 0x91b   : > { %v2465_v16 = vadd.f32 %v2451_v36, %v2416_v39  ;;  %v2414_v46 = vmul.f32 %v2402_v3, %v2333_v31  ;;  %v2354_v24 = vadd.f32 %v4150_v32, %v5733_v63  ;;  %v2506_v49 = vpack.c.bf16 %v5753_v29, %v5761_v38 }
 0x91c   : > { %v2345_v13 = vpop.f32.mrf.mxu1  ;;  %v2478_v45 = vmax.f32 %v2462_v30, 0.0  ;;  %v5789_v41 = vadd.f32 %v2480_v50, %v658_v10 }
 0x91d   : > { %v2481_v52 = vmax.f32 %v2465_v16, 0.0  ;;  %v2463_v37 = vadd.f32 %v2451_v36, %v2414_v46  ;;  %v2346_v21 = vadd.f32 %v5733_v63, %v2345_v13  ;;  %v2419_v20 = vmul.f32 %v2406_v12, %v2354_v24  ;;  %4172 = vmatprep.mubr.bf16.mxu0 %v2506_v49 }
 0x91e   : > { %v4151_v3 = vpop.f32.mrf.mxu1  ;;  %4173 = vmatmul.mubr.bf16.vlgmr.msra.gmra.mxu0 %v2507_v15  ;;  %v5780_v31 = vadd.f32 %v2478_v45, %v656_v33 }
 0x91f   : > { %v2479_v53 = vmax.f32 %v2463_v37, 0.0  ;;  %v2417_v11 = vmul.f32 %v2406_v12, %v2346_v21  ;;  %v2357_v28 = vadd.f32 %v4151_v3, %v5733_v63  ;;  %v5776_v43 = vadd.f32 %v2481_v52, %v659_v8 }
 0x920   : > { %v2348_v5 = vpop.f32.mrf.mxu1  ;;  %v2468_v60 = vadd.f32 %v2455_v2, %v2419_v20 }
 0x921   : > { %v2420_v54 = vmul.f32 %v2406_v12, %v2357_v28  ;;  %v2349_v36 = vadd.f32 %v5733_v63, %v2348_v5  ;;  %v2466_v23 = vadd.f32 %v2455_v2, %v2417_v11  ;;  %v5784_v30 = vadd.f32 %v2479_v53, %v657_v57 }
 0x922   : > { %v4154_v39 = vpop.f32.mrf.mxu1  ;;  %v2509_v6 = vpack.c.bf16 %v5776_v43, %v5789_v41  ;;  %v2484_v57 = vmax.f32 %v2468_v60, 0.0 }
 0x923   : > { %v2469_v32 = vadd.f32 %v2455_v2, %v2420_v54  ;;  %v2418_v35 = vmul.f32 %v2406_v12, %v2349_v36  ;;  %v2370_v16 = vadd.f32 %v4154_v39, %v5733_v63  ;;  %v2508_v46 = vpack.c.bf16 %v5784_v30, %v5780_v31  ;;  %v4406_v39 = vld [vmem:[%s6076_s12 + $0x8] sm:$0xff]  }
 0x924   : > { %v2361_v8 = vpop.f32.mrf.mxu1  ;;  %v2482_v18 = vmax.f32 %v2466_v23, 0.0  ;;  %v5812_v5 = vadd.f32 %v2484_v57, %v662_v44  ;;  %v6140_v44 = vmax.f32 %v5651_v61, 0.0  ;;  %v6141_v36 = vmax.f32 %v5663_v19, 0.0  ;;  %v4403_v61 = vld [vmem:[%s6076_s12 + $0x20] sm:$0xff]   ;;  %v4404_v19 = vld [vmem:[%s6076_s12 + $0x18] sm:$0xff]   ;;  %v4405_v23 = vld [vmem:[%s6076_s12 + $0x10] sm:$0xff]  }
 0x925   : > { %v2485_v24 = vmax.f32 %v2469_v32, 0.0  ;;  %v2467_v9 = vadd.f32 %v2455_v2, %v2418_v35  ;;  %v2362_v33 = vadd.f32 %v5733_v63, %v2361_v8  ;;  %4176 = vmatprep.mubr.bf16.mxu0 %v2508_v46  ;;  %v2423_v52 = vmul.f32 %v2406_v12, %v2370_v16  ;;  %v4407_v32 = vld [vmem:[%s6076_s12] sm:$0xff]  }
 0x926   : > { %v4155_v13 = vpop.f32.mrf.mxu1  ;;  %4177 = vmatmul.mubr.bf16.gmra.mxu0 %v2509_v6  ;;  %v5804_v3 = vadd.f32 %v2482_v18, %v660_v17  ;;  %v5872_v35 = vld [vmem:[%s6073_s9 + $0x1] ss:$0 sm:$0xff]  ;;  %v6142_v8 = vrot.slane %v5706_v22, %v5703_v58 }
 0x927   : > { %v2483_v49 = vmax.f32 %v2467_v9, 0.0  ;;  %v2421_v40 = vmul.f32 %v2406_v12, %v2362_v33  ;;  %v2373_v10 = vadd.f32 %v4155_v13, %v5733_v63  ;;  %v5800_v20 = vadd.f32 %v2485_v24, %v663_v25 }
 0x928   : > { %v2364_v37 = vpop.f32.mrf.mxu1  ;;  %v2472_v53 = vadd.f32 %v2455_v2, %v2423_v52  ;;  %v2710_v46 = vrot.slane %v6142_v8, %v6138_v27  ;;  %v6143_v33 = vrot.slane %v5713_v48, %v5703_v58 }
 0x929   : > { %v2470_v21 = vadd.f32 %v2455_v2, %v2421_v40  ;;  %v2424_v15 = vmul.f32 %v2406_v12, %v2373_v10  ;;  %v2365_v45 = vadd.f32 %v5733_v63, %v2364_v37  ;;  %v5808_v50 = vadd.f32 %v2483_v49, %v661_v51 }
 0x92a   : > { %v2511_v62 = vpack.c.bf16 %v5800_v20, %v5812_v5  ;;  %v2488_v1 = vmax.f32 %v2472_v53, 0.0 }
 0x92b   : > { %v2473_v11 = vadd.f32 %v2455_v2, %v2424_v15  ;;  %v2422_v28 = vmul.f32 %v2406_v12, %v2365_v45  ;;  %v2510_v55 = vpack.c.bf16 %v5808_v50, %v5804_v3  ;;  %v2486_v25 = vmax.f32 %v2470_v21, 0.0 }
 0x92c   : > { %v5834_v60 = vadd.f32 %v2488_v1, %v6141_v36 }
 0x92d   : > { %v2489_v63 = vmax.f32 %v2473_v11, 0.0  ;;  %v2471_v54 = vadd.f32 %v2455_v2, %v2422_v28  ;;  %4180 = vmatprep.mubr.bf16.mxu0 %v2510_v55  ;;  %v5820_v51 = vadd.f32 %v2486_v25, %v664_v4  ;;  %v4402_v4 = vld [vmem:[%s6076_s12 + $0x28] sm:$0xff]  }
 0x92e   : > { %4181 = vmatmul.mubr.bf16.gmra.mxu0 %v2511_v62 }
 0x92f   : > { %v2487_v17 = vmax.f32 %v2471_v54, 0.0  ;;  %v5828_v12 = vadd.f32 %v2489_v63, %v6140_v44 }
 0x931   : > { %v5824_v14 = vadd.f32 %v2487_v17, %v665_v7  ;;  %v2513_v59 = vpack.c.bf16 %v5828_v12, %v5834_v60  ;;  %v4401_v7 = vld [vmem:[%s6076_s12 + $0x30] sm:$0xff]  }
 0x932   : > { %4191 = vmatpush3.bf16.msra.mxu1 %v4401_v7 }
 0x933   : > { %v2512_v2 = vpack.c.bf16 %v5824_v14, %v5820_v51  ;;  %4192 = vmatprep.subr.bf16.mxu1 %v6114_v47 }
 0x935   : > { %4184 = vmatprep.mubr.bf16.mxu0 %v2512_v2 }
 0x936   : > { %4185 = vmatmul.mubr.bf16.gmra.mxu0 %v2513_v59  ;;  %4193 = vmatpush3.bf16.msra.mxu1 %v4402_v4 }
 0x937   : > { %4194 = vmatprep.subr.bf16.mxu1 %v6114_v47 }
 0x93a   : > { %4195 = vmatpush3.bf16.msra.mxu1 %v4403_v61  ;;  %v2714_v61 = vrot.slane %v5716_v34, %v6138_v27 }
 0x93b   : > { %4196 = vmatprep.subr.bf16.mxu1 %v6114_v47 }
 0x93e   : > { %4197 = vmatpush3.bf16.msra.mxu1 %v4404_v19 }
 0x93f   : > { %4198 = vmatprep.subr.bf16.mxu1 %v6114_v47 }
 0x942   : > { %4199 = vmatpush3.bf16.msra.mxu1 %v4405_v23 }
 0x943   : > { %4200 = vmatprep.subr.bf16.mxu1 %v6114_v47 }
 0x946   : > { %4201 = vmatpush3.bf16.msra.mxu1 %v4406_v39 }
 0x947   : > { %4202 = vmatprep.subr.bf16.mxu1 %v6114_v47  ;;  %v2759_v47 = vrot.slane %v6143_v33, %v6138_v27 }
 0x94a   : > { %4203 = vmatpush3.bf16.msra.mxu1 %v4407_v32 }
 0x9de   : > { %v4174_v16 = vpop.f32.mrf.mxu0 }
 0x9df   : > { %v2630_v24 = vadd.f32 %v4174_v16, %v5872_v35 }
 0x9e0   : > { %v2621_v9 = vpop.f32.mrf.mxu0 }
 0x9e1   : > { %v2719_v6 = vmul.f32 %v2710_v46, %v2630_v24  ;;  %v2622_v57 = vadd.f32 %v5872_v35, %v2621_v9  ;;  %v2763_v9 = vrot.slane %v5723_v56, %v6138_v27 }
 0x9e2   : > { %v4175_v18 = vpop.f32.mrf.mxu0 }
 0x9e3   : > { %v2768_v13 = vadd.f32 %v2759_v47, %v2719_v6  ;;  %v2717_v49 = vmul.f32 %v2710_v46, %v2622_v57  ;;  %v2633_v52 = vadd.f32 %v4175_v18, %v5872_v35 }
 0x9e4   : > { %v2624_v40 = vpop.f32.mrf.mxu0 }
 0x9e5   : > { %v2784_v10 = vmax.f32 %v2768_v13, 0.0  ;;  %v2766_v22 = vadd.f32 %v2759_v47, %v2717_v49  ;;  %v2720_v37 = vmul.f32 %v2710_v46, %v2633_v52  ;;  %v2625_v21 = vadd.f32 %v5872_v35, %v2624_v40 }
 0x9e6   : > { %v4178_v15 = vpop.f32.mrf.mxu0 }
 0x9e7   : > { %v2782_v45 = vmax.f32 %v2766_v22, 0.0  ;;  %v2769_v53 = vadd.f32 %v2759_v47, %v2720_v37  ;;  %v2718_v11 = vmul.f32 %v2710_v46, %v2625_v21  ;;  %v2800_v58 = vadd.f32 %v2784_v10, %v5757_v26 }
 0x9e8   : > { %v2646_v48 = vadd.f32 %v4178_v15, %v5872_v35  ;;  %v2637_v28 = vpop.f32.mrf.mxu0 }
 0x9e9   : > { %v2798_v55 = vadd.f32 %v2782_v45, %v5761_v38  ;;  %v2785_v25 = vmax.f32 %v2769_v53, 0.0  ;;  %v2767_v63 = vadd.f32 %v2759_v47, %v2718_v11  ;;  %v2638_v54 = vadd.f32 %v5872_v35, %v2637_v28 }
 0x9ea   : > { %v2723_v62 = vmul.f32 %v2710_v46, %v2646_v48  ;;  %v4179_v1 = vpop.f32.mrf.mxu0 }
 0x9eb   : > { %v2814_v17 = vmax.f32 %v2798_v55, %v2800_v58  ;;  %v2783_v44 = vmax.f32 %v2767_v63, 0.0  ;;  %v2721_v2 = vmul.f32 %v2710_v46, %v2638_v54  ;;  %v2649_v59 = vadd.f32 %v4179_v1, %v5872_v35 }
 0x9ec   : > { %v2772_v36 = vadd.f32 %v2759_v47, %v2723_v62  ;;  %v2640_v42 = vpop.f32.mrf.mxu0  ;;  %v2801_v26 = vadd.f32 %v2785_v25, %v5748_v0 }
 0x9ed   : > { %v2799_v7 = vadd.f32 %v2783_v44, %v5753_v29  ;;  %v2770_v4 = vadd.f32 %v2759_v47, %v2721_v2  ;;  %v2641_v38 = vadd.f32 %v5872_v35, %v2640_v42  ;;  %v2724_v23 = vmul.f32 %v2710_v46, %v2649_v59 }
 0x9ee   : > { %v2788_v19 = vmax.f32 %v2772_v36, 0.0  ;;  %v4182_v39 = vpop.f32.mrf.mxu0 }
 0x9ef   : > { %v2815_v32 = vmax.f32 %v2799_v7, %v2801_v26  ;;  %v2786_v16 = vmax.f32 %v2770_v4, 0.0  ;;  %v2722_v8 = vmul.f32 %v2710_v46, %v2641_v38  ;;  %v2662_v24 = vadd.f32 %v4182_v39, %v5872_v35 }
 0x9f0   : > { %v2773_v0 = vadd.f32 %v2759_v47, %v2724_v23  ;;  %v2653_v33 = vpop.f32.mrf.mxu0  ;;  %v2804_v34 = vadd.f32 %v2788_v19, %v5789_v41 }
 0x9f1   : > { %v2802_v29 = vadd.f32 %v2786_v16, %v5780_v31  ;;  %v2771_v6 = vadd.f32 %v2759_v47, %v2722_v8  ;;  %v2727_v57 = vmul.f32 %v2714_v61, %v2662_v24  ;;  %v2654_v18 = vadd.f32 %v5872_v35, %v2653_v33 }
 0x9f2   : > { %v2789_v13 = vmax.f32 %v2773_v0, 0.0  ;;  %v4183_v49 = vpop.f32.mrf.mxu0 }
 0x9f3   : > { %v2816_v52 = vmax.f32 %v2814_v17, %v2802_v29  ;;  %v2787_v40 = vmax.f32 %v2771_v6, 0.0  ;;  %v2776_v46 = vadd.f32 %v2763_v9, %v2727_v57  ;;  %v2725_v10 = vmul.f32 %v2714_v61, %v2654_v18 }
 0x9f4   : > { %v2665_v22 = vadd.f32 %v4183_v49, %v5872_v35  ;;  %v2656_v37 = vpop.f32.mrf.mxu0  ;;  %v2805_v41 = vadd.f32 %v2789_v13, %v5776_v43 }
 0x9f5   : > { %v2818_v56 = vmax.f32 %v2816_v52, %v2804_v34  ;;  %v2803_v27 = vadd.f32 %v2787_v40, %v5784_v30  ;;  %v2792_v21 = vmax.f32 %v2776_v46, 0.0  ;;  %v2774_v31 = vadd.f32 %v2763_v9, %v2725_v10 }
 0x9f6   : > { %v2728_v47 = vmul.f32 %v2714_v61, %v2665_v22  ;;  %v2657_v15 = vadd.f32 %v5872_v35, %v2656_v37  ;;  %v4186_v45 = vpop.f32.mrf.mxu0 }
 0x9f7   : > { %v2817_v53 = vmax.f32 %v2815_v32, %v2803_v27  ;;  %v2790_v11 = vmax.f32 %v2774_v31, 0.0  ;;  %v2678_v58 = vadd.f32 %v4186_v45, %v5872_v35  ;;  %v2808_v48 = vadd.f32 %v2792_v21, %v5812_v5 }
 0x9f8   : > { %v2777_v28 = vadd.f32 %v2763_v9, %v2728_v47  ;;  %v2726_v55 = vmul.f32 %v2714_v61, %v2657_v15  ;;  %v2669_v25 = vpop.f32.mrf.mxu0  ;;  %v3720_v15 = vld [vmem:[%s6077_s13] ss:$0 sm:$0xff] }
 0x9f9   : > { %v2819_v63 = vmax.f32 %v2817_v53, %v2805_v41  ;;  %v2806_v30 = vadd.f32 %v2790_v11, %v5804_v3  ;;  %v2731_v54 = vmul.f32 %v2714_v61, %v2678_v58  ;;  %v2670_v62 = vadd.f32 %v5872_v35, %v2669_v25 }
 0x9fa   : > { %v2793_v1 = vmax.f32 %v2777_v28, 0.0  ;;  %v2775_v17 = vadd.f32 %v2763_v9, %v2726_v55  ;;  %v4187_v44 = vpop.f32.mrf.mxu0 }
 0x9fb   : > { %v2820_v2 = vmax.f32 %v2818_v56, %v2819_v63  ;;  %v2827_v43 = vmax.f32 %v2806_v30, %v2808_v48  ;;  %v2780_v36 = vadd.f32 %v2763_v9, %v2731_v54  ;;  %v2729_v59 = vmul.f32 %v2714_v61, %v2670_v62 }
 0x9fc   : > { %v2791_v42 = vmax.f32 %v2775_v17, 0.0  ;;  %v2681_v26 = vadd.f32 %v4187_v44, %v5872_v35  ;;  %v2672_v5 = vpop.f32.mrf.mxu0  ;;  %v2809_v3 = vadd.f32 %v2793_v1, %v5800_v20 }
 0x9fd   : > { %v2778_v7 = vadd.f32 %v2763_v9, %v2729_v59  ;;  %v2673_v4 = vadd.f32 %v5872_v35, %v2672_v5  ;;  %v2821_v38 = vrot.slane %v2820_v2, 4  ;;  %v2796_v39 = vmax.f32 %v2780_v36, 0.0 }
 0x9fe   : > { %v2807_v19 = vadd.f32 %v2791_v42, %v5808_v50  ;;  %v2732_v23 = vmul.f32 %v2714_v61, %v2681_v26 }
 0x9ff   : > { %v2794_v32 = vmax.f32 %v2778_v7, 0.0  ;;  %v2730_v16 = vmul.f32 %v2714_v61, %v2673_v4  ;;  %v2822_v29 = vmax.f32 %v2820_v2, %v2821_v38  ;;  %v2812_v6 = vadd.f32 %v2796_v39, %v5834_v60 }
 0xa00   : > { %v2828_v8 = vmax.f32 %v2807_v19, %v2809_v3  ;;  %v2781_v24 = vadd.f32 %v2763_v9, %v2732_v23 }
 0xa01   : > { %v2810_v0 = vadd.f32 %v2794_v32, %v5820_v51  ;;  %v2779_v33 = vadd.f32 %v2763_v9, %v2730_v16  ;;  %v2823_v13 = vrot.slane %v2822_v29, 2 }
 0xa02   : > { %v2797_v18 = vmax.f32 %v2781_v24, 0.0 }
 0xa03   : > { %v2829_v57 = vmax.f32 %v2827_v43, %v2810_v0  ;;  %v2795_v35 = vmax.f32 %v2779_v33, 0.0  ;;  %v2824_v61 = vmax.f32 %v2822_v29, %v2823_v13 }
 0xa04   : > { %v2813_v50 = vadd.f32 %v2797_v18, %v5828_v12 }
 0xa05   : > { %v2831_v34 = vmax.f32 %v2829_v57, %v2812_v6  ;;  %v2811_v20 = vadd.f32 %v2795_v35, %v5824_v14  ;;  %v2825_v10 = vrot.slane %v2824_v61, 1 }
 0xa07   : > { %v2830_v49 = vmax.f32 %v2828_v8, %v2811_v20  ;;  %v2826_v37 = vmax.f32 %v2824_v61, %v2825_v10 }
 0xa09   : > { %v2832_v52 = vmax.f32 %v2830_v49, %v2813_v50  ;;  %v2840_v27 = vpack.c.bf16 %v2826_v37, %v2826_v37 }
 0xa0b   : > { %v2833_v40 = vmax.f32 %v2831_v34, %v2832_v52  ;;  %v2867_v14 = vunpack.c.l.b16 %v2840_v27 }
 0xa0d   : > { %v2834_v46 = vrot.slane %v2833_v40, 4 }
 0xa0f   : > { %v2835_v51 = vmax.f32 %v2833_v40, %v2834_v46 }
 0xa11   : > { %v2836_v9 = vrot.slane %v2835_v51, 2 }
 0xa13   : > { %v2837_v22 = vmax.f32 %v2835_v51, %v2836_v9 }
 0xa15   : > { %v2838_v60 = vrot.slane %v2837_v22, 1 }
 0xa17   : > { %v2839_v56 = vmax.f32 %v2837_v22, %v2838_v60 }
 0xa19   : > { %v2841_v21 = vpack.c.bf16 %v2839_v56, %v2839_v56 }
 0xa1b   : > { %v2868_v31 = vunpack.c.l.b16 %v2841_v21 }
 0xa1d   : > { %v2870_v47 = vsel %vm2869_vm2, %v2868_v31, %v2867_v14 }
 0xa1e   : > { %v2871_v12 = vpack.c.b16 %v2870_v47, %v2870_v47 }
 0xa20   : > { %4205 = vmatmul.mubr.bf16.vlgmr.msra.gmra.mxu1 %v2871_v12 }
 0xae0   : > { %v2955_v45 = vpop.f32.mrf.mxu1 }
 0xae1   : > { %v2956_v41 = vadd.f32 %v3720_v15, %v2955_v45 }
 0xae2   : > { %v4206_v53 = vpop.f32.mrf.mxu1 }
 0xae3   : > { %v2962_v11 = vsel %vm2961_vm3, %v2956_v41, 0.0 }
 0xae4   : > { %2963 = vst [vmem:[%s4642_s19] sm:$0xf] %v2962_v11  ;;  %v2958_v58 = vpop.f32.mrf.mxu1 }
 0xae6   : > { %v4207_v48 = vpop.f32.mrf.mxu1 }
 0xae7 PF: > { %p3729_p5 = scmp.ne.s32.totalorder %s4633_s30, 1 }
 0xae9   : > { %2967 = sbr.rel (%p3729_p5) target bundleno = 3290 (0xcda), region = 84 }
 0xaee   : > { %v4512_v28 = vld [vmem:[%s6065_s1 + $0x8] sm:$0xff]   ;;  %v4513_v55 = vld [vmem:[%s6065_s1] sm:$0xff]   ;;  %vm3103_vm4 = vcmask 261120   ;;  %v4516_v30 = vld [vmem:[%s6064_s0 + $0x50] sm:$0xff]   ;;  %v4550_v38 = vmov 0.0   ;;  %vm4551_vm5 = vmmov 0  }
 0xaef   : > { %4208 = vmatprep.subr.bf16.mxu0 %v4512_v28  ;;  %v4514_v25 = vld [vmem:[%s6064_s0 + $0x40] sm:$0xff]   ;;  %v4515_v63 = vld [vmem:[%s6064_s0 + $0x48] sm:$0xff]   ;;  %v4517_v54 = vld [vmem:[%s6064_s0 + $0x58] sm:$0xff]   ;;  %4244 = vmatprep.subr.bf16.mxu1 %v4550_v38  ;;  %vm3432_vm6 = vcmask 1041409   ;;  %vm3434_vm7 = vcmask 1042434   ;;  %vm3436_vm8 = vcmask 1043459  }
 0xaf0   : > { %4209 = vmatpush3.bf16.msra.mxu0 %v4512_v28  ;;  %4212 = vmatprep.mubr.msk.bf16.mxu0 %vm3103_vm4, %v4514_v25  ;;  %v4518_v62 = vld [vmem:[%s6064_s0 + $0x60] sm:$0xff]   ;;  %v4519_v1 = vld [vmem:[%s6064_s0 + $0x68] sm:$0xff]   ;;  %v4520_v17 = vld [vmem:[%s6064_s0 + $0x70] sm:$0xff]  }
 0xaf1   : > { %4210 = vmatprep.subr.bf16.mxu0 %v4513_v55  ;;  %v4521_v44 = vld [vmem:[%s6064_s0 + $0x78] sm:$0xff]   ;;  %v4522_v2 = vld [vmem:[%s6064_s0 + $0x80] sm:$0xff]   ;;  %v4523_v43 = vld [vmem:[%s6064_s0 + $0x88] sm:$0xff]   ;;  %4260 = vmatprep.mubr.msk.bf16.mxu1 %vm4551_vm5, %v4550_v38 }
 0xaf2   : > { %v4524_v36 = vld [vmem:[%s6064_s0 + $0x90] sm:$0xff]   ;;  %v4525_v59 = vld [vmem:[%s6064_s0 + $0x98] sm:$0xff]   ;;  %v4526_v42 = vld [vmem:[%s6064_s0 + $0xa0] sm:$0xff]  }
 0xaf3   : > { %v4527_v26 = vld [vmem:[%s6064_s0 + $0xa8] sm:$0xff]   ;;  %v4528_v5 = vld [vmem:[%s6064_s0 + $0xb0] sm:$0xff]   ;;  %v4529_v7 = vld [vmem:[%s6064_s0 + $0xb8] sm:$0xff]  }
 0xaf4   : > { %4211 = vmatpush3.bf16.msra.mxu0 %v4513_v55  ;;  %v4530_v4 = vld [vmem:[%s6076_s12 + $0x38] sm:$0xff]   ;;  %v4531_v3 = vld [vmem:[%s6076_s12 + $0x30] sm:$0xff]   ;;  %v4532_v19 = vld [vmem:[%s6076_s12 + $0x28] sm:$0xff]  }
 0xaf5   : > { %4245 = vmatpush3.bf16.msra.mxu1 %v4530_v4  ;;  %v4533_v23 = vld [vmem:[%s6076_s12 + $0x20] sm:$0xff]   ;;  %v4534_v39 = vld [vmem:[%s6076_s12 + $0x18] sm:$0xff]   ;;  %v4535_v32 = vld [vmem:[%s6076_s12 + $0x10] sm:$0xff]  }
 0xaf6   : > { %4246 = vmatprep.subr.bf16.mxu1 %v4550_v38  ;;  %v4536_v16 = vld [vmem:[%s6076_s12 + $0x8] sm:$0xff]   ;;  %v4537_v8 = vld [vmem:[%s6076_s12] sm:$0xff]  }
 0xaf7   : > { %4213 = vmatmul.mubr.msk.bf16.vlgmr.msra.gmra.mxu0 %vm3103_vm4, %v4515_v63  ;;  %v6022_v13 = vld [vmem:[%s6066_s2] ss:$0 sm:$0xff] }
 0xaf8   : > { %4216 = vmatprep.mubr.msk.bf16.mxu0 %vm3103_vm4, %v4516_v30 }
 0xaf9   : > { %4247 = vmatpush3.bf16.msra.mxu1 %v4531_v3 }
 0xafa   : > { %4248 = vmatprep.subr.bf16.mxu1 %v4550_v38 }
 0xafd   : > { %4249 = vmatpush3.bf16.msra.mxu1 %v4532_v19 }
 0xafe   : > { %4250 = vmatprep.subr.bf16.mxu1 %v4550_v38 }
 0xaff   : > { %4217 = vmatmul.mubr.msk.bf16.gmra.mxu0 %vm3103_vm4, %v4517_v54 }
 0xb00   : > { %4220 = vmatprep.mubr.msk.bf16.mxu0 %vm3103_vm4, %v4518_v62 }
 0xb01   : > { %4251 = vmatpush3.bf16.msra.mxu1 %v4533_v23 }
 0xb02   : > { %4252 = vmatprep.subr.bf16.mxu1 %v4550_v38 }
 0xb05   : > { %4253 = vmatpush3.bf16.msra.mxu1 %v4534_v39 }
 0xb06   : > { %4254 = vmatprep.subr.bf16.mxu1 %v4550_v38 }
 0xb07   : > { %4221 = vmatmul.mubr.msk.bf16.gmra.mxu0 %vm3103_vm4, %v4519_v1 }
 0xb08   : > { %4224 = vmatprep.mubr.msk.bf16.mxu0 %vm3103_vm4, %v4520_v17 }
 0xb09   : > { %4255 = vmatpush3.bf16.msra.mxu1 %v4535_v32 }
 0xb0a   : > { %4256 = vmatprep.subr.bf16.mxu1 %v4550_v38 }
 0xb0d   : > { %4257 = vmatpush3.bf16.msra.mxu1 %v4536_v16 }
 0xb0e   : > { %4258 = vmatprep.subr.bf16.mxu1 %v4550_v38 }
 0xb0f   : > { %4225 = vmatmul.mubr.msk.bf16.gmra.mxu0 %vm3103_vm4, %v4521_v44 }
 0xb10   : > { %4228 = vmatprep.mubr.msk.bf16.mxu0 %vm3103_vm4, %v4522_v2 }
 0xb11   : > { %4259 = vmatpush3.bf16.msra.mxu1 %v4537_v8 }
 0xb17   : > { %4229 = vmatmul.mubr.msk.bf16.gmra.mxu0 %vm3103_vm4, %v4523_v43 }
 0xb18   : > { %4232 = vmatprep.mubr.msk.bf16.mxu0 %vm3103_vm4, %v4524_v36 }
 0xb1f   : > { %4233 = vmatmul.mubr.msk.bf16.gmra.mxu0 %vm3103_vm4, %v4525_v59 }
 0xb20   : > { %4236 = vmatprep.mubr.msk.bf16.mxu0 %vm3103_vm4, %v4526_v42 }
 0xb27   : > { %4237 = vmatmul.mubr.msk.bf16.gmra.mxu0 %vm3103_vm4, %v4527_v26 }
 0xb28   : > { %4240 = vmatprep.mubr.msk.bf16.mxu0 %vm3103_vm4, %v4528_v5 }
 0xb2f   : > { %4241 = vmatmul.mubr.msk.bf16.gmra.mxu0 %vm3103_vm4, %v4529_v7 }
 0xbb7   : > { %v4214_v24 = vpop.f32.mrf.mxu0 }
 0xbb8   : > { %v3195_v60 = vadd.f32 %v4214_v24, %v6022_v13 }
 0xbb9   : > { %v3186_v0 = vpop.f32.mrf.mxu0 }
 0xbba   : > { %v3187_v61 = vadd.f32 %v6022_v13, %v3186_v0  ;;  %v3315_v15 = vmax.f32 %v3195_v60, 0.0 }
 0xbbb   : > { %v4215_v33 = vpop.f32.mrf.mxu0 }
 0xbbc   : > { %v3313_v56 = vmax.f32 %v3187_v61, 0.0  ;;  %v3198_v45 = vadd.f32 %v4215_v33, %v6022_v13 }
 0xbbd   : > { %v3189_v29 = vpop.f32.mrf.mxu0 }
 0xbbe   : > { %v3190_v50 = vadd.f32 %v6022_v13, %v3189_v29  ;;  %v3316_v55 = vmax.f32 %v3198_v45, 0.0 }
 0xbbf   : > { %v4218_v6 = vpop.f32.mrf.mxu0 }
 0xbc0   : > { %v3314_v10 = vmax.f32 %v3190_v50, 0.0  ;;  %v3211_v32 = vadd.f32 %v4218_v6, %v6022_v13 }
 0xbc1   : > { %v3202_v57 = vpop.f32.mrf.mxu0 }
 0xbc2   : > { %v3345_v14 = vmax.f32 %v3313_v56, %v3314_v10  ;;  %v3203_v25 = vadd.f32 %v6022_v13, %v3202_v57 }
 0xbc3   : > { %v6017_v18 = vpop.f32.mrf.mxu0 }
 0xbc4   : > { %v3346_v11 = vmax.f32 %v3345_v14, %v3315_v15  ;;  %v3317_v43 = vmax.f32 %v3203_v25, 0.0 }
 0xbc5   : > { %v3205_v35 = vpop.f32.mrf.mxu0 }
 0xbc6   : > { %v3347_v62 = vmax.f32 %v3346_v11, %v3316_v55  ;;  %v3206_v1 = vadd.f32 %v6022_v13, %v3205_v35 }
 0xbc7   : > { %v4222_v34 = vpop.f32.mrf.mxu0 }
 0xbc8   : > { %v3227_v51 = vadd.f32 %v4222_v34, %v6022_v13  ;;  %v3348_v7 = vmax.f32 %v3347_v62, %v3317_v43  ;;  %v3318_v4 = vmax.f32 %v3206_v1, 0.0 }
 0xbc9   : > { %v3218_v20 = vpop.f32.mrf.mxu0 }
 0xbca   : > { %v3219_v52 = vadd.f32 %v6022_v13, %v3218_v20  ;;  %v3323_v31 = vmax.f32 %v3227_v51, 0.0  ;;  %v3349_v29 = vmax.f32 %v3348_v7, %v3318_v4 }
 0xbcb   : > { %v4223_v49 = vpop.f32.mrf.mxu0 }
 0xbcc   : > { %v3321_v22 = vmax.f32 %v3219_v52, 0.0  ;;  %v3230_v47 = vadd.f32 %v4223_v49, %v6022_v13  ;;  %v3319_v49 = vmax.f32 %v3211_v32, 0.0  ;;  %v3214_v52 = vadd.f32 %v6017_v18, %v6022_v13 }
 0xbcd   : > { %v3221_v40 = vpop.f32.mrf.mxu0 }
 0xbce   : > { %v3222_v46 = vadd.f32 %v6022_v13, %v3221_v40  ;;  %v3324_v58 = vmax.f32 %v3230_v47, 0.0 }
 0xbcf   : > { %v4226_v9 = vpop.f32.mrf.mxu0 }
 0xbd0   : > { %v3322_v37 = vmax.f32 %v3222_v46, 0.0  ;;  %v3243_v38 = vadd.f32 %v4226_v9, %v6022_v13  ;;  %v3350_v9 = vmax.f32 %v3349_v29, %v3319_v49 }
 0xbd1   : > { %v3234_v27 = vpop.f32.mrf.mxu0 }
 0xbd2   : > { %v3358_v21 = vmax.f32 %v3321_v22, %v3322_v37  ;;  %v3235_v48 = vadd.f32 %v6022_v13, %v3234_v27  ;;  %v3327_v57 = vmax.f32 %v3243_v38, 0.0 }
 0xbd3   : > { %v4227_v12 = vpop.f32.mrf.mxu0 }
 0xbd4   : > { %v3359_v41 = vmax.f32 %v3358_v21, %v3323_v31  ;;  %v3325_v17 = vmax.f32 %v3235_v48, 0.0  ;;  %v3246_v35 = vadd.f32 %v4227_v12, %v6022_v13  ;;  %v3320_v21 = vmax.f32 %v3214_v52, 0.0 }
 0xbd5   : > { %v3237_v53 = vpop.f32.mrf.mxu0 }
 0xbd6   : > { %v3360_v63 = vmax.f32 %v3359_v41, %v3324_v58  ;;  %v3238_v30 = vadd.f32 %v6022_v13, %v3237_v53  ;;  %v3328_v22 = vmax.f32 %v3246_v35, 0.0  ;;  %v3351_v12 = vmax.f32 %v3350_v9, %v3320_v21 }
 0xbd7   : > { %v4230_v28 = vpop.f32.mrf.mxu0 }
 0xbd8   : > { %v3361_v36 = vmax.f32 %v3360_v63, %v3325_v17  ;;  %v3326_v59 = vmax.f32 %v3238_v30, 0.0  ;;  %v3259_v26 = vadd.f32 %v4230_v28, %v6022_v13  ;;  %v3352_v25 = vrot.slane %v3351_v12, 4 }
 0xbd9   : > { %v3250_v54 = vpop.f32.mrf.mxu0 }
 0xbda   : > { %v3251_v2 = vadd.f32 %v6022_v13, %v3250_v54  ;;  %v3362_v16 = vmax.f32 %v3361_v36, %v3326_v59  ;;  %v3331_v24 = vmax.f32 %v3259_v26, 0.0  ;;  %v3353_v26 = vmax.f32 %v3351_v12, %v3352_v25 }
 0xbdb   : > { %v4231_v44 = vpop.f32.mrf.mxu0 }
 0xbdc   : > { %v3329_v19 = vmax.f32 %v3251_v2, 0.0  ;;  %v3262_v23 = vadd.f32 %v4231_v44, %v6022_v13  ;;  %v3363_v61 = vmax.f32 %v3362_v16, %v3327_v57  ;;  %v3354_v16 = vrot.slane %v3353_v26, 2 }
 0xbdd   : > { %v3253_v42 = vpop.f32.mrf.mxu0 }
 0xbde   : > { %v3254_v5 = vadd.f32 %v6022_v13, %v3253_v42  ;;  %v3332_v20 = vmax.f32 %v3262_v23, 0.0  ;;  %v3364_v14 = vmax.f32 %v3363_v61, %v3328_v22 }
 0xbdf   : > { %v4234_v3 = vpop.f32.mrf.mxu0 }
 0xbe0   : > { %v3330_v39 = vmax.f32 %v3254_v5, 0.0  ;;  %v3275_v6 = vadd.f32 %v4234_v3, %v6022_v13  ;;  %v3365_v11 = vrot.slane %v3364_v14, 4 }
 0xbe1   : > { %v3266_v8 = vpop.f32.mrf.mxu0 }
 0xbe2   : > { %v3371_v0 = vmax.f32 %v3329_v19, %v3330_v39  ;;  %v3267_v33 = vadd.f32 %v6022_v13, %v3266_v8  ;;  %v3335_v47 = vmax.f32 %v3275_v6, 0.0  ;;  %v3366_v17 = vmax.f32 %v3364_v14, %v3365_v11  ;;  %v3765_v11 = vld [vmem:[%s6077_s13] ss:$0 sm:$0xff] }
 0xbe3   : > { %v4235_v34 = vpop.f32.mrf.mxu0 }
 0xbe4   : > { %v3372_v50 = vmax.f32 %v3371_v0, %v3331_v24  ;;  %v3333_v46 = vmax.f32 %v3267_v33, 0.0  ;;  %v3278_v56 = vadd.f32 %v4235_v34, %v6022_v13  ;;  %v3367_v4 = vrot.slane %v3366_v17, 2 }
 0xbe5   : > { %v3269_v40 = vpop.f32.mrf.mxu0  ;;  %v3355_v34 = vmax.f32 %v3353_v26, %v3354_v16 }
 0xbe6   : > { %v3373_v10 = vmax.f32 %v3372_v50, %v3332_v20  ;;  %v3270_v51 = vadd.f32 %v6022_v13, %v3269_v40  ;;  %v3336_v45 = vmax.f32 %v3278_v56, 0.0  ;;  %v3368_v33 = vmax.f32 %v3366_v17, %v3367_v4 }
 0xbe7   : > { %v4238_v37 = vpop.f32.mrf.mxu0  ;;  %v3356_v40 = vrot.slane %v3355_v34, 1 }
 0xbe8   : > { %v3374_v60 = vmax.f32 %v3373_v10, %v3333_v46  ;;  %v3334_v27 = vmax.f32 %v3270_v51, 0.0  ;;  %v3291_v28 = vadd.f32 %v4238_v37, %v6022_v13  ;;  %v3369_v49 = vrot.slane %v3368_v33, 1 }
 0xbe9   : > { %v3282_v31 = vpop.f32.mrf.mxu0  ;;  %v3357_v9 = vmax.f32 %v3355_v34, %v3356_v40 }
 0xbea   : > { %v3375_v18 = vmax.f32 %v3374_v60, %v3334_v27  ;;  %v3283_v53 = vadd.f32 %v6022_v13, %v3282_v31  ;;  %v3339_v2 = vmax.f32 %v3291_v28, 0.0  ;;  %v3370_v46 = vmax.f32 %v3368_v33, %v3369_v49 }
 0xbeb   : > { %v4239_v15 = vpop.f32.mrf.mxu0  ;;  %v3397_v56 = vpack.c.bf16 %v3357_v9, %v3357_v9 }
 0xbec   : > { %v3376_v41 = vmax.f32 %v3375_v18, %v3335_v47  ;;  %v3337_v54 = vmax.f32 %v3283_v53, 0.0  ;;  %v3294_v62 = vadd.f32 %v4239_v15, %v6022_v13  ;;  %v3398_v37 = vpack.c.bf16 %v3370_v46, %v3370_v46 }
 0xbed   : > { %v3285_v58 = vpop.f32.mrf.mxu0  ;;  %v3428_v18 = vunpack.c.l.b16 %v3397_v56 }
 0xbee   : > { %v3377_v48 = vmax.f32 %v3376_v41, %v3336_v45  ;;  %v3286_v55 = vadd.f32 %v6022_v13, %v3285_v58  ;;  %v3340_v5 = vmax.f32 %v3294_v62, 0.0  ;;  %v3429_v14 = vunpack.c.l.b16 %v3398_v37 }
 0xbef   : > { %v4242_v63 = vpop.f32.mrf.mxu0 }
 0xbf0   : > { %v3378_v30 = vrot.slane %v3377_v48, 4  ;;  %v3338_v1 = vmax.f32 %v3286_v55, 0.0  ;;  %v3307_v3 = vadd.f32 %v4242_v63, %v6022_v13  ;;  %v3433_v15 = vsel %vm3432_vm6, %v3429_v14, %v3428_v18 }
 0xbf1   : > { %v3298_v44 = vpop.f32.mrf.mxu0 }
 0xbf2   : > { %v3384_v43 = vmax.f32 %v3337_v54, %v3338_v1  ;;  %v3299_v36 = vadd.f32 %v6022_v13, %v3298_v44  ;;  %v3379_v59 = vmax.f32 %v3377_v48, %v3378_v30  ;;  %v3343_v29 = vmax.f32 %v3307_v3, 0.0 }
 0xbf3   : > { %v4243_v42 = vpop.f32.mrf.mxu0 }
 0xbf4   : > { %v3385_v7 = vmax.f32 %v3384_v43, %v3339_v2  ;;  %v3341_v19 = vmax.f32 %v3299_v36, 0.0  ;;  %v3380_v32 = vrot.slane %v3379_v59, 2  ;;  %v3310_v24 = vadd.f32 %v4243_v42, %v6022_v13 }
 0xbf5   : > { %v3301_v38 = vpop.f32.mrf.mxu0 }
 0xbf6   : > { %v3386_v23 = vmax.f32 %v3385_v7, %v3340_v5  ;;  %v3302_v39 = vadd.f32 %v6022_v13, %v3301_v38  ;;  %v3381_v35 = vmax.f32 %v3379_v59, %v3380_v32  ;;  %v3344_v20 = vmax.f32 %v3310_v24, 0.0 }
 0xbf8   : > { %v3387_v8 = vmax.f32 %v3386_v23, %v3341_v19  ;;  %v3342_v0 = vmax.f32 %v3302_v39, 0.0  ;;  %v3382_v61 = vrot.slane %v3381_v35, 1 }
 0xbfa   : > { %v3388_v57 = vmax.f32 %v3387_v8, %v3342_v0  ;;  %v3383_v51 = vmax.f32 %v3381_v35, %v3382_v61 }
 0xbfc   : > { %v3389_v50 = vmax.f32 %v3388_v57, %v3343_v29  ;;  %v3399_v60 = vpack.c.bf16 %v3383_v51, %v3383_v51 }
 0xbfe   : > { %v3390_v52 = vmax.f32 %v3389_v50, %v3344_v20  ;;  %v3430_v31 = vunpack.c.l.b16 %v3399_v60 }
 0xc00   : > { %v3391_v6 = vrot.slane %v3390_v52, 4  ;;  %v3435_v45 = vsel %vm3434_vm7, %v3430_v31, %v3433_v15 }
 0xc02   : > { %v3392_v10 = vmax.f32 %v3390_v52, %v3391_v6 }
 0xc04   : > { %v3393_v22 = vrot.slane %v3392_v10, 2 }
 0xc06   : > { %v3394_v13 = vmax.f32 %v3392_v10, %v3393_v22 }
 0xc08   : > { %v3395_v27 = vrot.slane %v3394_v13, 1 }
 0xc0a   : > { %v3396_v21 = vmax.f32 %v3394_v13, %v3395_v27 }
 0xc0c   : > { %v3400_v47 = vpack.c.bf16 %v3396_v21, %v3396_v21 }
 0xc0e   : > { %v3431_v12 = vunpack.c.l.b16 %v3400_v47 }
 0xc10   : > { %v3437_v41 = vsel %vm3436_vm8, %v3431_v12, %v3435_v45 }
 0xc11   : > { %v3438_v53 = vpack.c.b16 %v3437_v41, %v3437_v41 }
 0xc13   : > { %4261 = vmatmul.mubr.bf16.vlgmr.msra.gmra.mxu1 %v3438_v53 }
 0xcd3   : > { %v3522_v58 = vpop.f32.mrf.mxu1 }
 0xcd4   : > { %v3523_v48 = vadd.f32 %v3765_v11, %v3522_v58 }
 0xcd5   : > { %v4262_v28 = vpop.f32.mrf.mxu1 }
 0xcd6   : > { %3528 = vst [vmem:[%s4642_s19] sm:$0xf] %v3523_v48 }
 0xcd7   : > { %v3525_v55 = vpop.f32.mrf.mxu1 }
 0xcd9   : > { %v4263_v25 = vpop.f32.mrf.mxu1 }
 0xcda PF: > { %s24_s29 = sadd.s32 1, %s4544_s29  }
 0xcdb   : > { %p21_p6 = scmp.ge.s32.totalorder %s24_s29, 4  }
 0xcdd   :  { %23 = sbr.rel (!%p21_p6) target bundleno = 1 (0x1), region = 113 }

</bundles_post_ra>
